<compile_context>
chip_gen: v5e
topology: v5e:2x2
jax: 0.10.0
libtpu: 0.0.40
codegen_flags: <defaults>
</compile_context>

<pallas_src>
import jax
import jax.numpy as jnp
from jax import lax
from jax.experimental import pallas as pl
from jax.experimental.pallas import tpu as pltpu


def _round_up(x, m):
    return (x + m - 1) // m * m


# ----------------------------------------------------------------------------
# Kernel 1: fused input projection for BOTH directions, tiled over rows.
#   x_ref : (TM, E)    bf16
#   w_ref : (E, 8H)    bf16   columns = [fwd i|f|g|o , bwd i|f|g|o]
#   b_ref : (1, 8H)    f32    folded b_ih + b_hh for both directions
#   o_ref : (TM, 8H)   bf16
# ----------------------------------------------------------------------------
def input_proj_kernel(x_ref, w_ref, b_ref, o_ref):
    o_ref[...] = (
        jnp.dot(x_ref[...], w_ref[...], preferred_element_type=jnp.float32)
        + b_ref[...]
    ).astype(o_ref.dtype)


def run_input_projection(x2d, wih_all, b_all):
    N, E = x2d.shape
    G2 = wih_all.shape[-1]                       # 8H

    TM = 512 if N >= 512 else _round_up(max(N, 16), 16)
    N_pad = _round_up(N, TM)
    if N_pad != N:
        x2d = jnp.pad(x2d, ((0, N_pad - N), (0, 0)))

    flops = 2 * N_pad * E * G2
    bytes_accessed = N_pad * E * 2 + E * G2 * 2 + G2 * 4 + N_pad * G2 * 2

    out = pl.pallas_call(
        input_proj_kernel,
        out_shape=jax.ShapeDtypeStruct((N_pad, G2), jnp.bfloat16),
        grid=(N_pad // TM,),
        in_specs=[
            pl.BlockSpec((TM, E), lambda i: (i, 0)),
            pl.BlockSpec((E, G2), lambda i: (0, 0)),
            pl.BlockSpec((1, G2), lambda i: (0, 0)),
        ],
        out_specs=pl.BlockSpec((TM, G2), lambda i: (i, 0)),
        compiler_params=pltpu.CompilerParams(
            dimension_semantics=("parallel",),
            vmem_limit_bytes=32 * 1024 * 1024),
        cost_estimate=pl.CostEstimate(
            flops=flops, transcendentals=0, bytes_accessed=bytes_accessed),
    )(x2d, wih_all, b_all)
    return out[:N]


# ----------------------------------------------------------------------------
# Kernel 2: both LSTM directions interleaved in one body + batched FC epilogue.
#   xproj_ref : (S, Bp, 8H)  bf16   precomputed x @ W_ih + b (fwd 4H | bwd 4H)
#   whh_ref   : (H, 8H)      bf16   recurrent weights (fwd 4H | bwd 4H), gate-fused
#   fcw_ref   : (2H, O_pad)  bf16   fc weight, rows [fwd H | bwd H], lane-padded
#   fcb_ref   : (1, O_pad)   f32    fc bias, lane-padded
#   out_ref   : (S*Bp, O_pad) f32   fc(concat(h_fwd, h_bwd)) + bias (lane-dense store)
# Scratch:
#   hf, hb : (Bp, H) bf16   bf16 shadow of hidden state (feeds next-step matmul)
#   cf, cb : (Bp, H) f32    cell state
#   hall   : (S*Bp, 2H) f32 all hidden states (fwd in cols :H, bwd in cols H:)
# ----------------------------------------------------------------------------
def bilstm_recurrence_kernel(xproj_ref, whh_ref, fcw_ref, fcb_ref, out_ref,
                             hf, cf, hb, cb, hall):
    S, Bp, G2 = xproj_ref.shape
    H = whh_ref.shape[0]
    G = 4 * H

    hf[...] = jnp.zeros_like(hf)
    cf[...] = jnp.zeros_like(cf)
    hb[...] = jnp.zeros_like(hb)
    cb[...] = jnp.zeros_like(cb)

    # Hoisted out of the loop.
    w_hh_f = whh_ref[:, :G]
    w_hh_b = whh_ref[:, G:]

    def gate_math(gates, c):
        i_g = jax.nn.sigmoid(gates[:, 0 * H:1 * H])
        f_g = jax.nn.sigmoid(gates[:, 1 * H:2 * H])
        g_g = jnp.tanh(gates[:, 2 * H:3 * H])
        o_g = jax.nn.sigmoid(gates[:, 3 * H:4 * H])
        c_new = f_g * c + i_g * g_g
        h_new = o_g * jnp.tanh(c_new)
        return h_new, c_new

    def one_step(t_f, t_b):
        # Two independent recurrent chains: matmuls issued back-to-back (ILP on one TC).
        g_f = xproj_ref[t_f, :, :G].astype(jnp.float32) + jnp.dot(
            hf[...], w_hh_f, preferred_element_type=jnp.float32)
        g_b = xproj_ref[t_b, :, G:].astype(jnp.float32) + jnp.dot(
            hb[...], w_hh_b, preferred_element_type=jnp.float32)

        h_fn, c_fn = gate_math(g_f, cf[...])
        h_bn, c_bn = gate_math(g_b, cb[...])

        # bf16 shadow of h reused by next step's W_hh matmul (single cast per step).
        hf[...] = h_fn.astype(jnp.bfloat16)
        hb[...] = h_bn.astype(jnp.bfloat16)
        cf[...] = c_fn
        cb[...] = c_bn

        # Stash hidden states for the batched FC epilogue (VMEM scratch only).
        hall[pl.ds(t_f * Bp, Bp), 0:H] = h_fn
        hall[pl.ds(t_b * Bp, Bp), H:2 * H] = h_bn

    if S <= 64:
        # Full static unroll: time indices are Python ints -> static addressing.
        for i in range(S):
            one_step(i, S - 1 - i)
    else:
        # Bounded unroll for long sequences to avoid instruction-stream / vreg blowup.
        def body(i, carry):
            one_step(i, S - 1 - i)
            return carry
        lax.fori_loop(0, S, body, 0, unroll=8)

    # Batched, lane-dense FC epilogue: one (S*Bp, 2H) @ (2H, O_pad) matmul + one store.
    h_flat = hall[...].astype(jnp.bfloat16)
    out_ref[...] = (
        jnp.dot(h_flat, fcw_ref[...], preferred_element_type=jnp.float32)
        + fcb_ref[...]
    )


def run_bilstm_recurrence(xproj, whh_all, fcw_pad, fcb_pad):
    S, Bp, G2 = xproj.shape            # G2 = 8H
    H = whh_all.shape[0]
    O_pad = fcw_pad.shape[-1]
    G = 4 * H

    flops = 2 * S * (2 * Bp * H * G) + 2 * S * Bp * 2 * H * O_pad + S * Bp * 8 * G
    transcendentals = 2 * S * Bp * 5 * H
    bytes_accessed = (S * Bp * G2 * 2 + H * G2 * 2 + 2 * H * O_pad * 2
                      + O_pad * 4 + S * Bp * O_pad * 4)

    return pl.pallas_call(
        bilstm_recurrence_kernel,
        out_shape=jax.ShapeDtypeStruct((S * Bp, O_pad), jnp.float32),
        in_specs=[pl.BlockSpec(memory_space=pltpu.MemorySpace.VMEM)] * 4,
        out_specs=pl.BlockSpec(memory_space=pltpu.MemorySpace.VMEM),
        scratch_shapes=[
            pltpu.VMEM((Bp, H), jnp.bfloat16),       # h_fwd (bf16 shadow)
            pltpu.VMEM((Bp, H), jnp.float32),        # c_fwd
            pltpu.VMEM((Bp, H), jnp.bfloat16),       # h_bwd (bf16 shadow)
            pltpu.VMEM((Bp, H), jnp.float32),        # c_bwd
            pltpu.VMEM((S * Bp, 2 * H), jnp.float32) # all hidden states
        ],
        compiler_params=pltpu.CompilerParams(
            vmem_limit_bytes=64 * 1024 * 1024),
        cost_estimate=pl.CostEstimate(
            flops=flops, transcendentals=transcendentals,
            bytes_accessed=bytes_accessed),
    )(xproj, whh_all, fcw_pad, fcb_pad)
    # TODO(synk): for very long sequences add a time-blocked grid axis (reversed time
    # index_map for the backward direction, h/c carried in scratch) so the xproj slab and
    # hall scratch stay bounded on v7x's 64 MiB VMEM.


# ----------------------------------------------------------------------------
# Full forward pass (matches BiLSTM_model.forward, eval-mode dropout).
# ----------------------------------------------------------------------------
@jax.jit
def bilstm_forward(text, params):
    S, B = text.shape
    E = params["embedding"].shape[1]
    H = params["whh"].shape[0]
    O = params["fc_b"].shape[-1]

    # Pad batch to a multiple of 8 sublanes (padded rows are computed then sliced away).
    Bp = max(8, _round_up(B, 8))
    text_p = jnp.pad(text, ((0, 0), (0, Bp - B)))

    # Embedding gather (XLA) + bf16 cast for the MXU.
    # TODO(synk): could fuse the gather into kernel 1 via scalar-prefetch row gather.
    emb = jnp.take(params["embedding"], text_p, axis=0)          # (S, Bp, E) f32
    x2d = emb.reshape(S * Bp, E).astype(jnp.bfloat16)

    wih_bf = params["wih"].astype(jnp.bfloat16)
    whh_bf = params["whh"].astype(jnp.bfloat16)

    # Hoisted, direction-fused input projection: (S*Bp, E) @ (E, 8H) -> bf16.
    xproj = run_input_projection(x2d, wih_bf, params["b_all"])    # (S*Bp, 8H) bf16
    xproj = xproj.reshape(S, Bp, 8 * H)

    # Lane-dense fc: pad output dim to a multiple of 128, slice back afterwards.
    O_pad = _round_up(O, 128)
    fcw_pad = jnp.zeros((2 * H, O_pad), jnp.bfloat16)
    fcw_pad = fcw_pad.at[:, :O].set(params["fc_w"].astype(jnp.bfloat16))
    fcb_pad = jnp.zeros((1, O_pad), jnp.float32).at[:, :O].set(
        params["fc_b"].reshape(1, O))

    out_flat = run_bilstm_recurrence(xproj, whh_bf, fcw_pad, fcb_pad)  # (S*Bp, O_pad)
    out = out_flat.reshape(S, Bp, O_pad)

    # Dropout: identity (eval mode).
    # TODO(synk): training-mode dropout RNG not reproduced.
    return out[:, :B, :O]


# ----------------------------------------------------------------------------
# Pure-JAX reference (PyTorch LSTM math, same fused layout / bf16 matmul path).
# ----------------------------------------------------------------------------
def bilstm_forward_ref(text, params):
    S, B = text.shape
    E = params["embedding"].shape[1]
    H = params["whh"].shape[0]
    O = params["fc_b"].shape[-1]
    G = 4 * H

    emb = jnp.take(params["embedding"], text, axis=0).astype(jnp.bfloat16)
    wih = params["wih"].astype(jnp.bfloat16)
    xproj = (jnp.dot(emb.reshape(S * B, E), wih, preferred_element_type=jnp.float32)
             + params["b_all"]).astype(jnp.bfloat16).reshape(S, B, 2 * G)

    def run_dir(d, reverse):
        w_hh = params["whh"][:, d * G:(d + 1) * G].astype(jnp.bfloat16)
        xs = xproj[:, :, d * G:(d + 1) * G]
        if reverse:
            xs = xs[::-1]

        def step(carry, xp_t):
            h_bf, c = carry
            gates = xp_t.astype(jnp.float32) + jnp.dot(
                h_bf, w_hh, preferred_element_type=jnp.float32)
            i_g = jax.nn.sigmoid(gates[:, :H])
            f_g = jax.nn.sigmoid(gates[:, H:2 * H])
            g_g = jnp.tanh(gates[:, 2 * H:3 * H])
            o_g = jax.nn.sigmoid(gates[:, 3 * H:])
            c_n = f_g * c + i_g * g_g
            h_n = o_g * jnp.tanh(c_n)
            return (h_n.astype(jnp.bfloat16), c_n), h_n

        init = (jnp.zeros((B, H), jnp.bfloat16), jnp.zeros((B, H), jnp.float32))
        _, hs = lax.scan(step, init, xs)
        if reverse:
            hs = hs[::-1]
        return hs                                              # (S, B, H) f32

    h_f = run_dir(0, False)
    h_b = run_dir(1, True)
    h_cat = jnp.concatenate([h_f, h_b], axis=-1).reshape(S * B, 2 * H)
    fcw = params["fc_w"].astype(jnp.bfloat16)
    out = (jnp.dot(h_cat.astype(jnp.bfloat16), fcw, preferred_element_type=jnp.float32)
           + params["fc_b"].reshape(1, O))
    return out.reshape(S, B, O)


# ----------------------------------------------------------------------------
# Deterministic parameter init (shapes per nn.Embedding / nn.LSTM / nn.Linear),
# stored directly in the fused layouts used by the kernels.
# ----------------------------------------------------------------------------
def init_params(key, input_dim, embed_dim, hidden_dim, output_dim, pad_idx):
    ks = jax.random.split(key, 7)
    H = hidden_dim
    scale = 1.0 / jnp.sqrt(H)

    def u(k, shape):
        return jax.random.uniform(k, shape, jnp.float32, -scale, scale)

    emb = jax.random.normal(ks[0], (input_dim, embed_dim), jnp.float32)
    emb = emb.at[pad_idx].set(0.0)                 # padding_idx row is zero

    return {
        "embedding": emb,
        # fused input->hidden weights, both directions: [fwd i|f|g|o , bwd i|f|g|o]
        "wih": u(ks[1], (embed_dim, 8 * H)),
        # folded bias b_ih + b_hh for both directions
        "b_all": u(ks[2], (1, 8 * H)) + u(ks[3], (1, 8 * H)),
        # hidden->hidden weights, gate-fused, both directions along the last dim
        "whh": u(ks[4], (H, 8 * H)),
        # fc weight (rows 0:H = fwd half, rows H:2H = bwd half) == nn.Linear weight.T
        "fc_w": u(ks[5], (2 * H, output_dim)),
        "fc_b": u(ks[6], (output_dim,)),
    }


if __name__ == "__main__":
    # Small, module-consistent shapes (4H = 128 keeps the fused gate width lane-aligned).
    INPUT_DIM = 16     # vocab size
    EMBED_DIM = 32
    HIDDEN_DIM = 32
    OUTPUT_DIM = 16
    PAD_IDX = 0
    SEQ_LEN = 8
    BATCH = 2

    key = jax.random.PRNGKey(0)
    k_par, k_txt = jax.random.split(key)
    params = init_params(k_par, INPUT_DIM, EMBED_DIM, HIDDEN_DIM, OUTPUT_DIM, PAD_IDX)

    text = jax.random.randint(k_txt, (SEQ_LEN, BATCH), 0, INPUT_DIM, jnp.int32)

    out = jax.block_until_ready(bilstm_forward(text, params))
    assert out.shape == (SEQ_LEN, BATCH, OUTPUT_DIM)

    ref = jax.block_until_ready(bilstm_forward_ref(text, params))
    assert jnp.allclose(out, ref, atol=5e-3, rtol=5e-3), "mismatch vs JAX reference"

    print("KERNEL_OK")
</pallas_src>

<mosaic_0001>
module attributes {stable_mosaic.version = 11 : i64} {
  func.func @input_proj_kernel(%arg0: i32, %arg1: memref<64x32xbf16, #tpu.memory_space<vmem>>, %arg2: memref<32x256xbf16, #tpu.memory_space<vmem>>, %arg3: memref<1x256xf32, #tpu.memory_space<vmem>>, %arg4: memref<64x256xbf16, #tpu.memory_space<vmem>>) attributes {dimension_semantics = [#tpu.dimension_semantics<parallel>], iteration_bounds = array<i64: 1>, scalar_prefetch = 0 : i64, scratch_operands = 0 : i64, tpu.core_type = #tpu.core_type<tc>, window_params = [{transform_indices = @transform_0, window_bounds = array<i64: 64, 32>}, {pipeline_mode = #tpu.pipeline_mode<synchronous>, transform_indices = @transform_1, window_bounds = array<i64: 32, 256>}, {pipeline_mode = #tpu.pipeline_mode<synchronous>, transform_indices = @transform_2, window_bounds = array<i64: 1, 256>}, {transform_indices = @transform_3, window_bounds = array<i64: 64, 256>}]} {
    %c0 = arith.constant 0 : index
    %c0_0 = arith.constant 0 : index
    %0 = vector.load %arg1[%c0, %c0_0] : memref<64x32xbf16, #tpu.memory_space<vmem>>, vector<64x32xbf16>
    %c0_1 = arith.constant 0 : index
    %c0_2 = arith.constant 0 : index
    %1 = vector.load %arg2[%c0_1, %c0_2] : memref<32x256xbf16, #tpu.memory_space<vmem>>, vector<32x256xbf16>
    %cst = arith.constant dense<0.000000e+00> : vector<64x256xf32>
    %2 = tpu.matmul %0, %1, %cst {dimension_numbers = #tpu.dot_dimension_numbers<[1], [0], [0], [1], [0, 0, 1, 1], [], []>} : vector<64x32xbf16>, vector<32x256xbf16>, vector<64x256xf32> -> vector<64x256xf32>
    %c0_3 = arith.constant 0 : index
    %c0_4 = arith.constant 0 : index
    %3 = vector.load %arg3[%c0_3, %c0_4] : memref<1x256xf32, #tpu.memory_space<vmem>>, vector<1x256xf32>
    %4 = vector.broadcast %3 : vector<1x256xf32> to vector<64x256xf32>
    %5 = arith.addf %2, %4 : vector<64x256xf32>
    %6 = arith.truncf %5 : vector<64x256xf32> to vector<64x256xbf16>
    %c0_5 = arith.constant 0 : index
    %c0_6 = arith.constant 0 : index
    %7 = vector.load %arg4[%c0_5, %c0_6] : memref<64x256xbf16, #tpu.memory_space<vmem>>, vector<64x256xbf16>
    tpu.vector_store %arg4[%c0_5, %c0_6], %6 {strides = array<i32>} : memref<64x256xbf16, #tpu.memory_space<vmem>>, vector<64x256xbf16>,
    return
  }
  func.func @transform_0(%arg0: i32) -> (i32, i32) {
    %c0_i32 = arith.constant 0 : i32
    %c0_i32_0 = arith.constant 0 : i32
    return %arg0, %c0_i32 : i32, i32
  }
  func.func @transform_1(%arg0: i32) -> (i32, i32) {
    %c0_i32 = arith.constant 0 : i32
    %c0_i32_0 = arith.constant 0 : i32
    %c0_i32_1 = arith.constant 0 : i32
    return %c0_i32, %c0_i32_0 : i32, i32
  }
  func.func @transform_2(%arg0: i32) -> (i32, i32) {
    %c0_i32 = arith.constant 0 : i32
    %c0_i32_0 = arith.constant 0 : i32
    %c0_i32_1 = arith.constant 0 : i32
    return %c0_i32, %c0_i32_0 : i32, i32
  }
  func.func @transform_3(%arg0: i32) -> (i32, i32) {
    %c0_i32 = arith.constant 0 : i32
    %c0_i32_0 = arith.constant 0 : i32
    return %arg0, %c0_i32 : i32, i32
  }
}

module attributes {stable_mosaic.version = 11 : i64} {
  func.func @bilstm_recurrence_kernel(%arg0: memref<8x8x256xbf16, #tpu.memory_space<vmem>>, %arg1: memref<32x256xbf16, #tpu.memory_space<vmem>>, %arg2: memref<64x128xbf16, #tpu.memory_space<vmem>>, %arg3: memref<1x128xf32, #tpu.memory_space<vmem>>, %arg4: memref<64x128xf32, #tpu.memory_space<vmem>>, %arg5: memref<8x32xbf16, #tpu.memory_space<vmem>>, %arg6: memref<8x32xf32, #tpu.memory_space<vmem>>, %arg7: memref<8x32xbf16, #tpu.memory_space<vmem>>, %arg8: memref<8x32xf32, #tpu.memory_space<vmem>>, %arg9: memref<64x64xf32, #tpu.memory_space<vmem>>) attributes {dimension_semantics = [], scalar_prefetch = 0 : i64, scratch_operands = 5 : i64, tpu.core_type = #tpu.core_type<tc>} {
    %cst = arith.constant 0.000000e+00 : bf16
    %0 = vector.broadcast %cst : bf16 to vector<8x32xbf16>
    %c0 = arith.constant 0 : index
    %c0_0 = arith.constant 0 : index
    %1 = vector.load %arg5[%c0, %c0_0] : memref<8x32xbf16, #tpu.memory_space<vmem>>, vector<8x32xbf16>
    tpu.vector_store %arg5[%c0, %c0_0], %0 {strides = array<i32>} : memref<8x32xbf16, #tpu.memory_space<vmem>>, vector<8x32xbf16>,
    %cst_1 = arith.constant 0.000000e+00 : f32
    %2 = vector.broadcast %cst_1 : f32 to vector<8x32xf32>
    %c0_2 = arith.constant 0 : index
    %c0_3 = arith.constant 0 : index
    %3 = vector.load %arg6[%c0_2, %c0_3] : memref<8x32xf32, #tpu.memory_space<vmem>>, vector<8x32xf32>
    tpu.vector_store %arg6[%c0_2, %c0_3], %2 {strides = array<i32>} : memref<8x32xf32, #tpu.memory_space<vmem>>, vector<8x32xf32>,
    %cst_4 = arith.constant 0.000000e+00 : bf16
    %4 = vector.broadcast %cst_4 : bf16 to vector<8x32xbf16>
    %c0_5 = arith.constant 0 : index
    %c0_6 = arith.constant 0 : index
    %5 = vector.load %arg7[%c0_5, %c0_6] : memref<8x32xbf16, #tpu.memory_space<vmem>>, vector<8x32xbf16>
    tpu.vector_store %arg7[%c0_5, %c0_6], %4 {strides = array<i32>} : memref<8x32xbf16, #tpu.memory_space<vmem>>, vector<8x32xbf16>,
    %cst_7 = arith.constant 0.000000e+00 : f32
    %6 = vector.broadcast %cst_7 : f32 to vector<8x32xf32>
    %c0_8 = arith.constant 0 : index
    %c0_9 = arith.constant 0 : index
    %7 = vector.load %arg8[%c0_8, %c0_9] : memref<8x32xf32, #tpu.memory_space<vmem>>, vector<8x32xf32>
    tpu.vector_store %arg8[%c0_8, %c0_9], %6 {strides = array<i32>} : memref<8x32xf32, #tpu.memory_space<vmem>>, vector<8x32xf32>,
    %c0_10 = arith.constant 0 : index
    %c0_11 = arith.constant 0 : index
    %8 = vector.load %arg1[%c0_10, %c0_11] : memref<32x256xbf16, #tpu.memory_space<vmem>>, vector<32x128xbf16>
    %c0_12 = arith.constant 0 : index
    %c128 = arith.constant 128 : index
    %9 = vector.load %arg1[%c0_12, %c128] : memref<32x256xbf16, #tpu.memory_space<vmem>>, vector<32x128xbf16>
    %c0_13 = arith.constant 0 : index
    %c0_14 = arith.constant 0 : index
    %c0_15 = arith.constant 0 : index
    %10 = vector.load %arg0[%c0_13, %c0_14, %c0_15] : memref<8x8x256xbf16, #tpu.memory_space<vmem>>, vector<1x8x128xbf16>
    %11 = vector.shape_cast %10 : vector<1x8x128xbf16> to vector<8x128xbf16>
    %12 = arith.extf %11 : vector<8x128xbf16> to vector<8x128xf32>
    %c0_16 = arith.constant 0 : index
    %c0_17 = arith.constant 0 : index
    %13 = vector.load %arg5[%c0_16, %c0_17] : memref<8x32xbf16, #tpu.memory_space<vmem>>, vector<8x32xbf16>
    %cst_18 = arith.constant dense<0.000000e+00> : vector<8x128xf32>
    %14 = tpu.matmul %13, %8, %cst_18 {dimension_numbers = #tpu.dot_dimension_numbers<[1], [0], [0], [1], [0, 0, 1, 1], [], []>} : vector<8x32xbf16>, vector<32x128xbf16>, vector<8x128xf32> -> vector<8x128xf32>
    %15 = arith.addf %12, %14 : vector<8x128xf32>
    %c7 = arith.constant 7 : index
    %c0_19 = arith.constant 0 : index
    %c128_20 = arith.constant 128 : index
    %16 = vector.load %arg0[%c7, %c0_19, %c128_20] : memref<8x8x256xbf16, #tpu.memory_space<vmem>>, vector<1x8x128xbf16>
    %17 = vector.shape_cast %16 : vector<1x8x128xbf16> to vector<8x128xbf16>
    %18 = arith.extf %17 : vector<8x128xbf16> to vector<8x128xf32>
    %c0_21 = arith.constant 0 : index
    %c0_22 = arith.constant 0 : index
    %19 = vector.load %arg7[%c0_21, %c0_22] : memref<8x32xbf16, #tpu.memory_space<vmem>>, vector<8x32xbf16>
    %cst_23 = arith.constant dense<0.000000e+00> : vector<8x128xf32>
    %20 = tpu.matmul %19, %9, %cst_23 {dimension_numbers = #tpu.dot_dimension_numbers<[1], [0], [0], [1], [0, 0, 1, 1], [], []>} : vector<8x32xbf16>, vector<32x128xbf16>, vector<8x128xf32> -> vector<8x128xf32>
    %21 = arith.addf %18, %20 : vector<8x128xf32>
    %c0_24 = arith.constant 0 : index
    %c0_25 = arith.constant 0 : index
    %22 = vector.load %arg6[%c0_24, %c0_25] : memref<8x32xf32, #tpu.memory_space<vmem>>, vector<8x32xf32>
    %23 = vector.extract_strided_slice %15 {offsets = [0, 0], sizes = [8, 32], strides = [1, 1]} : vector<8x128xf32> to vector<8x32xf32>
    %24 = arith.negf %23 : vector<8x32xf32>
    %25 = math.exp %24 : vector<8x32xf32>
    %cst_26 = arith.constant 1.000000e+00 : f32
    %26 = vector.broadcast %cst_26 : f32 to vector<8x32xf32>
    %27 = arith.addf %26, %25 : vector<8x32xf32>
    %28 = arith.divf %26, %27 : vector<8x32xf32>
    %29 = vector.extract_strided_slice %15 {offsets = [0, 32], sizes = [8, 32], strides = [1, 1]} : vector<8x128xf32> to vector<8x32xf32>
    %30 = arith.negf %29 : vector<8x32xf32>
    %31 = math.exp %30 : vector<8x32xf32>
    %cst_27 = arith.constant 1.000000e+00 : f32
    %32 = vector.broadcast %cst_27 : f32 to vector<8x32xf32>
    %33 = arith.addf %32, %31 : vector<8x32xf32>
    %34 = arith.divf %32, %33 : vector<8x32xf32>
    %35 = vector.extract_strided_slice %15 {offsets = [0, 64], sizes = [8, 32], strides = [1, 1]} : vector<8x128xf32> to vector<8x32xf32>
    %36 = math.tanh %35 : vector<8x32xf32>
    %37 = vector.extract_strided_slice %15 {offsets = [0, 96], sizes = [8, 32], strides = [1, 1]} : vector<8x128xf32> to vector<8x32xf32>
    %38 = arith.negf %37 : vector<8x32xf32>
    %39 = math.exp %38 : vector<8x32xf32>
    %cst_28 = arith.constant 1.000000e+00 : f32
    %40 = vector.broadcast %cst_28 : f32 to vector<8x32xf32>
    %41 = arith.addf %40, %39 : vector<8x32xf32>
    %42 = arith.divf %40, %41 : vector<8x32xf32>
    %43 = arith.mulf %34, %22 : vector<8x32xf32>
    %44 = arith.mulf %28, %36 : vector<8x32xf32>
    %45 = arith.addf %43, %44 : vector<8x32xf32>
    %46 = math.tanh %45 : vector<8x32xf32>
    %47 = arith.mulf %42, %46 : vector<8x32xf32>
    %c0_29 = arith.constant 0 : index
    %c0_30 = arith.constant 0 : index
    %48 = vector.load %arg8[%c0_29, %c0_30] : memref<8x32xf32, #tpu.memory_space<vmem>>, vector<8x32xf32>
    %49 = vector.extract_strided_slice %21 {offsets = [0, 0], sizes = [8, 32], strides = [1, 1]} : vector<8x128xf32> to vector<8x32xf32>
    %50 = arith.negf %49 : vector<8x32xf32>
    %51 = math.exp %50 : vector<8x32xf32>
    %cst_31 = arith.constant 1.000000e+00 : f32
    %52 = vector.broadcast %cst_31 : f32 to vector<8x32xf32>
    %53 = arith.addf %52, %51 : vector<8x32xf32>
    %54 = arith.divf %52, %53 : vector<8x32xf32>
    %55 = vector.extract_strided_slice %21 {offsets = [0, 32], sizes = [8, 32], strides = [1, 1]} : vector<8x128xf32> to vector<8x32xf32>
    %56 = arith.negf %55 : vector<8x32xf32>
    %57 = math.exp %56 : vector<8x32xf32>
    %cst_32 = arith.constant 1.000000e+00 : f32
    %58 = vector.broadcast %cst_32 : f32 to vector<8x32xf32>
    %59 = arith.addf %58, %57 : vector<8x32xf32>
    %60 = arith.divf %58, %59 : vector<8x32xf32>
    %61 = vector.extract_strided_slice %21 {offsets = [0, 64], sizes = [8, 32], strides = [1, 1]} : vector<8x128xf32> to vector<8x32xf32>
    %62 = math.tanh %61 : vector<8x32xf32>
    %63 = vector.extract_strided_slice %21 {offsets = [0, 96], sizes = [8, 32], strides = [1, 1]} : vector<8x128xf32> to vector<8x32xf32>
    %64 = arith.negf %63 : vector<8x32xf32>
    %65 = math.exp %64 : vector<8x32xf32>
    %cst_33 = arith.constant 1.000000e+00 : f32
    %66 = vector.broadcast %cst_33 : f32 to vector<8x32xf32>
    %67 = arith.addf %66, %65 : vector<8x32xf32>
    %68 = arith.divf %66, %67 : vector<8x32xf32>
    %69 = arith.mulf %60, %48 : vector<8x32xf32>
    %70 = arith.mulf %54, %62 : vector<8x32xf32>
    %71 = arith.addf %69, %70 : vector<8x32xf32>
    %72 = math.tanh %71 : vector<8x32xf32>
    %73 = arith.mulf %68, %72 : vector<8x32xf32>
    %74 = arith.truncf %47 : vector<8x32xf32> to vector<8x32xbf16>
    %c0_34 = arith.constant 0 : index
    %c0_35 = arith.constant 0 : index
    %75 = vector.load %arg5[%c0_34, %c0_35] : memref<8x32xbf16, #tpu.memory_space<vmem>>, vector<8x32xbf16>
    tpu.vector_store %arg5[%c0_34, %c0_35], %74 {strides = array<i32>} : memref<8x32xbf16, #tpu.memory_space<vmem>>, vector<8x32xbf16>,
    %76 = arith.truncf %73 : vector<8x32xf32> to vector<8x32xbf16>
    %c0_36 = arith.constant 0 : index
    %c0_37 = arith.constant 0 : index
    %77 = vector.load %arg7[%c0_36, %c0_37] : memref<8x32xbf16, #tpu.memory_space<vmem>>, vector<8x32xbf16>
    tpu.vector_store %arg7[%c0_36, %c0_37], %76 {strides = array<i32>} : memref<8x32xbf16, #tpu.memory_space<vmem>>, vector<8x32xbf16>,
    %c0_38 = arith.constant 0 : index
    %c0_39 = arith.constant 0 : index
    %78 = vector.load %arg6[%c0_38, %c0_39] : memref<8x32xf32, #tpu.memory_space<vmem>>, vector<8x32xf32>
    tpu.vector_store %arg6[%c0_38, %c0_39], %45 {strides = array<i32>} : memref<8x32xf32, #tpu.memory_space<vmem>>, vector<8x32xf32>,
    %c0_40 = arith.constant 0 : index
    %c0_41 = arith.constant 0 : index
    %79 = vector.load %arg8[%c0_40, %c0_41] : memref<8x32xf32, #tpu.memory_space<vmem>>, vector<8x32xf32>
    tpu.vector_store %arg8[%c0_40, %c0_41], %71 {strides = array<i32>} : memref<8x32xf32, #tpu.memory_space<vmem>>, vector<8x32xf32>,
    %c0_42 = arith.constant 0 : index
    %c0_43 = arith.constant 0 : index
    %80 = vector.load %arg9[%c0_42, %c0_43] : memref<64x64xf32, #tpu.memory_space<vmem>>, vector<8x32xf32>
    tpu.vector_store %arg9[%c0_42, %c0_43], %47 {strides = array<i32>} : memref<64x64xf32, #tpu.memory_space<vmem>>, vector<8x32xf32>,
    %c56 = arith.constant 56 : index
    %c32 = arith.constant 32 : index
    %81 = vector.load %arg9[%c56, %c32] : memref<64x64xf32, #tpu.memory_space<vmem>>, vector<8x32xf32>
    tpu.vector_store %arg9[%c56, %c32], %73 {strides = array<i32>} : memref<64x64xf32, #tpu.memory_space<vmem>>, vector<8x32xf32>,
    %c1 = arith.constant 1 : index
    %c0_44 = arith.constant 0 : index
    %c0_45 = arith.constant 0 : index
    %82 = vector.load %arg0[%c1, %c0_44, %c0_45] : memref<8x8x256xbf16, #tpu.memory_space<vmem>>, vector<1x8x128xbf16>
    %83 = vector.shape_cast %82 : vector<1x8x128xbf16> to vector<8x128xbf16>
    %84 = arith.extf %83 : vector<8x128xbf16> to vector<8x128xf32>
    %c0_46 = arith.constant 0 : index
    %c0_47 = arith.constant 0 : index
    %85 = vector.load %arg5[%c0_46, %c0_47] : memref<8x32xbf16, #tpu.memory_space<vmem>>, vector<8x32xbf16>
    %cst_48 = arith.constant dense<0.000000e+00> : vector<8x128xf32>
    %86 = tpu.matmul %85, %8, %cst_48 {dimension_numbers = #tpu.dot_dimension_numbers<[1], [0], [0], [1], [0, 0, 1, 1], [], []>} : vector<8x32xbf16>, vector<32x128xbf16>, vector<8x128xf32> -> vector<8x128xf32>
    %87 = arith.addf %84, %86 : vector<8x128xf32>
    %c6 = arith.constant 6 : index
    %c0_49 = arith.constant 0 : index
    %c128_50 = arith.constant 128 : index
    %88 = vector.load %arg0[%c6, %c0_49, %c128_50] : memref<8x8x256xbf16, #tpu.memory_space<vmem>>, vector<1x8x128xbf16>
    %89 = vector.shape_cast %88 : vector<1x8x128xbf16> to vector<8x128xbf16>
    %90 = arith.extf %89 : vector<8x128xbf16> to vector<8x128xf32>
    %c0_51 = arith.constant 0 : index
    %c0_52 = arith.constant 0 : index
    %91 = vector.load %arg7[%c0_51, %c0_52] : memref<8x32xbf16, #tpu.memory_space<vmem>>, vector<8x32xbf16>
    %cst_53 = arith.constant dense<0.000000e+00> : vector<8x128xf32>
    %92 = tpu.matmul %91, %9, %cst_53 {dimension_numbers = #tpu.dot_dimension_numbers<[1], [0], [0], [1], [0, 0, 1, 1], [], []>} : vector<8x32xbf16>, vector<32x128xbf16>, vector<8x128xf32> -> vector<8x128xf32>
    %93 = arith.addf %90, %92 : vector<8x128xf32>
    %c0_54 = arith.constant 0 : index
    %c0_55 = arith.constant 0 : index
    %94 = vector.load %arg6[%c0_54, %c0_55] : memref<8x32xf32, #tpu.memory_space<vmem>>, vector<8x32xf32>
    %95 = vector.extract_strided_slice %87 {offsets = [0, 0], sizes = [8, 32], strides = [1, 1]} : vector<8x128xf32> to vector<8x32xf32>
    %96 = arith.negf %95 : vector<8x32xf32>
    %97 = math.exp %96 : vector<8x32xf32>
    %cst_56 = arith.constant 1.000000e+00 : f32
    %98 = vector.broadcast %cst_56 : f32 to vector<8x32xf32>
    %99 = arith.addf %98, %97 : vector<8x32xf32>
    %100 = arith.divf %98, %99 : vector<8x32xf32>
    %101 = vector.extract_strided_slice %87 {offsets = [0, 32], sizes = [8, 32], strides = [1, 1]} : vector<8x128xf32> to vector<8x32xf32>
    %102 = arith.negf %101 : vector<8x32xf32>
    %103 = math.exp %102 : vector<8x32xf32>
    %cst_57 = arith.constant 1.000000e+00 : f32
    %104 = vector.broadcast %cst_57 : f32 to vector<8x32xf32>
    %105 = arith.addf %104, %103 : vector<8x32xf32>
    %106 = arith.divf %104, %105 : vector<8x32xf32>
    %107 = vector.extract_strided_slice %87 {offsets = [0, 64], sizes = [8, 32], strides = [1, 1]} : vector<8x128xf32> to vector<8x32xf32>
    %108 = math.tanh %107 : vector<8x32xf32>
    %109 = vector.extract_strided_slice %87 {offsets = [0, 96], sizes = [8, 32], strides = [1, 1]} : vector<8x128xf32> to vector<8x32xf32>
    %110 = arith.negf %109 : vector<8x32xf32>
    %111 = math.exp %110 : vector<8x32xf32>
    %cst_58 = arith.constant 1.000000e+00 : f32
    %112 = vector.broadcast %cst_58 : f32 to vector<8x32xf32>
    %113 = arith.addf %112, %111 : vector<8x32xf32>
    %114 = arith.divf %112, %113 : vector<8x32xf32>
    %115 = arith.mulf %106, %94 : vector<8x32xf32>
    %116 = arith.mulf %100, %108 : vector<8x32xf32>
    %117 = arith.addf %115, %116 : vector<8x32xf32>
    %118 = math.tanh %117 : vector<8x32xf32>
    %119 = arith.mulf %114, %118 : vector<8x32xf32>
    %c0_59 = arith.constant 0 : index
    %c0_60 = arith.constant 0 : index
    %120 = vector.load %arg8[%c0_59, %c0_60] : memref<8x32xf32, #tpu.memory_space<vmem>>, vector<8x32xf32>
    %121 = vector.extract_strided_slice %93 {offsets = [0, 0], sizes = [8, 32], strides = [1, 1]} : vector<8x128xf32> to vector<8x32xf32>
    %122 = arith.negf %121 : vector<8x32xf32>
    %123 = math.exp %122 : vector<8x32xf32>
    %cst_61 = arith.constant 1.000000e+00 : f32
    %124 = vector.broadcast %cst_61 : f32 to vector<8x32xf32>
    %125 = arith.addf %124, %123 : vector<8x32xf32>
    %126 = arith.divf %124, %125 : vector<8x32xf32>
    %127 = vector.extract_strided_slice %93 {offsets = [0, 32], sizes = [8, 32], strides = [1, 1]} : vector<8x128xf32> to vector<8x32xf32>
    %128 = arith.negf %127 : vector<8x32xf32>
    %129 = math.exp %128 : vector<8x32xf32>
    %cst_62 = arith.constant 1.000000e+00 : f32
    %130 = vector.broadcast %cst_62 : f32 to vector<8x32xf32>
    %131 = arith.addf %130, %129 : vector<8x32xf32>
    %132 = arith.divf %130, %131 : vector<8x32xf32>
    %133 = vector.extract_strided_slice %93 {offsets = [0, 64], sizes = [8, 32], strides = [1, 1]} : vector<8x128xf32> to vector<8x32xf32>
    %134 = math.tanh %133 : vector<8x32xf32>
    %135 = vector.extract_strided_slice %93 {offsets = [0, 96], sizes = [8, 32], strides = [1, 1]} : vector<8x128xf32> to vector<8x32xf32>
    %136 = arith.negf %135 : vector<8x32xf32>
    %137 = math.exp %136 : vector<8x32xf32>
    %cst_63 = arith.constant 1.000000e+00 : f32
    %138 = vector.broadcast %cst_63 : f32 to vector<8x32xf32>
    %139 = arith.addf %138, %137 : vector<8x32xf32>
    %140 = arith.divf %138, %139 : vector<8x32xf32>
    %141 = arith.mulf %132, %120 : vector<8x32xf32>
    %142 = arith.mulf %126, %134 : vector<8x32xf32>
    %143 = arith.addf %141, %142 : vector<8x32xf32>
    %144 = math.tanh %143 : vector<8x32xf32>
    %145 = arith.mulf %140, %144 : vector<8x32xf32>
    %146 = arith.truncf %119 : vector<8x32xf32> to vector<8x32xbf16>
    %c0_64 = arith.constant 0 : index
    %c0_65 = arith.constant 0 : index
    %147 = vector.load %arg5[%c0_64, %c0_65] : memref<8x32xbf16, #tpu.memory_space<vmem>>, vector<8x32xbf16>
    tpu.vector_store %arg5[%c0_64, %c0_65], %146 {strides = array<i32>} : memref<8x32xbf16, #tpu.memory_space<vmem>>, vector<8x32xbf16>,
    %148 = arith.truncf %145 : vector<8x32xf32> to vector<8x32xbf16>
    %c0_66 = arith.constant 0 : index
    %c0_67 = arith.constant 0 : index
    %149 = vector.load %arg7[%c0_66, %c0_67] : memref<8x32xbf16, #tpu.memory_space<vmem>>, vector<8x32xbf16>
    tpu.vector_store %arg7[%c0_66, %c0_67], %148 {strides = array<i32>} : memref<8x32xbf16, #tpu.memory_space<vmem>>, vector<8x32xbf16>,
    %c0_68 = arith.constant 0 : index
    %c0_69 = arith.constant 0 : index
    %150 = vector.load %arg6[%c0_68, %c0_69] : memref<8x32xf32, #tpu.memory_space<vmem>>, vector<8x32xf32>
    tpu.vector_store %arg6[%c0_68, %c0_69], %117 {strides = array<i32>} : memref<8x32xf32, #tpu.memory_space<vmem>>, vector<8x32xf32>,
    %c0_70 = arith.constant 0 : index
    %c0_71 = arith.constant 0 : index
    %151 = vector.load %arg8[%c0_70, %c0_71] : memref<8x32xf32, #tpu.memory_space<vmem>>, vector<8x32xf32>
    tpu.vector_store %arg8[%c0_70, %c0_71], %143 {strides = array<i32>} : memref<8x32xf32, #tpu.memory_space<vmem>>, vector<8x32xf32>,
    %c8 = arith.constant 8 : index
    %c0_72 = arith.constant 0 : index
    %152 = vector.load %arg9[%c8, %c0_72] : memref<64x64xf32, #tpu.memory_space<vmem>>, vector<8x32xf32>
    tpu.vector_store %arg9[%c8, %c0_72], %119 {strides = array<i32>} : memref<64x64xf32, #tpu.memory_space<vmem>>, vector<8x32xf32>,
    %c48 = arith.constant 48 : index
    %c32_73 = arith.constant 32 : index
    %153 = vector.load %arg9[%c48, %c32_73] : memref<64x64xf32, #tpu.memory_space<vmem>>, vector<8x32xf32>
    tpu.vector_store %arg9[%c48, %c32_73], %145 {strides = array<i32>} : memref<64x64xf32, #tpu.memory_space<vmem>>, vector<8x32xf32>,
    %c2 = arith.constant 2 : index
    %c0_74 = arith.constant 0 : index
    %c0_75 = arith.constant 0 : index
    %154 = vector.load %arg0[%c2, %c0_74, %c0_75] : memref<8x8x256xbf16, #tpu.memory_space<vmem>>, vector<1x8x128xbf16>
    %155 = vector.shape_cast %154 : vector<1x8x128xbf16> to vector<8x128xbf16>
    %156 = arith.extf %155 : vector<8x128xbf16> to vector<8x128xf32>
    %c0_76 = arith.constant 0 : index
    %c0_77 = arith.constant 0 : index
    %157 = vector.load %arg5[%c0_76, %c0_77] : memref<8x32xbf16, #tpu.memory_space<vmem>>, vector<8x32xbf16>
    %cst_78 = arith.constant dense<0.000000e+00> : vector<8x128xf32>
    %158 = tpu.matmul %157, %8, %cst_78 {dimension_numbers = #tpu.dot_dimension_numbers<[1], [0], [0], [1], [0, 0, 1, 1], [], []>} : vector<8x32xbf16>, vector<32x128xbf16>, vector<8x128xf32> -> vector<8x128xf32>
    %159 = arith.addf %156, %158 : vector<8x128xf32>
    %c5 = arith.constant 5 : index
    %c0_79 = arith.constant 0 : index
    %c128_80 = arith.constant 128 : index
    %160 = vector.load %arg0[%c5, %c0_79, %c128_80] : memref<8x8x256xbf16, #tpu.memory_space<vmem>>, vector<1x8x128xbf16>
    %161 = vector.shape_cast %160 : vector<1x8x128xbf16> to vector<8x128xbf16>
    %162 = arith.extf %161 : vector<8x128xbf16> to vector<8x128xf32>
    %c0_81 = arith.constant 0 : index
    %c0_82 = arith.constant 0 : index
    %163 = vector.load %arg7[%c0_81, %c0_82] : memref<8x32xbf16, #tpu.memory_space<vmem>>, vector<8x32xbf16>
    %cst_83 = arith.constant dense<0.000000e+00> : vector<8x128xf32>
    %164 = tpu.matmul %163, %9, %cst_83 {dimension_numbers = #tpu.dot_dimension_numbers<[1], [0], [0], [1], [0, 0, 1, 1], [], []>} : vector<8x32xbf16>, vector<32x128xbf16>, vector<8x128xf32> -> vector<8x128xf32>
    %165 = arith.addf %162, %164 : vector<8x128xf32>
    %c0_84 = arith.constant 0 : index
    %c0_85 = arith.constant 0 : index
    %166 = vector.load %arg6[%c0_84, %c0_85] : memref<8x32xf32, #tpu.memory_space<vmem>>, vector<8x32xf32>
    %167 = vector.extract_strided_slice %159 {offsets = [0, 0], sizes = [8, 32], strides = [1, 1]} : vector<8x128xf32> to vector<8x32xf32>
    %168 = arith.negf %167 : vector<8x32xf32>
    %169 = math.exp %168 : vector<8x32xf32>
    %cst_86 = arith.constant 1.000000e+00 : f32
    %170 = vector.broadcast %cst_86 : f32 to vector<8x32xf32>
    %171 = arith.addf %170, %169 : vector<8x32xf32>
    %172 = arith.divf %170, %171 : vector<8x32xf32>
    %173 = vector.extract_strided_slice %159 {offsets = [0, 32], sizes = [8, 32], strides = [1, 1]} : vector<8x128xf32> to vector<8x32xf32>
    %174 = arith.negf %173 : vector<8x32xf32>
    %175 = math.exp %174 : vector<8x32xf32>
    %cst_87 = arith.constant 1.000000e+00 : f32
    %176 = vector.broadcast %cst_87 : f32 to vector<8x32xf32>
    %177 = arith.addf %176, %175 : vector<8x32xf32>
    %178 = arith.divf %176, %177 : vector<8x32xf32>
    %179 = vector.extract_strided_slice %159 {offsets = [0, 64], sizes = [8, 32], strides = [1, 1]} : vector<8x128xf32> to vector<8x32xf32>
    %180 = math.tanh %179 : vector<8x32xf32>
    %181 = vector.extract_strided_slice %159 {offsets = [0, 96], sizes = [8, 32], strides = [1, 1]} : vector<8x128xf32> to vector<8x32xf32>
    %182 = arith.negf %181 : vector<8x32xf32>
    %183 = math.exp %182 : vector<8x32xf32>
    %cst_88 = arith.constant 1.000000e+00 : f32
    %184 = vector.broadcast %cst_88 : f32 to vector<8x32xf32>
    %185 = arith.addf %184, %183 : vector<8x32xf32>
    %186 = arith.divf %184, %185 : vector<8x32xf32>
    %187 = arith.mulf %178, %166 : vector<8x32xf32>
    %188 = arith.mulf %172, %180 : vector<8x32xf32>
    %189 = arith.addf %187, %188 : vector<8x32xf32>
    %190 = math.tanh %189 : vector<8x32xf32>
    %191 = arith.mulf %186, %190 : vector<8x32xf32>
    %c0_89 = arith.constant 0 : index
    %c0_90 = arith.constant 0 : index
    %192 = vector.load %arg8[%c0_89, %c0_90] : memref<8x32xf32, #tpu.memory_space<vmem>>, vector<8x32xf32>
    %193 = vector.extract_strided_slice %165 {offsets = [0, 0], sizes = [8, 32], strides = [1, 1]} : vector<8x128xf32> to vector<8x32xf32>
    %194 = arith.negf %193 : vector<8x32xf32>
    %195 = math.exp %194 : vector<8x32xf32>
    %cst_91 = arith.constant 1.000000e+00 : f32
    %196 = vector.broadcast %cst_91 : f32 to vector<8x32xf32>
    %197 = arith.addf %196, %195 : vector<8x32xf32>
    %198 = arith.divf %196, %197 : vector<8x32xf32>
    %199 = vector.extract_strided_slice %165 {offsets = [0, 32], sizes = [8, 32], strides = [1, 1]} : vector<8x128xf32> to vector<8x32xf32>
    %200 = arith.negf %199 : vector<8x32xf32>
    %201 = math.exp %200 : vector<8x32xf32>
    %cst_92 = arith.constant 1.000000e+00 : f32
    %202 = vector.broadcast %cst_92 : f32 to vector<8x32xf32>
    %203 = arith.addf %202, %201 : vector<8x32xf32>
    %204 = arith.divf %202, %203 : vector<8x32xf32>
    %205 = vector.extract_strided_slice %165 {offsets = [0, 64], sizes = [8, 32], strides = [1, 1]} : vector<8x128xf32> to vector<8x32xf32>
    %206 = math.tanh %205 : vector<8x32xf32>
    %207 = vector.extract_strided_slice %165 {offsets = [0, 96], sizes = [8, 32], strides = [1, 1]} : vector<8x128xf32> to vector<8x32xf32>
    %208 = arith.negf %207 : vector<8x32xf32>
    %209 = math.exp %208 : vector<8x32xf32>
    %cst_93 = arith.constant 1.000000e+00 : f32
    %210 = vector.broadcast %cst_93 : f32 to vector<8x32xf32>
    %211 = arith.addf %210, %209 : vector<8x32xf32>
    %212 = arith.divf %210, %211 : vector<8x32xf32>
    %213 = arith.mulf %204, %192 : vector<8x32xf32>
    %214 = arith.mulf %198, %206 : vector<8x32xf32>
    %215 = arith.addf %213, %214 : vector<8x32xf32>
    %216 = math.tanh %215 : vector<8x32xf32>
    %217 = arith.mulf %212, %216 : vector<8x32xf32>
    %218 = arith.truncf %191 : vector<8x32xf32> to vector<8x32xbf16>
    %c0_94 = arith.constant 0 : index
    %c0_95 = arith.constant 0 : index
    %219 = vector.load %arg5[%c0_94, %c0_95] : memref<8x32xbf16, #tpu.memory_space<vmem>>, vector<8x32xbf16>
    tpu.vector_store %arg5[%c0_94, %c0_95], %218 {strides = array<i32>} : memref<8x32xbf16, #tpu.memory_space<vmem>>, vector<8x32xbf16>,
    %220 = arith.truncf %217 : vector<8x32xf32> to vector<8x32xbf16>
    %c0_96 = arith.constant 0 : index
    %c0_97 = arith.constant 0 : index
    %221 = vector.load %arg7[%c0_96, %c0_97] : memref<8x32xbf16, #tpu.memory_space<vmem>>, vector<8x32xbf16>
    tpu.vector_store %arg7[%c0_96, %c0_97], %220 {strides = array<i32>} : memref<8x32xbf16, #tpu.memory_space<vmem>>, vector<8x32xbf16>,
    %c0_98 = arith.constant 0 : index
    %c0_99 = arith.constant 0 : index
    %222 = vector.load %arg6[%c0_98, %c0_99] : memref<8x32xf32, #tpu.memory_space<vmem>>, vector<8x32xf32>
    tpu.vector_store %arg6[%c0_98, %c0_99], %189 {strides = array<i32>} : memref<8x32xf32, #tpu.memory_space<vmem>>, vector<8x32xf32>,
    %c0_100 = arith.constant 0 : index
    %c0_101 = arith.constant 0 : index
    %223 = vector.load %arg8[%c0_100, %c0_101] : memref<8x32xf32, #tpu.memory_space<vmem>>, vector<8x32xf32>
    tpu.vector_store %arg8[%c0_100, %c0_101], %215 {strides = array<i32>} : memref<8x32xf32, #tpu.memory_space<vmem>>, vector<8x32xf32>,
    %c16 = arith.constant 16 : index
    %c0_102 = arith.constant 0 : index
    %224 = vector.load %arg9[%c16, %c0_102] : memref<64x64xf32, #tpu.memory_space<vmem>>, vector<8x32xf32>
    tpu.vector_store %arg9[%c16, %c0_102], %191 {strides = array<i32>} : memref<64x64xf32, #tpu.memory_space<vmem>>, vector<8x32xf32>,
    %c40 = arith.constant 40 : index
    %c32_103 = arith.constant 32 : index
    %225 = vector.load %arg9[%c40, %c32_103] : memref<64x64xf32, #tpu.memory_space<vmem>>, vector<8x32xf32>
    tpu.vector_store %arg9[%c40, %c32_103], %217 {strides = array<i32>} : memref<64x64xf32, #tpu.memory_space<vmem>>, vector<8x32xf32>,
    %c3 = arith.constant 3 : index
    %c0_104 = arith.constant 0 : index
    %c0_105 = arith.constant 0 : index
    %226 = vector.load %arg0[%c3, %c0_104, %c0_105] : memref<8x8x256xbf16, #tpu.memory_space<vmem>>, vector<1x8x128xbf16>
    %227 = vector.shape_cast %226 : vector<1x8x128xbf16> to vector<8x128xbf16>
    %228 = arith.extf %227 : vector<8x128xbf16> to vector<8x128xf32>
    %c0_106 = arith.constant 0 : index
    %c0_107 = arith.constant 0 : index
    %229 = vector.load %arg5[%c0_106, %c0_107] : memref<8x32xbf16, #tpu.memory_space<vmem>>, vector<8x32xbf16>
    %cst_108 = arith.constant dense<0.000000e+00> : vector<8x128xf32>
    %230 = tpu.matmul %229, %8, %cst_108 {dimension_numbers = #tpu.dot_dimension_numbers<[1], [0], [0], [1], [0, 0, 1, 1], [], []>} : vector<8x32xbf16>, vector<32x128xbf16>, vector<8x128xf32> -> vector<8x128xf32>
    %231 = arith.addf %228, %230 : vector<8x128xf32>
    %c4 = arith.constant 4 : index
    %c0_109 = arith.constant 0 : index
    %c128_110 = arith.constant 128 : index
    %232 = vector.load %arg0[%c4, %c0_109, %c128_110] : memref<8x8x256xbf16, #tpu.memory_space<vmem>>, vector<1x8x128xbf16>
    %233 = vector.shape_cast %232 : vector<1x8x128xbf16> to vector<8x128xbf16>
    %234 = arith.extf %233 : vector<8x128xbf16> to vector<8x128xf32>
    %c0_111 = arith.constant 0 : index
    %c0_112 = arith.constant 0 : index
    %235 = vector.load %arg7[%c0_111, %c0_112] : memref<8x32xbf16, #tpu.memory_space<vmem>>, vector<8x32xbf16>
    %cst_113 = arith.constant dense<0.000000e+00> : vector<8x128xf32>
    %236 = tpu.matmul %235, %9, %cst_113 {dimension_numbers = #tpu.dot_dimension_numbers<[1], [0], [0], [1], [0, 0, 1, 1], [], []>} : vector<8x32xbf16>, vector<32x128xbf16>, vector<8x128xf32> -> vector<8x128xf32>
    %237 = arith.addf %234, %236 : vector<8x128xf32>
    %c0_114 = arith.constant 0 : index
    %c0_115 = arith.constant 0 : index
    %238 = vector.load %arg6[%c0_114, %c0_115] : memref<8x32xf32, #tpu.memory_space<vmem>>, vector<8x32xf32>
    %239 = vector.extract_strided_slice %231 {offsets = [0, 0], sizes = [8, 32], strides = [1, 1]} : vector<8x128xf32> to vector<8x32xf32>
    %240 = arith.negf %239 : vector<8x32xf32>
    %241 = math.exp %240 : vector<8x32xf32>
    %cst_116 = arith.constant 1.000000e+00 : f32
    %242 = vector.broadcast %cst_116 : f32 to vector<8x32xf32>
    %243 = arith.addf %242, %241 : vector<8x32xf32>
    %244 = arith.divf %242, %243 : vector<8x32xf32>
    %245 = vector.extract_strided_slice %231 {offsets = [0, 32], sizes = [8, 32], strides = [1, 1]} : vector<8x128xf32> to vector<8x32xf32>
    %246 = arith.negf %245 : vector<8x32xf32>
    %247 = math.exp %246 : vector<8x32xf32>
    %cst_117 = arith.constant 1.000000e+00 : f32
    %248 = vector.broadcast %cst_117 : f32 to vector<8x32xf32>
    %249 = arith.addf %248, %247 : vector<8x32xf32>
    %250 = arith.divf %248, %249 : vector<8x32xf32>
    %251 = vector.extract_strided_slice %231 {offsets = [0, 64], sizes = [8, 32], strides = [1, 1]} : vector<8x128xf32> to vector<8x32xf32>
    %252 = math.tanh %251 : vector<8x32xf32>
    %253 = vector.extract_strided_slice %231 {offsets = [0, 96], sizes = [8, 32], strides = [1, 1]} : vector<8x128xf32> to vector<8x32xf32>
    %254 = arith.negf %253 : vector<8x32xf32>
    %255 = math.exp %254 : vector<8x32xf32>
    %cst_118 = arith.constant 1.000000e+00 : f32
    %256 = vector.broadcast %cst_118 : f32 to vector<8x32xf32>
    %257 = arith.addf %256, %255 : vector<8x32xf32>
    %258 = arith.divf %256, %257 : vector<8x32xf32>
    %259 = arith.mulf %250, %238 : vector<8x32xf32>
    %260 = arith.mulf %244, %252 : vector<8x32xf32>
    %261 = arith.addf %259, %260 : vector<8x32xf32>
    %262 = math.tanh %261 : vector<8x32xf32>
    %263 = arith.mulf %258, %262 : vector<8x32xf32>
    %c0_119 = arith.constant 0 : index
    %c0_120 = arith.constant 0 : index
    %264 = vector.load %arg8[%c0_119, %c0_120] : memref<8x32xf32, #tpu.memory_space<vmem>>, vector<8x32xf32>
    %265 = vector.extract_strided_slice %237 {offsets = [0, 0], sizes = [8, 32], strides = [1, 1]} : vector<8x128xf32> to vector<8x32xf32>
    %266 = arith.negf %265 : vector<8x32xf32>
    %267 = math.exp %266 : vector<8x32xf32>
    %cst_121 = arith.constant 1.000000e+00 : f32
    %268 = vector.broadcast %cst_121 : f32 to vector<8x32xf32>
    %269 = arith.addf %268, %267 : vector<8x32xf32>
    %270 = arith.divf %268, %269 : vector<8x32xf32>
    %271 = vector.extract_strided_slice %237 {offsets = [0, 32], sizes = [8, 32], strides = [1, 1]} : vector<8x128xf32> to vector<8x32xf32>
    %272 = arith.negf %271 : vector<8x32xf32>
    %273 = math.exp %272 : vector<8x32xf32>
    %cst_122 = arith.constant 1.000000e+00 : f32
    %274 = vector.broadcast %cst_122 : f32 to vector<8x32xf32>
    %275 = arith.addf %274, %273 : vector<8x32xf32>
    %276 = arith.divf %274, %275 : vector<8x32xf32>
    %277 = vector.extract_strided_slice %237 {offsets = [0, 64], sizes = [8, 32], strides = [1, 1]} : vector<8x128xf32> to vector<8x32xf32>
    %278 = math.tanh %277 : vector<8x32xf32>
    %279 = vector.extract_strided_slice %237 {offsets = [0, 96], sizes = [8, 32], strides = [1, 1]} : vector<8x128xf32> to vector<8x32xf32>
    %280 = arith.negf %279 : vector<8x32xf32>
    %281 = math.exp %280 : vector<8x32xf32>
    %cst_123 = arith.constant 1.000000e+00 : f32
    %282 = vector.broadcast %cst_123 : f32 to vector<8x32xf32>
    %283 = arith.addf %282, %281 : vector<8x32xf32>
    %284 = arith.divf %282, %283 : vector<8x32xf32>
    %285 = arith.mulf %276, %264 : vector<8x32xf32>
    %286 = arith.mulf %270, %278 : vector<8x32xf32>
    %287 = arith.addf %285, %286 : vector<8x32xf32>
    %288 = math.tanh %287 : vector<8x32xf32>
    %289 = arith.mulf %284, %288 : vector<8x32xf32>
    %290 = arith.truncf %263 : vector<8x32xf32> to vector<8x32xbf16>
    %c0_124 = arith.constant 0 : index
    %c0_125 = arith.constant 0 : index
    %291 = vector.load %arg5[%c0_124, %c0_125] : memref<8x32xbf16, #tpu.memory_space<vmem>>, vector<8x32xbf16>
    tpu.vector_store %arg5[%c0_124, %c0_125], %290 {strides = array<i32>} : memref<8x32xbf16, #tpu.memory_space<vmem>>, vector<8x32xbf16>,
    %292 = arith.truncf %289 : vector<8x32xf32> to vector<8x32xbf16>
    %c0_126 = arith.constant 0 : index
    %c0_127 = arith.constant 0 : index
    %293 = vector.load %arg7[%c0_126, %c0_127] : memref<8x32xbf16, #tpu.memory_space<vmem>>, vector<8x32xbf16>
    tpu.vector_store %arg7[%c0_126, %c0_127], %292 {strides = array<i32>} : memref<8x32xbf16, #tpu.memory_space<vmem>>, vector<8x32xbf16>,
    %c0_128 = arith.constant 0 : index
    %c0_129 = arith.constant 0 : index
    %294 = vector.load %arg6[%c0_128, %c0_129] : memref<8x32xf32, #tpu.memory_space<vmem>>, vector<8x32xf32>
    tpu.vector_store %arg6[%c0_128, %c0_129], %261 {strides = array<i32>} : memref<8x32xf32, #tpu.memory_space<vmem>>, vector<8x32xf32>,
    %c0_130 = arith.constant 0 : index
    %c0_131 = arith.constant 0 : index
    %295 = vector.load %arg8[%c0_130, %c0_131] : memref<8x32xf32, #tpu.memory_space<vmem>>, vector<8x32xf32>
    tpu.vector_store %arg8[%c0_130, %c0_131], %287 {strides = array<i32>} : memref<8x32xf32, #tpu.memory_space<vmem>>, vector<8x32xf32>,
    %c24 = arith.constant 24 : index
    %c0_132 = arith.constant 0 : index
    %296 = vector.load %arg9[%c24, %c0_132] : memref<64x64xf32, #tpu.memory_space<vmem>>, vector<8x32xf32>
    tpu.vector_store %arg9[%c24, %c0_132], %263 {strides = array<i32>} : memref<64x64xf32, #tpu.memory_space<vmem>>, vector<8x32xf32>,
    %c32_133 = arith.constant 32 : index
    %c32_134 = arith.constant 32 : index
    %297 = vector.load %arg9[%c32_133, %c32_134] : memref<64x64xf32, #tpu.memory_space<vmem>>, vector<8x32xf32>
    tpu.vector_store %arg9[%c32_133, %c32_134], %289 {strides = array<i32>} : memref<64x64xf32, #tpu.memory_space<vmem>>, vector<8x32xf32>,
    %c4_135 = arith.constant 4 : index
    %c0_136 = arith.constant 0 : index
    %c0_137 = arith.constant 0 : index
    %298 = vector.load %arg0[%c4_135, %c0_136, %c0_137] : memref<8x8x256xbf16, #tpu.memory_space<vmem>>, vector<1x8x128xbf16>
    %299 = vector.shape_cast %298 : vector<1x8x128xbf16> to vector<8x128xbf16>
    %300 = arith.extf %299 : vector<8x128xbf16> to vector<8x128xf32>
    %c0_138 = arith.constant 0 : index
    %c0_139 = arith.constant 0 : index
    %301 = vector.load %arg5[%c0_138, %c0_139] : memref<8x32xbf16, #tpu.memory_space<vmem>>, vector<8x32xbf16>
    %cst_140 = arith.constant dense<0.000000e+00> : vector<8x128xf32>
    %302 = tpu.matmul %301, %8, %cst_140 {dimension_numbers = #tpu.dot_dimension_numbers<[1], [0], [0], [1], [0, 0, 1, 1], [], []>} : vector<8x32xbf16>, vector<32x128xbf16>, vector<8x128xf32> -> vector<8x128xf32>
    %303 = arith.addf %300, %302 : vector<8x128xf32>
    %c3_141 = arith.constant 3 : index
    %c0_142 = arith.constant 0 : index
    %c128_143 = arith.constant 128 : index
    %304 = vector.load %arg0[%c3_141, %c0_142, %c128_143] : memref<8x8x256xbf16, #tpu.memory_space<vmem>>, vector<1x8x128xbf16>
    %305 = vector.shape_cast %304 : vector<1x8x128xbf16> to vector<8x128xbf16>
    %306 = arith.extf %305 : vector<8x128xbf16> to vector<8x128xf32>
    %c0_144 = arith.constant 0 : index
    %c0_145 = arith.constant 0 : index
    %307 = vector.load %arg7[%c0_144, %c0_145] : memref<8x32xbf16, #tpu.memory_space<vmem>>, vector<8x32xbf16>
    %cst_146 = arith.constant dense<0.000000e+00> : vector<8x128xf32>
    %308 = tpu.matmul %307, %9, %cst_146 {dimension_numbers = #tpu.dot_dimension_numbers<[1], [0], [0], [1], [0, 0, 1, 1], [], []>} : vector<8x32xbf16>, vector<32x128xbf16>, vector<8x128xf32> -> vector<8x128xf32>
    %309 = arith.addf %306, %308 : vector<8x128xf32>
    %c0_147 = arith.constant 0 : index
    %c0_148 = arith.constant 0 : index
    %310 = vector.load %arg6[%c0_147, %c0_148] : memref<8x32xf32, #tpu.memory_space<vmem>>, vector<8x32xf32>
    %311 = vector.extract_strided_slice %303 {offsets = [0, 0], sizes = [8, 32], strides = [1, 1]} : vector<8x128xf32> to vector<8x32xf32>
    %312 = arith.negf %311 : vector<8x32xf32>
    %313 = math.exp %312 : vector<8x32xf32>
    %cst_149 = arith.constant 1.000000e+00 : f32
    %314 = vector.broadcast %cst_149 : f32 to vector<8x32xf32>
    %315 = arith.addf %314, %313 : vector<8x32xf32>
    %316 = arith.divf %314, %315 : vector<8x32xf32>
    %317 = vector.extract_strided_slice %303 {offsets = [0, 32], sizes = [8, 32], strides = [1, 1]} : vector<8x128xf32> to vector<8x32xf32>
    %318 = arith.negf %317 : vector<8x32xf32>
    %319 = math.exp %318 : vector<8x32xf32>
    %cst_150 = arith.constant 1.000000e+00 : f32
    %320 = vector.broadcast %cst_150 : f32 to vector<8x32xf32>
    %321 = arith.addf %320, %319 : vector<8x32xf32>
    %322 = arith.divf %320, %321 : vector<8x32xf32>
    %323 = vector.extract_strided_slice %303 {offsets = [0, 64], sizes = [8, 32], strides = [1, 1]} : vector<8x128xf32> to vector<8x32xf32>
    %324 = math.tanh %323 : vector<8x32xf32>
    %325 = vector.extract_strided_slice %303 {offsets = [0, 96], sizes = [8, 32], strides = [1, 1]} : vector<8x128xf32> to vector<8x32xf32>
    %326 = arith.negf %325 : vector<8x32xf32>
    %327 = math.exp %326 : vector<8x32xf32>
    %cst_151 = arith.constant 1.000000e+00 : f32
    %328 = vector.broadcast %cst_151 : f32 to vector<8x32xf32>
    %329 = arith.addf %328, %327 : vector<8x32xf32>
    %330 = arith.divf %328, %329 : vector<8x32xf32>
    %331 = arith.mulf %322, %310 : vector<8x32xf32>
    %332 = arith.mulf %316, %324 : vector<8x32xf32>
    %333 = arith.addf %331, %332 : vector<8x32xf32>
    %334 = math.tanh %333 : vector<8x32xf32>
    %335 = arith.mulf %330, %334 : vector<8x32xf32>
    %c0_152 = arith.constant 0 : index
    %c0_153 = arith.constant 0 : index
    %336 = vector.load %arg8[%c0_152, %c0_153] : memref<8x32xf32, #tpu.memory_space<vmem>>, vector<8x32xf32>
    %337 = vector.extract_strided_slice %309 {offsets = [0, 0], sizes = [8, 32], strides = [1, 1]} : vector<8x128xf32> to vector<8x32xf32>
    %338 = arith.negf %337 : vector<8x32xf32>
    %339 = math.exp %338 : vector<8x32xf32>
    %cst_154 = arith.constant 1.000000e+00 : f32
    %340 = vector.broadcast %cst_154 : f32 to vector<8x32xf32>
    %341 = arith.addf %340, %339 : vector<8x32xf32>
    %342 = arith.divf %340, %341 : vector<8x32xf32>
    %343 = vector.extract_strided_slice %309 {offsets = [0, 32], sizes = [8, 32], strides = [1, 1]} : vector<8x128xf32> to vector<8x32xf32>
    %344 = arith.negf %343 : vector<8x32xf32>
    %345 = math.exp %344 : vector<8x32xf32>
    %cst_155 = arith.constant 1.000000e+00 : f32
    %346 = vector.broadcast %cst_155 : f32 to vector<8x32xf32>
    %347 = arith.addf %346, %345 : vector<8x32xf32>
    %348 = arith.divf %346, %347 : vector<8x32xf32>
    %349 = vector.extract_strided_slice %309 {offsets = [0, 64], sizes = [8, 32], strides = [1, 1]} : vector<8x128xf32> to vector<8x32xf32>
    %350 = math.tanh %349 : vector<8x32xf32>
    %351 = vector.extract_strided_slice %309 {offsets = [0, 96], sizes = [8, 32], strides = [1, 1]} : vector<8x128xf32> to vector<8x32xf32>
    %352 = arith.negf %351 : vector<8x32xf32>
    %353 = math.exp %352 : vector<8x32xf32>
    %cst_156 = arith.constant 1.000000e+00 : f32
    %354 = vector.broadcast %cst_156 : f32 to vector<8x32xf32>
    %355 = arith.addf %354, %353 : vector<8x32xf32>
    %356 = arith.divf %354, %355 : vector<8x32xf32>
    %357 = arith.mulf %348, %336 : vector<8x32xf32>
    %358 = arith.mulf %342, %350 : vector<8x32xf32>
    %359 = arith.addf %357, %358 : vector<8x32xf32>
    %360 = math.tanh %359 : vector<8x32xf32>
    %361 = arith.mulf %356, %360 : vector<8x32xf32>
    %362 = arith.truncf %335 : vector<8x32xf32> to vector<8x32xbf16>
    %c0_157 = arith.constant 0 : index
    %c0_158 = arith.constant 0 : index
    %363 = vector.load %arg5[%c0_157, %c0_158] : memref<8x32xbf16, #tpu.memory_space<vmem>>, vector<8x32xbf16>
    tpu.vector_store %arg5[%c0_157, %c0_158], %362 {strides = array<i32>} : memref<8x32xbf16, #tpu.memory_space<vmem>>, vector<8x32xbf16>,
    %364 = arith.truncf %361 : vector<8x32xf32> to vector<8x32xbf16>
    %c0_159 = arith.constant 0 : index
    %c0_160 = arith.constant 0 : index
    %365 = vector.load %arg7[%c0_159, %c0_160] : memref<8x32xbf16, #tpu.memory_space<vmem>>, vector<8x32xbf16>
    tpu.vector_store %arg7[%c0_159, %c0_160], %364 {strides = array<i32>} : memref<8x32xbf16, #tpu.memory_space<vmem>>, vector<8x32xbf16>,
    %c0_161 = arith.constant 0 : index
    %c0_162 = arith.constant 0 : index
    %366 = vector.load %arg6[%c0_161, %c0_162] : memref<8x32xf32, #tpu.memory_space<vmem>>, vector<8x32xf32>
    tpu.vector_store %arg6[%c0_161, %c0_162], %333 {strides = array<i32>} : memref<8x32xf32, #tpu.memory_space<vmem>>, vector<8x32xf32>,
    %c0_163 = arith.constant 0 : index
    %c0_164 = arith.constant 0 : index
    %367 = vector.load %arg8[%c0_163, %c0_164] : memref<8x32xf32, #tpu.memory_space<vmem>>, vector<8x32xf32>
    tpu.vector_store %arg8[%c0_163, %c0_164], %359 {strides = array<i32>} : memref<8x32xf32, #tpu.memory_space<vmem>>, vector<8x32xf32>,
    %c32_165 = arith.constant 32 : index
    %c0_166 = arith.constant 0 : index
    %368 = vector.load %arg9[%c32_165, %c0_166] : memref<64x64xf32, #tpu.memory_space<vmem>>, vector<8x32xf32>
    tpu.vector_store %arg9[%c32_165, %c0_166], %335 {strides = array<i32>} : memref<64x64xf32, #tpu.memory_space<vmem>>, vector<8x32xf32>,
    %c24_167 = arith.constant 24 : index
    %c32_168 = arith.constant 32 : index
    %369 = vector.load %arg9[%c24_167, %c32_168] : memref<64x64xf32, #tpu.memory_space<vmem>>, vector<8x32xf32>
    tpu.vector_store %arg9[%c24_167, %c32_168], %361 {strides = array<i32>} : memref<64x64xf32, #tpu.memory_space<vmem>>, vector<8x32xf32>,
    %c5_169 = arith.constant 5 : index
    %c0_170 = arith.constant 0 : index
    %c0_171 = arith.constant 0 : index
    %370 = vector.load %arg0[%c5_169, %c0_170, %c0_171] : memref<8x8x256xbf16, #tpu.memory_space<vmem>>, vector<1x8x128xbf16>
    %371 = vector.shape_cast %370 : vector<1x8x128xbf16> to vector<8x128xbf16>
    %372 = arith.extf %371 : vector<8x128xbf16> to vector<8x128xf32>
    %c0_172 = arith.constant 0 : index
    %c0_173 = arith.constant 0 : index
    %373 = vector.load %arg5[%c0_172, %c0_173] : memref<8x32xbf16, #tpu.memory_space<vmem>>, vector<8x32xbf16>
    %cst_174 = arith.constant dense<0.000000e+00> : vector<8x128xf32>
    %374 = tpu.matmul %373, %8, %cst_174 {dimension_numbers = #tpu.dot_dimension_numbers<[1], [0], [0], [1], [0, 0, 1, 1], [], []>} : vector<8x32xbf16>, vector<32x128xbf16>, vector<8x128xf32> -> vector<8x128xf32>
    %375 = arith.addf %372, %374 : vector<8x128xf32>
    %c2_175 = arith.constant 2 : index
    %c0_176 = arith.constant 0 : index
    %c128_177 = arith.constant 128 : index
    %376 = vector.load %arg0[%c2_175, %c0_176, %c128_177] : memref<8x8x256xbf16, #tpu.memory_space<vmem>>, vector<1x8x128xbf16>
    %377 = vector.shape_cast %376 : vector<1x8x128xbf16> to vector<8x128xbf16>
    %378 = arith.extf %377 : vector<8x128xbf16> to vector<8x128xf32>
    %c0_178 = arith.constant 0 : index
    %c0_179 = arith.constant 0 : index
    %379 = vector.load %arg7[%c0_178, %c0_179] : memref<8x32xbf16, #tpu.memory_space<vmem>>, vector<8x32xbf16>
    %cst_180 = arith.constant dense<0.000000e+00> : vector<8x128xf32>
    %380 = tpu.matmul %379, %9, %cst_180 {dimension_numbers = #tpu.dot_dimension_numbers<[1], [0], [0], [1], [0, 0, 1, 1], [], []>} : vector<8x32xbf16>, vector<32x128xbf16>, vector<8x128xf32> -> vector<8x128xf32>
    %381 = arith.addf %378, %380 : vector<8x128xf32>
    %c0_181 = arith.constant 0 : index
    %c0_182 = arith.constant 0 : index
    %382 = vector.load %arg6[%c0_181, %c0_182] : memref<8x32xf32, #tpu.memory_space<vmem>>, vector<8x32xf32>
    %383 = vector.extract_strided_slice %375 {offsets = [0, 0], sizes = [8, 32], strides = [1, 1]} : vector<8x128xf32> to vector<8x32xf32>
    %384 = arith.negf %383 : vector<8x32xf32>
    %385 = math.exp %384 : vector<8x32xf32>
    %cst_183 = arith.constant 1.000000e+00 : f32
    %386 = vector.broadcast %cst_183 : f32 to vector<8x32xf32>
    %387 = arith.addf %386, %385 : vector<8x32xf32>
    %388 = arith.divf %386, %387 : vector<8x32xf32>
    %389 = vector.extract_strided_slice %375 {offsets = [0, 32], sizes = [8, 32], strides = [1, 1]} : vector<8x128xf32> to vector<8x32xf32>
    %390 = arith.negf %389 : vector<8x32xf32>
    %391 = math.exp %390 : vector<8x32xf32>
    %cst_184 = arith.constant 1.000000e+00 : f32
    %392 = vector.broadcast %cst_184 : f32 to vector<8x32xf32>
    %393 = arith.addf %392, %391 : vector<8x32xf32>
    %394 = arith.divf %392, %393 : vector<8x32xf32>
    %395 = vector.extract_strided_slice %375 {offsets = [0, 64], sizes = [8, 32], strides = [1, 1]} : vector<8x128xf32> to vector<8x32xf32>
    %396 = math.tanh %395 : vector<8x32xf32>
    %397 = vector.extract_strided_slice %375 {offsets = [0, 96], sizes = [8, 32], strides = [1, 1]} : vector<8x128xf32> to vector<8x32xf32>
    %398 = arith.negf %397 : vector<8x32xf32>
    %399 = math.exp %398 : vector<8x32xf32>
    %cst_185 = arith.constant 1.000000e+00 : f32
    %400 = vector.broadcast %cst_185 : f32 to vector<8x32xf32>
    %401 = arith.addf %400, %399 : vector<8x32xf32>
    %402 = arith.divf %400, %401 : vector<8x32xf32>
    %403 = arith.mulf %394, %382 : vector<8x32xf32>
    %404 = arith.mulf %388, %396 : vector<8x32xf32>
    %405 = arith.addf %403, %404 : vector<8x32xf32>
    %406 = math.tanh %405 : vector<8x32xf32>
    %407 = arith.mulf %402, %406 : vector<8x32xf32>
    %c0_186 = arith.constant 0 : index
    %c0_187 = arith.constant 0 : index
    %408 = vector.load %arg8[%c0_186, %c0_187] : memref<8x32xf32, #tpu.memory_space<vmem>>, vector<8x32xf32>
    %409 = vector.extract_strided_slice %381 {offsets = [0, 0], sizes = [8, 32], strides = [1, 1]} : vector<8x128xf32> to vector<8x32xf32>
    %410 = arith.negf %409 : vector<8x32xf32>
    %411 = math.exp %410 : vector<8x32xf32>
    %cst_188 = arith.constant 1.000000e+00 : f32
    %412 = vector.broadcast %cst_188 : f32 to vector<8x32xf32>
    %413 = arith.addf %412, %411 : vector<8x32xf32>
    %414 = arith.divf %412, %413 : vector<8x32xf32>
    %415 = vector.extract_strided_slice %381 {offsets = [0, 32], sizes = [8, 32], strides = [1, 1]} : vector<8x128xf32> to vector<8x32xf32>
    %416 = arith.negf %415 : vector<8x32xf32>
    %417 = math.exp %416 : vector<8x32xf32>
    %cst_189 = arith.constant 1.000000e+00 : f32
    %418 = vector.broadcast %cst_189 : f32 to vector<8x32xf32>
    %419 = arith.addf %418, %417 : vector<8x32xf32>
    %420 = arith.divf %418, %419 : vector<8x32xf32>
    %421 = vector.extract_strided_slice %381 {offsets = [0, 64], sizes = [8, 32], strides = [1, 1]} : vector<8x128xf32> to vector<8x32xf32>
    %422 = math.tanh %421 : vector<8x32xf32>
    %423 = vector.extract_strided_slice %381 {offsets = [0, 96], sizes = [8, 32], strides = [1, 1]} : vector<8x128xf32> to vector<8x32xf32>
    %424 = arith.negf %423 : vector<8x32xf32>
    %425 = math.exp %424 : vector<8x32xf32>
    %cst_190 = arith.constant 1.000000e+00 : f32
    %426 = vector.broadcast %cst_190 : f32 to vector<8x32xf32>
    %427 = arith.addf %426, %425 : vector<8x32xf32>
    %428 = arith.divf %426, %427 : vector<8x32xf32>
    %429 = arith.mulf %420, %408 : vector<8x32xf32>
    %430 = arith.mulf %414, %422 : vector<8x32xf32>
    %431 = arith.addf %429, %430 : vector<8x32xf32>
    %432 = math.tanh %431 : vector<8x32xf32>
    %433 = arith.mulf %428, %432 : vector<8x32xf32>
    %434 = arith.truncf %407 : vector<8x32xf32> to vector<8x32xbf16>
    %c0_191 = arith.constant 0 : index
    %c0_192 = arith.constant 0 : index
    %435 = vector.load %arg5[%c0_191, %c0_192] : memref<8x32xbf16, #tpu.memory_space<vmem>>, vector<8x32xbf16>
    tpu.vector_store %arg5[%c0_191, %c0_192], %434 {strides = array<i32>} : memref<8x32xbf16, #tpu.memory_space<vmem>>, vector<8x32xbf16>,
    %436 = arith.truncf %433 : vector<8x32xf32> to vector<8x32xbf16>
    %c0_193 = arith.constant 0 : index
    %c0_194 = arith.constant 0 : index
    %437 = vector.load %arg7[%c0_193, %c0_194] : memref<8x32xbf16, #tpu.memory_space<vmem>>, vector<8x32xbf16>
    tpu.vector_store %arg7[%c0_193, %c0_194], %436 {strides = array<i32>} : memref<8x32xbf16, #tpu.memory_space<vmem>>, vector<8x32xbf16>,
    %c0_195 = arith.constant 0 : index
    %c0_196 = arith.constant 0 : index
    %438 = vector.load %arg6[%c0_195, %c0_196] : memref<8x32xf32, #tpu.memory_space<vmem>>, vector<8x32xf32>
    tpu.vector_store %arg6[%c0_195, %c0_196], %405 {strides = array<i32>} : memref<8x32xf32, #tpu.memory_space<vmem>>, vector<8x32xf32>,
    %c0_197 = arith.constant 0 : index
    %c0_198 = arith.constant 0 : index
    %439 = vector.load %arg8[%c0_197, %c0_198] : memref<8x32xf32, #tpu.memory_space<vmem>>, vector<8x32xf32>
    tpu.vector_store %arg8[%c0_197, %c0_198], %431 {strides = array<i32>} : memref<8x32xf32, #tpu.memory_space<vmem>>, vector<8x32xf32>,
    %c40_199 = arith.constant 40 : index
    %c0_200 = arith.constant 0 : index
    %440 = vector.load %arg9[%c40_199, %c0_200] : memref<64x64xf32, #tpu.memory_space<vmem>>, vector<8x32xf32>
    tpu.vector_store %arg9[%c40_199, %c0_200], %407 {strides = array<i32>} : memref<64x64xf32, #tpu.memory_space<vmem>>, vector<8x32xf32>,
    %c16_201 = arith.constant 16 : index
    %c32_202 = arith.constant 32 : index
    %441 = vector.load %arg9[%c16_201, %c32_202] : memref<64x64xf32, #tpu.memory_space<vmem>>, vector<8x32xf32>
    tpu.vector_store %arg9[%c16_201, %c32_202], %433 {strides = array<i32>} : memref<64x64xf32, #tpu.memory_space<vmem>>, vector<8x32xf32>,
    %c6_203 = arith.constant 6 : index
    %c0_204 = arith.constant 0 : index
    %c0_205 = arith.constant 0 : index
    %442 = vector.load %arg0[%c6_203, %c0_204, %c0_205] : memref<8x8x256xbf16, #tpu.memory_space<vmem>>, vector<1x8x128xbf16>
    %443 = vector.shape_cast %442 : vector<1x8x128xbf16> to vector<8x128xbf16>
    %444 = arith.extf %443 : vector<8x128xbf16> to vector<8x128xf32>
    %c0_206 = arith.constant 0 : index
    %c0_207 = arith.constant 0 : index
    %445 = vector.load %arg5[%c0_206, %c0_207] : memref<8x32xbf16, #tpu.memory_space<vmem>>, vector<8x32xbf16>
    %cst_208 = arith.constant dense<0.000000e+00> : vector<8x128xf32>
    %446 = tpu.matmul %445, %8, %cst_208 {dimension_numbers = #tpu.dot_dimension_numbers<[1], [0], [0], [1], [0, 0, 1, 1], [], []>} : vector<8x32xbf16>, vector<32x128xbf16>, vector<8x128xf32> -> vector<8x128xf32>
    %447 = arith.addf %444, %446 : vector<8x128xf32>
    %c1_209 = arith.constant 1 : index
    %c0_210 = arith.constant 0 : index
    %c128_211 = arith.constant 128 : index
    %448 = vector.load %arg0[%c1_209, %c0_210, %c128_211] : memref<8x8x256xbf16, #tpu.memory_space<vmem>>, vector<1x8x128xbf16>
    %449 = vector.shape_cast %448 : vector<1x8x128xbf16> to vector<8x128xbf16>
    %450 = arith.extf %449 : vector<8x128xbf16> to vector<8x128xf32>
    %c0_212 = arith.constant 0 : index
    %c0_213 = arith.constant 0 : index
    %451 = vector.load %arg7[%c0_212, %c0_213] : memref<8x32xbf16, #tpu.memory_space<vmem>>, vector<8x32xbf16>
    %cst_214 = arith.constant dense<0.000000e+00> : vector<8x128xf32>
    %452 = tpu.matmul %451, %9, %cst_214 {dimension_numbers = #tpu.dot_dimension_numbers<[1], [0], [0], [1], [0, 0, 1, 1], [], []>} : vector<8x32xbf16>, vector<32x128xbf16>, vector<8x128xf32> -> vector<8x128xf32>
    %453 = arith.addf %450, %452 : vector<8x128xf32>
    %c0_215 = arith.constant 0 : index
    %c0_216 = arith.constant 0 : index
    %454 = vector.load %arg6[%c0_215, %c0_216] : memref<8x32xf32, #tpu.memory_space<vmem>>, vector<8x32xf32>
    %455 = vector.extract_strided_slice %447 {offsets = [0, 0], sizes = [8, 32], strides = [1, 1]} : vector<8x128xf32> to vector<8x32xf32>
    %456 = arith.negf %455 : vector<8x32xf32>
    %457 = math.exp %456 : vector<8x32xf32>
    %cst_217 = arith.constant 1.000000e+00 : f32
    %458 = vector.broadcast %cst_217 : f32 to vector<8x32xf32>
    %459 = arith.addf %458, %457 : vector<8x32xf32>
    %460 = arith.divf %458, %459 : vector<8x32xf32>
    %461 = vector.extract_strided_slice %447 {offsets = [0, 32], sizes = [8, 32], strides = [1, 1]} : vector<8x128xf32> to vector<8x32xf32>
    %462 = arith.negf %461 : vector<8x32xf32>
    %463 = math.exp %462 : vector<8x32xf32>
    %cst_218 = arith.constant 1.000000e+00 : f32
    %464 = vector.broadcast %cst_218 : f32 to vector<8x32xf32>
    %465 = arith.addf %464, %463 : vector<8x32xf32>
    %466 = arith.divf %464, %465 : vector<8x32xf32>
    %467 = vector.extract_strided_slice %447 {offsets = [0, 64], sizes = [8, 32], strides = [1, 1]} : vector<8x128xf32> to vector<8x32xf32>
    %468 = math.tanh %467 : vector<8x32xf32>
    %469 = vector.extract_strided_slice %447 {offsets = [0, 96], sizes = [8, 32], strides = [1, 1]} : vector<8x128xf32> to vector<8x32xf32>
    %470 = arith.negf %469 : vector<8x32xf32>
    %471 = math.exp %470 : vector<8x32xf32>
    %cst_219 = arith.constant 1.000000e+00 : f32
    %472 = vector.broadcast %cst_219 : f32 to vector<8x32xf32>
    %473 = arith.addf %472, %471 : vector<8x32xf32>
    %474 = arith.divf %472, %473 : vector<8x32xf32>
    %475 = arith.mulf %466, %454 : vector<8x32xf32>
    %476 = arith.mulf %460, %468 : vector<8x32xf32>
    %477 = arith.addf %475, %476 : vector<8x32xf32>
    %478 = math.tanh %477 : vector<8x32xf32>
    %479 = arith.mulf %474, %478 : vector<8x32xf32>
    %c0_220 = arith.constant 0 : index
    %c0_221 = arith.constant 0 : index
    %480 = vector.load %arg8[%c0_220, %c0_221] : memref<8x32xf32, #tpu.memory_space<vmem>>, vector<8x32xf32>
    %481 = vector.extract_strided_slice %453 {offsets = [0, 0], sizes = [8, 32], strides = [1, 1]} : vector<8x128xf32> to vector<8x32xf32>
    %482 = arith.negf %481 : vector<8x32xf32>
    %483 = math.exp %482 : vector<8x32xf32>
    %cst_222 = arith.constant 1.000000e+00 : f32
    %484 = vector.broadcast %cst_222 : f32 to vector<8x32xf32>
    %485 = arith.addf %484, %483 : vector<8x32xf32>
    %486 = arith.divf %484, %485 : vector<8x32xf32>
    %487 = vector.extract_strided_slice %453 {offsets = [0, 32], sizes = [8, 32], strides = [1, 1]} : vector<8x128xf32> to vector<8x32xf32>
    %488 = arith.negf %487 : vector<8x32xf32>
    %489 = math.exp %488 : vector<8x32xf32>
    %cst_223 = arith.constant 1.000000e+00 : f32
    %490 = vector.broadcast %cst_223 : f32 to vector<8x32xf32>
    %491 = arith.addf %490, %489 : vector<8x32xf32>
    %492 = arith.divf %490, %491 : vector<8x32xf32>
    %493 = vector.extract_strided_slice %453 {offsets = [0, 64], sizes = [8, 32], strides = [1, 1]} : vector<8x128xf32> to vector<8x32xf32>
    %494 = math.tanh %493 : vector<8x32xf32>
    %495 = vector.extract_strided_slice %453 {offsets = [0, 96], sizes = [8, 32], strides = [1, 1]} : vector<8x128xf32> to vector<8x32xf32>
    %496 = arith.negf %495 : vector<8x32xf32>
    %497 = math.exp %496 : vector<8x32xf32>
    %cst_224 = arith.constant 1.000000e+00 : f32
    %498 = vector.broadcast %cst_224 : f32 to vector<8x32xf32>
    %499 = arith.addf %498, %497 : vector<8x32xf32>
    %500 = arith.divf %498, %499 : vector<8x32xf32>
    %501 = arith.mulf %492, %480 : vector<8x32xf32>
    %502 = arith.mulf %486, %494 : vector<8x32xf32>
    %503 = arith.addf %501, %502 : vector<8x32xf32>
    %504 = math.tanh %503 : vector<8x32xf32>
    %505 = arith.mulf %500, %504 : vector<8x32xf32>
    %506 = arith.truncf %479 : vector<8x32xf32> to vector<8x32xbf16>
    %c0_225 = arith.constant 0 : index
    %c0_226 = arith.constant 0 : index
    %507 = vector.load %arg5[%c0_225, %c0_226] : memref<8x32xbf16, #tpu.memory_space<vmem>>, vector<8x32xbf16>
    tpu.vector_store %arg5[%c0_225, %c0_226], %506 {strides = array<i32>} : memref<8x32xbf16, #tpu.memory_space<vmem>>, vector<8x32xbf16>,
    %508 = arith.truncf %505 : vector<8x32xf32> to vector<8x32xbf16>
    %c0_227 = arith.constant 0 : index
    %c0_228 = arith.constant 0 : index
    %509 = vector.load %arg7[%c0_227, %c0_228] : memref<8x32xbf16, #tpu.memory_space<vmem>>, vector<8x32xbf16>
    tpu.vector_store %arg7[%c0_227, %c0_228], %508 {strides = array<i32>} : memref<8x32xbf16, #tpu.memory_space<vmem>>, vector<8x32xbf16>,
    %c0_229 = arith.constant 0 : index
    %c0_230 = arith.constant 0 : index
    %510 = vector.load %arg6[%c0_229, %c0_230] : memref<8x32xf32, #tpu.memory_space<vmem>>, vector<8x32xf32>
    tpu.vector_store %arg6[%c0_229, %c0_230], %477 {strides = array<i32>} : memref<8x32xf32, #tpu.memory_space<vmem>>, vector<8x32xf32>,
    %c0_231 = arith.constant 0 : index
    %c0_232 = arith.constant 0 : index
    %511 = vector.load %arg8[%c0_231, %c0_232] : memref<8x32xf32, #tpu.memory_space<vmem>>, vector<8x32xf32>
    tpu.vector_store %arg8[%c0_231, %c0_232], %503 {strides = array<i32>} : memref<8x32xf32, #tpu.memory_space<vmem>>, vector<8x32xf32>,
    %c48_233 = arith.constant 48 : index
    %c0_234 = arith.constant 0 : index
    %512 = vector.load %arg9[%c48_233, %c0_234] : memref<64x64xf32, #tpu.memory_space<vmem>>, vector<8x32xf32>
    tpu.vector_store %arg9[%c48_233, %c0_234], %479 {strides = array<i32>} : memref<64x64xf32, #tpu.memory_space<vmem>>, vector<8x32xf32>,
    %c8_235 = arith.constant 8 : index
    %c32_236 = arith.constant 32 : index
    %513 = vector.load %arg9[%c8_235, %c32_236] : memref<64x64xf32, #tpu.memory_space<vmem>>, vector<8x32xf32>
    tpu.vector_store %arg9[%c8_235, %c32_236], %505 {strides = array<i32>} : memref<64x64xf32, #tpu.memory_space<vmem>>, vector<8x32xf32>,
    %c7_237 = arith.constant 7 : index
    %c0_238 = arith.constant 0 : index
    %c0_239 = arith.constant 0 : index
    %514 = vector.load %arg0[%c7_237, %c0_238, %c0_239] : memref<8x8x256xbf16, #tpu.memory_space<vmem>>, vector<1x8x128xbf16>
    %515 = vector.shape_cast %514 : vector<1x8x128xbf16> to vector<8x128xbf16>
    %516 = arith.extf %515 : vector<8x128xbf16> to vector<8x128xf32>
    %c0_240 = arith.constant 0 : index
    %c0_241 = arith.constant 0 : index
    %517 = vector.load %arg5[%c0_240, %c0_241] : memref<8x32xbf16, #tpu.memory_space<vmem>>, vector<8x32xbf16>
    %cst_242 = arith.constant dense<0.000000e+00> : vector<8x128xf32>
    %518 = tpu.matmul %517, %8, %cst_242 {dimension_numbers = #tpu.dot_dimension_numbers<[1], [0], [0], [1], [0, 0, 1, 1], [], []>} : vector<8x32xbf16>, vector<32x128xbf16>, vector<8x128xf32> -> vector<8x128xf32>
    %519 = arith.addf %516, %518 : vector<8x128xf32>
    %c0_243 = arith.constant 0 : index
    %c0_244 = arith.constant 0 : index
    %c128_245 = arith.constant 128 : index
    %520 = vector.load %arg0[%c0_243, %c0_244, %c128_245] : memref<8x8x256xbf16, #tpu.memory_space<vmem>>, vector<1x8x128xbf16>
    %521 = vector.shape_cast %520 : vector<1x8x128xbf16> to vector<8x128xbf16>
    %522 = arith.extf %521 : vector<8x128xbf16> to vector<8x128xf32>
    %c0_246 = arith.constant 0 : index
    %c0_247 = arith.constant 0 : index
    %523 = vector.load %arg7[%c0_246, %c0_247] : memref<8x32xbf16, #tpu.memory_space<vmem>>, vector<8x32xbf16>
    %cst_248 = arith.constant dense<0.000000e+00> : vector<8x128xf32>
    %524 = tpu.matmul %523, %9, %cst_248 {dimension_numbers = #tpu.dot_dimension_numbers<[1], [0], [0], [1], [0, 0, 1, 1], [], []>} : vector<8x32xbf16>, vector<32x128xbf16>, vector<8x128xf32> -> vector<8x128xf32>
    %525 = arith.addf %522, %524 : vector<8x128xf32>
    %c0_249 = arith.constant 0 : index
    %c0_250 = arith.constant 0 : index
    %526 = vector.load %arg6[%c0_249, %c0_250] : memref<8x32xf32, #tpu.memory_space<vmem>>, vector<8x32xf32>
    %527 = vector.extract_strided_slice %519 {offsets = [0, 0], sizes = [8, 32], strides = [1, 1]} : vector<8x128xf32> to vector<8x32xf32>
    %528 = arith.negf %527 : vector<8x32xf32>
    %529 = math.exp %528 : vector<8x32xf32>
    %cst_251 = arith.constant 1.000000e+00 : f32
    %530 = vector.broadcast %cst_251 : f32 to vector<8x32xf32>
    %531 = arith.addf %530, %529 : vector<8x32xf32>
    %532 = arith.divf %530, %531 : vector<8x32xf32>
    %533 = vector.extract_strided_slice %519 {offsets = [0, 32], sizes = [8, 32], strides = [1, 1]} : vector<8x128xf32> to vector<8x32xf32>
    %534 = arith.negf %533 : vector<8x32xf32>
    %535 = math.exp %534 : vector<8x32xf32>
    %cst_252 = arith.constant 1.000000e+00 : f32
    %536 = vector.broadcast %cst_252 : f32 to vector<8x32xf32>
    %537 = arith.addf %536, %535 : vector<8x32xf32>
    %538 = arith.divf %536, %537 : vector<8x32xf32>
    %539 = vector.extract_strided_slice %519 {offsets = [0, 64], sizes = [8, 32], strides = [1, 1]} : vector<8x128xf32> to vector<8x32xf32>
    %540 = math.tanh %539 : vector<8x32xf32>
    %541 = vector.extract_strided_slice %519 {offsets = [0, 96], sizes = [8, 32], strides = [1, 1]} : vector<8x128xf32> to vector<8x32xf32>
    %542 = arith.negf %541 : vector<8x32xf32>
    %543 = math.exp %542 : vector<8x32xf32>
    %cst_253 = arith.constant 1.000000e+00 : f32
    %544 = vector.broadcast %cst_253 : f32 to vector<8x32xf32>
    %545 = arith.addf %544, %543 : vector<8x32xf32>
    %546 = arith.divf %544, %545 : vector<8x32xf32>
    %547 = arith.mulf %538, %526 : vector<8x32xf32>
    %548 = arith.mulf %532, %540 : vector<8x32xf32>
    %549 = arith.addf %547, %548 : vector<8x32xf32>
    %550 = math.tanh %549 : vector<8x32xf32>
    %551 = arith.mulf %546, %550 : vector<8x32xf32>
    %c0_254 = arith.constant 0 : index
    %c0_255 = arith.constant 0 : index
    %552 = vector.load %arg8[%c0_254, %c0_255] : memref<8x32xf32, #tpu.memory_space<vmem>>, vector<8x32xf32>
    %553 = vector.extract_strided_slice %525 {offsets = [0, 0], sizes = [8, 32], strides = [1, 1]} : vector<8x128xf32> to vector<8x32xf32>
    %554 = arith.negf %553 : vector<8x32xf32>
    %555 = math.exp %554 : vector<8x32xf32>
    %cst_256 = arith.constant 1.000000e+00 : f32
    %556 = vector.broadcast %cst_256 : f32 to vector<8x32xf32>
    %557 = arith.addf %556, %555 : vector<8x32xf32>
    %558 = arith.divf %556, %557 : vector<8x32xf32>
    %559 = vector.extract_strided_slice %525 {offsets = [0, 32], sizes = [8, 32], strides = [1, 1]} : vector<8x128xf32> to vector<8x32xf32>
    %560 = arith.negf %559 : vector<8x32xf32>
    %561 = math.exp %560 : vector<8x32xf32>
    %cst_257 = arith.constant 1.000000e+00 : f32
    %562 = vector.broadcast %cst_257 : f32 to vector<8x32xf32>
    %563 = arith.addf %562, %561 : vector<8x32xf32>
    %564 = arith.divf %562, %563 : vector<8x32xf32>
    %565 = vector.extract_strided_slice %525 {offsets = [0, 64], sizes = [8, 32], strides = [1, 1]} : vector<8x128xf32> to vector<8x32xf32>
    %566 = math.tanh %565 : vector<8x32xf32>
    %567 = vector.extract_strided_slice %525 {offsets = [0, 96], sizes = [8, 32], strides = [1, 1]} : vector<8x128xf32> to vector<8x32xf32>
    %568 = arith.negf %567 : vector<8x32xf32>
    %569 = math.exp %568 : vector<8x32xf32>
    %cst_258 = arith.constant 1.000000e+00 : f32
    %570 = vector.broadcast %cst_258 : f32 to vector<8x32xf32>
    %571 = arith.addf %570, %569 : vector<8x32xf32>
    %572 = arith.divf %570, %571 : vector<8x32xf32>
    %573 = arith.mulf %564, %552 : vector<8x32xf32>
    %574 = arith.mulf %558, %566 : vector<8x32xf32>
    %575 = arith.addf %573, %574 : vector<8x32xf32>
    %576 = math.tanh %575 : vector<8x32xf32>
    %577 = arith.mulf %572, %576 : vector<8x32xf32>
    %578 = arith.truncf %551 : vector<8x32xf32> to vector<8x32xbf16>
    %c0_259 = arith.constant 0 : index
    %c0_260 = arith.constant 0 : index
    %579 = vector.load %arg5[%c0_259, %c0_260] : memref<8x32xbf16, #tpu.memory_space<vmem>>, vector<8x32xbf16>
    tpu.vector_store %arg5[%c0_259, %c0_260], %578 {strides = array<i32>} : memref<8x32xbf16, #tpu.memory_space<vmem>>, vector<8x32xbf16>,
    %580 = arith.truncf %577 : vector<8x32xf32> to vector<8x32xbf16>
    %c0_261 = arith.constant 0 : index
    %c0_262 = arith.constant 0 : index
    %581 = vector.load %arg7[%c0_261, %c0_262] : memref<8x32xbf16, #tpu.memory_space<vmem>>, vector<8x32xbf16>
    tpu.vector_store %arg7[%c0_261, %c0_262], %580 {strides = array<i32>} : memref<8x32xbf16, #tpu.memory_space<vmem>>, vector<8x32xbf16>,
    %c0_263 = arith.constant 0 : index
    %c0_264 = arith.constant 0 : index
    %582 = vector.load %arg6[%c0_263, %c0_264] : memref<8x32xf32, #tpu.memory_space<vmem>>, vector<8x32xf32>
    tpu.vector_store %arg6[%c0_263, %c0_264], %549 {strides = array<i32>} : memref<8x32xf32, #tpu.memory_space<vmem>>, vector<8x32xf32>,
    %c0_265 = arith.constant 0 : index
    %c0_266 = arith.constant 0 : index
    %583 = vector.load %arg8[%c0_265, %c0_266] : memref<8x32xf32, #tpu.memory_space<vmem>>, vector<8x32xf32>
    tpu.vector_store %arg8[%c0_265, %c0_266], %575 {strides = array<i32>} : memref<8x32xf32, #tpu.memory_space<vmem>>, vector<8x32xf32>,
    %c56_267 = arith.constant 56 : index
    %c0_268 = arith.constant 0 : index
    %584 = vector.load %arg9[%c56_267, %c0_268] : memref<64x64xf32, #tpu.memory_space<vmem>>, vector<8x32xf32>
    tpu.vector_store %arg9[%c56_267, %c0_268], %551 {strides = array<i32>} : memref<64x64xf32, #tpu.memory_space<vmem>>, vector<8x32xf32>,
    %c0_269 = arith.constant 0 : index
    %c32_270 = arith.constant 32 : index
    %585 = vector.load %arg9[%c0_269, %c32_270] : memref<64x64xf32, #tpu.memory_space<vmem>>, vector<8x32xf32>
    tpu.vector_store %arg9[%c0_269, %c32_270], %577 {strides = array<i32>} : memref<64x64xf32, #tpu.memory_space<vmem>>, vector<8x32xf32>,
    %c0_271 = arith.constant 0 : index
    %c0_272 = arith.constant 0 : index
    %586 = vector.load %arg9[%c0_271, %c0_272] : memref<64x64xf32, #tpu.memory_space<vmem>>, vector<64x64xf32>
    %587 = arith.truncf %586 : vector<64x64xf32> to vector<64x64xbf16>
    %c0_273 = arith.constant 0 : index
    %c0_274 = arith.constant 0 : index
    %588 = vector.load %arg2[%c0_273, %c0_274] : memref<64x128xbf16, #tpu.memory_space<vmem>>, vector<64x128xbf16>
    %cst_275 = arith.constant dense<0.000000e+00> : vector<64x128xf32>
    %589 = tpu.matmul %587, %588, %cst_275 {dimension_numbers = #tpu.dot_dimension_numbers<[1], [0], [0], [1], [0, 0, 1, 1], [], []>} : vector<64x64xbf16>, vector<64x128xbf16>, vector<64x128xf32> -> vector<64x128xf32>
    %c0_276 = arith.constant 0 : index
    %c0_277 = arith.constant 0 : index
    %590 = vector.load %arg3[%c0_276, %c0_277] : memref<1x128xf32, #tpu.memory_space<vmem>>, vector<1x128xf32>
    %591 = vector.broadcast %590 : vector<1x128xf32> to vector<64x128xf32>
    %592 = arith.addf %589, %591 : vector<64x128xf32>
    %c0_278 = arith.constant 0 : index
    %c0_279 = arith.constant 0 : index
    %593 = vector.load %arg4[%c0_278, %c0_279] : memref<64x128xf32, #tpu.memory_space<vmem>>, vector<64x128xf32>
    tpu.vector_store %arg4[%c0_278, %c0_279], %592 {strides = array<i32>} : memref<64x128xf32, #tpu.memory_space<vmem>>, vector<64x128xf32>,
    return
  }
}

</mosaic_0001>

<bundles_post_ra>
// kernel: bilstm_forward.2
= control target key start
LH: loop header
LB: loop body
LE: loop exit
PB: predicated region body
PF: predicated region fallthrough
CT: control target
= control target key end

     0   :  { %vm73_vm0 = vcmask 261120   ;;  %s299_s1 = inlined_call_operand.vmem [shape: bf16[32,256], index: 1, kind: input, shape index: {}]   ;;  %s300_s0 = inlined_call_operand.vmem [shape: bf16[64,32], index: 0, kind: input, shape index: {}]   ;;  %s301_s2 = inlined_call_operand.vmem [shape: f32[1,256], index: 2, kind: input, shape index: {}]   ;;  %s302_s3 = inlined_call_operand.vmem [shape: bf16[64,256], index: 3, kind: output, shape index: {}]  }
   0x1   :  { %v190_v0 = vld [vmem:[%s299_s1 + $0x10] sm:$0xf]  ;;  %v211_v1 = vld [vmem:[%s299_s1 + $0x14] sm:$0xf0]  ;;  %v210_v2 = vld [vmem:[%s299_s1 + $0x14] sm:$0xf] }
   0x2   :  { %v191_v3 = vor.u32 %v211_v1, %v190_v0  ;;  %v192_v4 = vld [vmem:[%s299_s1 + $0x18] sm:$0xf0]  ;;  %v182_v5 = vld [vmem:[%s299_s1] sm:$0xf]  ;;  %v209_v6 = vld [vmem:[%s299_s1 + $0x4] sm:$0xf0] }
   0x3   :  { %v195_v7 = vor.u32 %v210_v2, %v192_v4  ;;  %v208_v8 = vld [vmem:[%s299_s1 + $0x4] sm:$0xf]  ;;  %v184_v9 = vld [vmem:[%s299_s1 + $0x8] sm:$0xf0]  ;;  %v183_v10 = vor.u32 %v209_v6, %v182_v5  ;;  %v206_v13 = vld [vmem:[%s300_s0 + $0x10] sm:$0xff] }
   0x4   :  { %92 = vmatpush.bf16.msra.mxu0 %v191_v3  ;;  %212 = vmatpush.bf16.msra.mxu2 %v191_v3  ;;  %v187_v11 = vor.u32 %v208_v8, %v184_v9  ;;  %v204_v12 = vld [vmem:[%s300_s0] sm:$0xff]  ;;  %v205_v14 = vld [vmem:[%s300_s0 + $0x8] sm:$0xff]  ;;  %v207_v15 = vld [vmem:[%s300_s0 + $0x18] sm:$0xff] }
   0x5   :  { %121 = vmatpush.bf16.msra.mxu1 %v195_v7  ;;  %214 = vmatpush.bf16.msra.mxu3 %v195_v7  ;;  %v27_v16 = vld [vmem:[%s301_s2] sm:$0x3] }
   0x6   :  { %v29_v17 = vperm.slane %v27_v16, 0  ;;  %v30_v18 = vperm.slane %v27_v16, 1 }
   0x8   :  { %93 = vmatpush.bf16.msra.mxu0 %v183_v10  ;;  %213 = vmatpush.bf16.msra.mxu2 %v183_v10 }
   0x9   :  { %122 = vmatpush.bf16.msra.mxu1 %v187_v11  ;;  %215 = vmatpush.bf16.msra.mxu3 %v187_v11 }
   0xb   :  { %196 = vmatmul.msk.bf16.vlgmr.msra.gmra.mxu0 %vm73_vm0, %v204_v12  ;;  %198 = vmatmul.msk.bf16.vlgmr.msra.gmra.mxu2 %vm73_vm0, %v206_v13 }
   0xc   :  { %200 = vmatmul.msk.bf16.vlgmr.msra.gmra.mxu1 %vm73_vm0, %v204_v12  ;;  %202 = vmatmul.msk.bf16.vlgmr.msra.gmra.mxu3 %vm73_vm0, %v206_v13 }
  0x1b   :  { %197 = vmatmul.msk.bf16.gmra.mxu0 %vm73_vm0, %v205_v14  ;;  %199 = vmatmul.msk.bf16.gmra.mxu2 %vm73_vm0, %v207_v15 }
  0x1c   :  { %201 = vmatmul.msk.bf16.gmra.mxu1 %vm73_vm0, %v205_v14  ;;  %203 = vmatmul.msk.bf16.gmra.mxu3 %vm73_vm0, %v207_v15 }
  0x88   :  { %v95_v19 = vpop.f32.mrf.mxu0 }
  0x89   :  { %v96_v20 = vadd.f32 %v95_v19, %v29_v17  ;;  %v124_v21 = vpop.f32.mrf.mxu1 }
  0x8a   :  { %v125_v22 = vadd.f32 %v124_v21, %v30_v18 }
  0x8c   :  { %v144_v23 = vpack.c.bf16 %v125_v22, %v96_v20 }
  0x8e   :  { %152 = vst [vmem:[%s302_s3] sm:$0xff] %v144_v23  ;;  %v105_v24 = vpop.f32.mrf.mxu2 }
  0x8f   :  { %v106_v25 = vadd.f32 %v105_v24, %v29_v17  ;;  %v134_v26 = vpop.f32.mrf.mxu3 }
  0x90   :  { %v135_v27 = vadd.f32 %v134_v26, %v30_v18  ;;  %v97_v28 = vpop.f32.mrf.mxu0 }
  0x91   :  { %v98_v29 = vadd.f32 %v97_v28, %v29_v17  ;;  %v126_v30 = vpop.f32.mrf.mxu1 }
  0x92   :  { %v148_v31 = vpack.c.bf16 %v135_v27, %v106_v25  ;;  %v127_v32 = vadd.f32 %v126_v30, %v30_v18 }
  0x94   :  { %156 = vst [vmem:[%s302_s3 + $0x20] sm:$0xff] %v148_v31  ;;  %v145_v33 = vpack.c.bf16 %v127_v32, %v98_v29 }
  0x96   :  { %153 = vst [vmem:[%s302_s3 + $0x8] sm:$0xff] %v145_v33  ;;  %v107_v34 = vpop.f32.mrf.mxu2 }
  0x97   :  { %v108_v35 = vadd.f32 %v107_v34, %v29_v17  ;;  %v136_v36 = vpop.f32.mrf.mxu3 }
  0x98   :  { %v137_v37 = vadd.f32 %v136_v36, %v30_v18  ;;  %v100_v38 = vpop.f32.mrf.mxu0 }
  0x99   :  { %v101_v39 = vadd.f32 %v100_v38, %v29_v17  ;;  %v129_v40 = vpop.f32.mrf.mxu1 }
  0x9a   :  { %v149_v41 = vpack.c.bf16 %v137_v37, %v108_v35  ;;  %v130_v42 = vadd.f32 %v129_v40, %v30_v18 }
  0x9c   :  { %157 = vst [vmem:[%s302_s3 + $0x28] sm:$0xff] %v149_v41  ;;  %v146_v43 = vpack.c.bf16 %v130_v42, %v101_v39 }
  0x9e   :  { %154 = vst [vmem:[%s302_s3 + $0x10] sm:$0xff] %v146_v43  ;;  %v110_v44 = vpop.f32.mrf.mxu2 }
  0x9f   :  { %v111_v45 = vadd.f32 %v110_v44, %v29_v17  ;;  %v139_v46 = vpop.f32.mrf.mxu3 }
  0xa0   :  { %v140_v47 = vadd.f32 %v139_v46, %v30_v18  ;;  %v102_v48 = vpop.f32.mrf.mxu0 }
  0xa1   :  { %v103_v49 = vadd.f32 %v102_v48, %v29_v17  ;;  %v131_v50 = vpop.f32.mrf.mxu1 }
  0xa2   :  { %v150_v51 = vpack.c.bf16 %v140_v47, %v111_v45  ;;  %v132_v52 = vadd.f32 %v131_v50, %v30_v18 }
  0xa4   :  { %158 = vst [vmem:[%s302_s3 + $0x30] sm:$0xff] %v150_v51  ;;  %v147_v53 = vpack.c.bf16 %v132_v52, %v103_v49 }
  0xa6   :  { %155 = vst [vmem:[%s302_s3 + $0x18] sm:$0xff] %v147_v53  ;;  %v112_v54 = vpop.f32.mrf.mxu2 }
  0xa7   :  { %v113_v55 = vadd.f32 %v112_v54, %v29_v17  ;;  %v141_v56 = vpop.f32.mrf.mxu3 }
  0xa8   :  { %v142_v57 = vadd.f32 %v141_v56, %v30_v18 }
  0xaa   :  { %v151_v58 = vpack.c.bf16 %v142_v57, %v113_v55 }
  0xac   :  { %159 = vst [vmem:[%s302_s3 + $0x38] sm:$0xff] %v151_v58 }

// kernel: bilstm_forward.3
= control target key start
LH: loop header
LB: loop body
LE: loop exit
PB: predicated region body
PF: predicated region fallthrough
CT: control target
= control target key end

     0   :  { %vm18_vm0 = vcmask 257024   ;;  %v1638_v5 = vmov 0   ;;  %vm20_vm1 = vcmask 261120   ;;  %v1639_v10 = vmov 0.0   ;;  %s1641_s9 = smov 64   ;;  %s1642_s10 = smov 96   ;;  %s2082_s1 = inlined_call_operand.vmem [shape: bf16[32,256], index: 1, kind: input, shape index: {}]   ;;  %s2083_s0 = inlined_call_operand.vmem [shape: bf16[8,8,256], index: 0, kind: input, shape index: {}]   ;;  %s2084_s2 = inlined_call_operand.vmem [shape: bf16[64,128], index: 2, kind: input, shape index: {}]   ;;  %s2085_s3 = inlined_call_operand.vmem [shape: f32[1,128], index: 3, kind: input, shape index: {}]   ;;  %s2086_s4 = inlined_call_operand.vmem [shape: f32[64,128], index: 4, kind: output, shape index: {}]  }
   0x1   :  { %v1420_v0 = vld [vmem:[%s2082_s1 + $0x10] sm:$0xf]  ;;  %v1497_v1 = vld [vmem:[%s2082_s1 + $0x14] sm:$0xf0]  ;;  %v1416_v2 = vld [vmem:[%s2082_s1] sm:$0xf] }
   0x2   :  { %v1677_v3 = vor.u32 %v1497_v1, %v1420_v0  ;;  %v1496_v4 = vld [vmem:[%s2082_s1 + $0x4] sm:$0xf0]  ;;  %19 = vst.msk [vmem:[#allocation2] sm:$0xf] %vm18_vm0, %v1638_v5  ;;  %v1430_v6 = vld [vmem:[%s2082_s1 + $0x14] sm:$0xf] }
   0x3   :  { %22 = vst.msk [vmem:[#allocation4] sm:$0xf] %vm18_vm0, %v1638_v5  ;;  %v1499_v7 = vld [vmem:[%s2082_s1 + $0x18] sm:$0xf0]  ;;  %v1691_v8 = vor.u32 %v1496_v4, %v1416_v2  ;;  %v1426_v11 = vld [vmem:[%s2082_s1 + $0x4] sm:$0xf] }
   0x4   :  { %56 = vmatpush.bf16.msra.mxu1 %v1677_v3  ;;  %v1693_v9 = vor.u32 %v1499_v7, %v1430_v6  ;;  %23 = vst.msk [vmem:[#allocation5] sm:$0xff] %vm20_vm1, %v1639_v10  ;;  %227 = vmatpush.bf16.msra.mxu2 %v1677_v3  ;;  %v1498_v12 = vld [vmem:[%s2082_s1 + $0x8] sm:$0xf0]  ;;  %s1640_s1 = smov 32   ;;  %v1423_v20 = vld [vmem:[%s2083_s0 + $0x3c] sm:$0xf] }
   0x5   :  { %21 = vst.msk [vmem:[#allocation3] sm:$0xff] %vm20_vm1, %v1639_v10  ;;  %1012 = vmatpush.bf16.msra.mxu0 %v1677_v3  ;;  %v1707_v13 = vor.u32 %v1498_v12, %v1426_v11  ;;  %v66_v21 = vunpack.c.l.bf16 %v1423_v20  ;;  %v32_v22 = vld [vmem:[%s2083_s0] sm:$0xf] }
   0x6   :  { %248 = vmatpush.bf16.msra.mxu3 %v1693_v9  ;;  %v33_v25 = vunpack.c.l.bf16 %v32_v22  ;;  %v1437_v22 = vld [vmem:[%s2083_s0 + $0x34] sm:$0xf] }
   0x8   :  { %57 = vmatpush.bf16.msra.mxu1 %v1691_v8  ;;  %228 = vmatpush.bf16.msra.mxu2 %v1691_v8 }
   0x9   :  { %v34_v14 = vld [vmem:[#allocation2] sm:$0xf]  ;;  %1013 = vmatpush.bf16.msra.mxu0 %v1691_v8 }
   0xa   :  { %249 = vmatpush.bf16.msra.mxu3 %v1707_v13  ;;  %v67_v17 = vld [vmem:[#allocation4] sm:$0xf] }
   0xb   :  { %1422 = vmatmul.msk.bf16.vlgmr.msra.gmra.mxu1 %vm20_vm1, %v34_v14  ;;  %v139_v15 = vld [vmem:[#allocation5] sm:$0xff] }
   0xc   :  { %89 = vmatpush.bf16.msrb.mxu1 %v1693_v9  ;;  %385 = vmatpush.bf16.msrb.mxu2 %v1677_v3  ;;  %v97_v16 = vld [vmem:[#allocation3] sm:$0xff] }
   0xd   :  { %161 = vrot.lane.b32.xlu1 %v139_v15, %s1640_s1  ;;  %119 = vrot.lane.b32.xlu2 %v97_v16, %s1640_s1 }
   0xe   :  { %564 = vmatpush.bf16.msrb.mxu3 %v1693_v9 }
  0x10   :  { %90 = vmatpush.bf16.msrb.mxu1 %v1707_v13  ;;  %386 = vmatpush.bf16.msrb.mxu2 %v1691_v8 }
  0x12   :  { %565 = vmatpush.bf16.msrb.mxu3 %v1707_v13 }
  0x14   :  { %406 = vmatpush.bf16.msra.mxu1 %v1693_v9 }
  0x18   :  { %407 = vmatpush.bf16.msra.mxu1 %v1707_v13 }
  0x1b   :  { %1432 = vmatmul.msk.bf16.vlgmr.msrb.gmra.mxu1 %vm20_vm1, %v67_v17 }
  0x1c   :  { %720 = vmatpush.bf16.msrb.mxu1 %v1693_v9 }
  0x20   :  { %721 = vmatpush.bf16.msrb.mxu1 %v1707_v13 }
  0x67   :  { %v120_v60 = vpop.permute.xlu2 %119 }
  0x7f   :  { %v162_v0 = vpop.permute.xlu1 %161 }
  0x88   :  { %v59_v18 = vpop.f32.mrf.mxu1 }
  0x89   :  { %v63_v26 = vadd.f32 %v59_v18, %v33_v25 }
  0x8b   :  { %v1433_v31 = vmul.f32 -1.442695, %v63_v26 }
  0x90   :  { %v61_v19 = vpop.f32.mrf.mxu1 }
  0x98   :  { %v92_v23 = vpop.f32.mrf.mxu1 }
  0x99   :  { %v96_v24 = vadd.f32 %v92_v23, %v66_v21  ;;  %v237_v23 = vunpack.c.l.bf16 %v1437_v22 }
  0x9b   :  { %1510 = vtanh.f32 %v96_v24  ;;  %v1434_v30 = vmul.f32 -1.442695, %v96_v24 }
  0x9c   :  { %1512 = vtanh.f32 %v63_v26  ;;  %v1435_v26 = vld [vmem:[%s2083_s0 + $0x8] sm:$0xf] }
  0x9d   :  { %1514 = vpow2.f32 %v1434_v30 }
  0x9e   :  { %1516 = vpow2.f32 %v1433_v31 }
  0xa0   :  { %v94_v27 = vpop.f32.mrf.mxu1 }
  0xa1   :  { %v1511_v28 = vpop.eup %1510  ;;  %v216_v27 = vunpack.c.l.bf16 %v1435_v26 }
  0xa2   :  { %166 = vrot.lane.b32.xlu0 %v1511_v28, %s1641_s9  ;;  %v1513_v29 = vpop.eup %1512 }
  0xa3   :  { %v1515_v32 = vpop.eup %1514 }
  0xa4   :  { %v143_v33 = vadd.f32 1.0, %v1515_v32  ;;  %v1517_v34 = vpop.eup %1516 }
  0xa5   :  { %v101_v35 = vadd.f32 1.0, %v1517_v34 }
  0xa6   :  { %1518 = vrcp.f32 %v143_v33  ;;  %v155_v44 = vand.u32 2147483648, %v143_v33  ;;  %vm149_vm3 = vweird.f32 %v143_v33  ;;  %v153_v45 = vand.u32 2147483647, %v143_v33 }
  0xa7   :  { %1520 = vrcp.f32 %v101_v35  ;;  %v113_v53 = vand.u32 2147483648, %v101_v35  ;;  %vm107_vm7 = vweird.f32 %v101_v35  ;;  %v111_v54 = vand.u32 2147483647, %v101_v35 }
  0xa8   :  { %v156_v48 = vor.u32 1.1754944e-38, %v155_v44  ;;  %vm154_vm5 = vcmp.eq.f32.partialorder %v153_v45, 8.507059e+37 }
  0xa9   :  { %v114_v56 = vor.u32 1.1754944e-38, %v113_v53  ;;  %vm112_vm9 = vcmp.eq.f32.partialorder %v111_v54, 8.507059e+37 }
  0xaa   :  { %124 = vrot.lane.b32.xlu0 %v1513_v29, %s1641_s9 }
  0xac   :  { %v1519_v36 = vpop.eup %1518 }
  0xad   :  { %v145_v37 = vmul.f32 %v1519_v36, %v143_v33  ;;  %v1521_v39 = vpop.eup %1520  ;;  %vm150_vm2 = vweird.f32 %v1519_v36 }
  0xae   :  { %v103_v40 = vmul.f32 %v1521_v39, %v101_v35  ;;  %vm151_vm4 = vmor %vm149_vm3, %vm150_vm2  ;;  %vm108_vm6 = vweird.f32 %v1521_v39 }
  0xaf   :  { %v146_v38 = vsub.f32 1.0, %v145_v37  ;;  %vm109_vm8 = vmor %vm107_vm7, %vm108_vm6 }
  0xb0   :  { %v104_v42 = vsub.f32 1.0, %v103_v40 }
  0xb1   :  { %v147_v41 = vmul.f32 %v1519_v36, %v146_v38 }
  0xb2   :  { %v105_v46 = vmul.f32 %v1521_v39, %v104_v42 }
  0xb3   :  { %v148_v43 = vadd.f32 %v1519_v36, %v147_v41 }
  0xb4   :  { %v106_v51 = vadd.f32 %v1521_v39, %v105_v46 }
  0xb5   :  { %v152_v47 = vsel %vm151_vm4, %v1519_v36, %v148_v43 }
  0xb6   :  { %v157_v49 = vsel %vm154_vm5, %v156_v48, %v152_v47  ;;  %v110_v55 = vsel %vm109_vm8, %v1521_v39, %v106_v51 }
  0xb7   :  { %v115_v57 = vsel %vm112_vm9, %v114_v56, %v110_v55  ;;  %v164_v2 = vmul.f32 %v162_v0, %v157_v49 }
  0xb8   :  { %v122_v61 = vmul.f32 %v120_v60, %v115_v57 }
 0x114   :  { %v167_v50 = vpop.permute.xlu0 %166 }
 0x115   :  { %v169_v52 = vmul.f32 %v167_v50, %v157_v49 }
 0x117   :  { %171 = vrot.lane.b32.xlu1 %v169_v52, %s1640_s1 }
 0x11c   :  { %v125_v58 = vpop.permute.xlu0 %124 }
 0x11d   :  { %v127_v59 = vmul.f32 %v125_v58, %v115_v57 }
 0x11f   :  { %129 = vrot.lane.b32.xlu2 %v127_v59, %s1640_s1 }
 0x179   :  { %v130_v62 = vpop.permute.xlu2 %129 }
 0x17a   :  { %v132_v63 = vadd.f32 %v130_v62, %v122_v61 }
 0x17c   :  { %1522 = vtanh.f32 %v132_v63 }
 0x182   :  { %v1523_v1 = vpop.eup %1522 }
 0x183   :  { %135 = vrot.lane.b32.xlu1 %v1523_v1, %s1641_s9 }
 0x189   :  { %v172_v4 = vpop.permute.xlu1 %171 }
 0x18a   :  { %v174_v5 = vadd.f32 %v172_v4, %v164_v2 }
 0x18c   :  { %1524 = vtanh.f32 %v174_v5  ;;  %199 = vrot.lane.b32.xlu1 %v174_v5, %s1642_s10 }
 0x192   :  { %v1525_v6 = vpop.eup %1524 }
 0x193   :  { %177 = vrot.lane.b32.xlu0 %v1525_v6, %s1641_s9 }
 0x1f5   :  { %v136_v7 = vpop.permute.xlu1 %135 }
 0x1f6   :  { %v1739_v10 = vmul.f32 %v136_v7, %v115_v57 }
 0x1f8   :  { %v181_v11 = vpack.c.bf16 %v1739_v10, %v1739_v10 }
 0x1fa   :  { %183 = vrot.lane.b32.xlu0 %v181_v11, %s1640_s1 }
 0x1fe   :  { %v200_v12 = vpop.permute.xlu1 %199 }
 0x1ff   :  { %202 = vst.msk [vmem:[#allocation5] sm:$0xff] %vm20_vm1, %v200_v12 }
 0x202   :  { %194 = vrot.lane.b32.xlu0 %v132_v63, %s1642_s10 }
 0x205   :  { %v178_v14 = vpop.permute.xlu0 %177 }
 0x206   :  { %v1746_v15 = vmul.f32 %v178_v14, %v157_v49  ;;  %v298_v34 = vld [vmem:[#allocation5] sm:$0xff] }
 0x208   :  { %v187_v16 = vpack.c.bf16 %v1746_v15, %v1746_v15 }
 0x20a   :  { %189 = vrot.lane.b32.xlu2 %v187_v16, %s1640_s1 }
 0x264   :  { %v190_v17 = vpop.permute.xlu2 %189 }
 0x265   :  { %192 = vst.msk [vmem:[#allocation4] sm:$0xf] %vm18_vm0, %v190_v17 }
 0x26c   :  { %v184_v18 = vpop.permute.xlu0 %183  ;;  %v238_v19 = vld [vmem:[#allocation4] sm:$0xf] }
 0x26d   :  { %186 = vst.msk [vmem:[#allocation2] sm:$0xf] %vm18_vm0, %v184_v18  ;;  %1438 = vmatmul.msk.bf16.vlgmr.msra.gmra.mxu3 %vm20_vm1, %v238_v19 }
 0x26e   :  { %700 = vmatpush.bf16.msra.mxu3 %v1677_v3 }
 0x272   :  { %701 = vmatpush.bf16.msra.mxu3 %v1691_v8 }
 0x274   :  { %v195_v20 = vpop.permute.xlu0 %194  ;;  %v217_v21 = vld [vmem:[#allocation2] sm:$0xf] }
 0x275   :  { %197 = vst.msk [vmem:[#allocation3] sm:$0xff] %vm20_vm1, %v195_v20  ;;  %1436 = vmatmul.msk.bf16.vlgmr.msra.gmra.mxu2 %vm20_vm1, %v217_v21 }
 0x276   :  { %543 = vmatpush.bf16.msra.mxu2 %v1677_v3 }
 0x27a   :  { %544 = vmatpush.bf16.msra.mxu2 %v1691_v8 }
 0x27c   :  { %v256_v35 = vld [vmem:[#allocation3] sm:$0xff] }
 0x2f0   :  { %v251_v24 = vpop.f32.mrf.mxu3 }
 0x2f1   :  { %v255_v25 = vadd.f32 %v251_v24, %v237_v23 }
 0x2f3   :  { %1526 = vtanh.f32 %v255_v25  ;;  %v1440_v36 = vmul.f32 -1.442695, %v255_v25 }
 0x2f8   :  { %v230_v28 = vpop.f32.mrf.mxu2  ;;  %v253_v29 = vpop.f32.mrf.mxu3 }
 0x2f9   :  { %v1527_v30 = vpop.eup %1526  ;;  %v234_v31 = vadd.f32 %v230_v28, %v216_v27 }
 0x2fa   :  { %325 = vrot.lane.b32.xlu2 %v1527_v30, %s1641_s9 }
 0x2fb   :  { %1528 = vtanh.f32 %v234_v31  ;;  %v1439_v42 = vmul.f32 -1.442695, %v234_v31 }
 0x2fc   :  { %1530 = vpow2.f32 %v1440_v36 }
 0x300   :  { %v232_v32 = vpop.f32.mrf.mxu2 }
 0x301   :  { %v1529_v33 = vpop.eup %1528  ;;  %v1443_v32 = vld [vmem:[%s2083_s0 + $0x2c] sm:$0xf] }
 0x302   :  { %283 = vrot.lane.b32.xlu1 %v1529_v33, %s1641_s9  ;;  %320 = vrot.lane.b32.xlu2 %v298_v34, %s1640_s1  ;;  %v1531_v37 = vpop.eup %1530  ;;  %v395_v33 = vunpack.c.l.bf16 %v1443_v32 }
 0x303   :  { %v302_v38 = vadd.f32 1.0, %v1531_v37 }
 0x305   :  { %1532 = vrcp.f32 %v302_v38  ;;  %v314_v45 = vand.u32 2147483648, %v302_v38  ;;  %vm308_vm11 = vweird.f32 %v302_v38  ;;  %v312_v46 = vand.u32 2147483647, %v302_v38 }
 0x306   :  { %1534 = vpow2.f32 %v1439_v42 }
 0x307   :  { %v315_v49 = vor.u32 1.1754944e-38, %v314_v45  ;;  %vm313_vm13 = vcmp.eq.f32.partialorder %v312_v46, 8.507059e+37 }
 0x30a   :  { %278 = vrot.lane.b32.xlu1 %v256_v35, %s1640_s1 }
 0x30b   :  { %v1533_v39 = vpop.eup %1532 }
 0x30c   :  { %v304_v40 = vmul.f32 %v1533_v39, %v302_v38  ;;  %vm309_vm10 = vweird.f32 %v1533_v39  ;;  %v1535_v47 = vpop.eup %1534  ;;  %v1441_v38 = vld [vmem:[%s2083_s0 + $0x10] sm:$0xf] }
 0x30d   :  { %vm310_vm12 = vmor %vm308_vm11, %vm309_vm10  ;;  %v260_v50 = vadd.f32 1.0, %v1535_v47 }
 0x30e   :  { %v305_v41 = vsub.f32 1.0, %v304_v40 }
 0x30f   :  { %1536 = vrcp.f32 %v260_v50  ;;  %v272_v59 = vand.u32 2147483648, %v260_v50  ;;  %vm266_vm15 = vweird.f32 %v260_v50  ;;  %v270_v60 = vand.u32 2147483647, %v260_v50 }
 0x310   :  { %v306_v43 = vmul.f32 %v1533_v39, %v305_v41 }
 0x311   :  { %v273_v62 = vor.u32 1.1754944e-38, %v272_v59  ;;  %vm271_vm3 = vcmp.eq.f32.partialorder %v270_v60, 8.507059e+37 }
 0x312   :  { %v307_v44 = vadd.f32 %v1533_v39, %v306_v43 }
 0x314   :  { %v311_v48 = vsel %vm310_vm12, %v1533_v39, %v307_v44  ;;  %v374_v39 = vunpack.c.l.bf16 %v1441_v38 }
 0x315   :  { %v316_v52 = vsel %vm313_vm13, %v315_v49, %v311_v48  ;;  %v1537_v54 = vpop.eup %1536 }
 0x316   :  { %v262_v55 = vmul.f32 %v1537_v54, %v260_v50  ;;  %vm267_vm14 = vweird.f32 %v1537_v54 }
 0x317   :  { %vm268_vm2 = vmor %vm266_vm15, %vm267_vm14 }
 0x318   :  { %v263_v56 = vsub.f32 1.0, %v262_v55 }
 0x31a   :  { %v264_v57 = vmul.f32 %v1537_v54, %v263_v56 }
 0x31c   :  { %v265_v58 = vadd.f32 %v1537_v54, %v264_v57 }
 0x31e   :  { %v269_v61 = vsel %vm268_vm2, %v1537_v54, %v265_v58 }
 0x31f   :  { %v274_v63 = vsel %vm271_vm3, %v273_v62, %v269_v61 }
 0x354   :  { %v326_v51 = vpop.permute.xlu2 %325 }
 0x355   :  { %v328_v53 = vmul.f32 %v326_v51, %v316_v52 }
 0x357   :  { %330 = vrot.lane.b32.xlu0 %v328_v53, %s1640_s1 }
 0x35c   :  { %v321_v2 = vpop.permute.xlu2 %320 }
 0x35d   :  { %v323_v4 = vmul.f32 %v321_v2, %v316_v52 }
 0x374   :  { %v284_v0 = vpop.permute.xlu1 %283 }
 0x375   :  { %v286_v1 = vmul.f32 %v284_v0, %v274_v63 }
 0x377   :  { %288 = vrot.lane.b32.xlu2 %v286_v1, %s1640_s1 }
 0x37c   :  { %v279_v7 = vpop.permute.xlu1 %278 }
 0x37d   :  { %v281_v11 = vmul.f32 %v279_v7, %v274_v63 }
 0x3c9   :  { %v331_v5 = vpop.permute.xlu0 %330 }
 0x3ca   :  { %v333_v6 = vadd.f32 %v331_v5, %v323_v4 }
 0x3cc   :  { %1538 = vtanh.f32 %v333_v6 }
 0x3d1   :  { %v289_v12 = vpop.permute.xlu2 %288 }
 0x3d2   :  { %v1539_v14 = vpop.eup %1538  ;;  %v291_v16 = vadd.f32 %v289_v12, %v281_v11 }
 0x3d3   :  { %336 = vrot.lane.b32.xlu0 %v1539_v14, %s1641_s9 }
 0x3d4   :  { %1540 = vtanh.f32 %v291_v16 }
 0x3da   :  { %v1541_v17 = vpop.eup %1540 }
 0x3db   :  { %294 = vrot.lane.b32.xlu1 %v1541_v17, %s1641_s9 }
 0x3e3   :  { %358 = vrot.lane.b32.xlu1 %v333_v6, %s1642_s10 }
 0x445   :  { %v337_v18 = vpop.permute.xlu0 %336 }
 0x446   :  { %v1775_v19 = vmul.f32 %v337_v18, %v316_v52 }
 0x448   :  { %v346_v20 = vpack.c.bf16 %v1775_v19, %v1775_v19 }
 0x44a   :  { %348 = vrot.lane.b32.xlu2 %v346_v20, %s1640_s1 }
 0x44d   :  { %v295_v21 = vpop.permute.xlu1 %294 }
 0x44e   :  { %v1780_v22 = vmul.f32 %v295_v21, %v274_v63 }
 0x450   :  { %v340_v23 = vpack.c.bf16 %v1780_v22, %v1780_v22 }
 0x452   :  { %342 = vrot.lane.b32.xlu0 %v340_v23, %s1640_s1 }
 0x455   :  { %v359_v24 = vpop.permute.xlu1 %358 }
 0x456   :  { %361 = vst.msk [vmem:[#allocation5] sm:$0xff] %vm20_vm1, %v359_v24 }
 0x45a   :  { %353 = vrot.lane.b32.xlu0 %v291_v16, %s1642_s10 }
 0x45d   :  { %v456_v25 = vld [vmem:[#allocation5] sm:$0xff] }
 0x45e   :  { %478 = vrot.lane.b32.xlu1 %v456_v25, %s1640_s1 }
 0x4a4   :  { %v349_v26 = vpop.permute.xlu2 %348 }
 0x4a5   :  { %351 = vst.msk [vmem:[#allocation4] sm:$0xf] %vm18_vm0, %v349_v26 }
 0x4ac   :  { %v396_v27 = vld [vmem:[#allocation4] sm:$0xf] }
 0x4ad   :  { %1444 = vmatmul.msk.bf16.vlgmr.msra.gmra.mxu1 %vm20_vm1, %v396_v27 }
 0x4ae   :  { %1032 = vmatpush.bf16.msra.mxu1 %v1693_v9 }
 0x4b2   :  { %1033 = vmatpush.bf16.msra.mxu1 %v1707_v13 }
 0x4c4   :  { %v343_v28 = vpop.permute.xlu0 %342 }
 0x4c5   :  { %345 = vst.msk [vmem:[#allocation2] sm:$0xf] %vm18_vm0, %v343_v28 }
 0x4cc   :  { %v354_v29 = vpop.permute.xlu0 %353  ;;  %v375_v30 = vld [vmem:[#allocation2] sm:$0xf] }
 0x4cd   :  { %356 = vst.msk [vmem:[#allocation3] sm:$0xff] %vm20_vm1, %v354_v29  ;;  %1442 = vmatmul.msk.bf16.vlgmr.msrb.gmra.mxu2 %vm20_vm1, %v375_v30 }
 0x4ce   :  { %856 = vmatpush.bf16.msrb.mxu2 %v1677_v3 }
 0x4d0   :  { %v479_v16 = vpop.permute.xlu1 %478 }
 0x4d2   :  { %857 = vmatpush.bf16.msrb.mxu2 %v1691_v8 }
 0x4d4   :  { %v414_v31 = vld [vmem:[#allocation3] sm:$0xff] }
 0x4d5   :  { %436 = vrot.lane.b32.xlu1 %v414_v31, %s1640_s1 }
 0x52a   :  { %v409_v34 = vpop.f32.mrf.mxu1 }
 0x52b   :  { %v413_v35 = vadd.f32 %v409_v34, %v395_v33 }
 0x52d   :  { %1542 = vtanh.f32 %v413_v35  ;;  %v1446_v44 = vmul.f32 -1.442695, %v413_v35 }
 0x532   :  { %v411_v36 = vpop.f32.mrf.mxu1 }
 0x533   :  { %v1543_v37 = vpop.eup %1542 }
 0x534   :  { %483 = vrot.lane.b32.xlu2 %v1543_v37, %s1641_s9 }
 0x547   :  { %v437_v23 = vpop.permute.xlu1 %436 }
 0x550   :  { %v388_v40 = vpop.f32.mrf.mxu2 }
 0x551   :  { %v392_v41 = vadd.f32 %v388_v40, %v374_v39 }
 0x553   :  { %1544 = vtanh.f32 %v392_v41  ;;  %v1445_v59 = vmul.f32 -1.442695, %v392_v41 }
 0x554   :  { %1546 = vpow2.f32 %v1446_v44 }
 0x558   :  { %v390_v42 = vpop.f32.mrf.mxu2 }
 0x559   :  { %v1545_v43 = vpop.eup %1544  ;;  %v1837_v42 = vld [vmem:[%s2083_s0 + $0x24] sm:$0xff]  }
 0x55a   :  { %441 = vrot.lane.b32.xlu0 %v1545_v43, %s1641_s9  ;;  %v1547_v45 = vpop.eup %1546  ;;  %v553_v43 = vunpack.c.l.bf16 %v1837_v42 }
 0x55b   :  { %v460_v46 = vadd.f32 1.0, %v1547_v45 }
 0x55d   :  { %1548 = vrcp.f32 %v460_v46  ;;  %v472_v52 = vand.u32 2147483648, %v460_v46  ;;  %vm466_vm5 = vweird.f32 %v460_v46  ;;  %v470_v53 = vand.u32 2147483647, %v460_v46 }
 0x55e   :  { %1550 = vpow2.f32 %v1445_v59 }
 0x55f   :  { %v473_v55 = vor.u32 1.1754944e-38, %v472_v52  ;;  %vm471_vm7 = vcmp.eq.f32.partialorder %v470_v53, 8.507059e+37 }
 0x563   :  { %v1549_v47 = vpop.eup %1548 }
 0x564   :  { %v462_v48 = vmul.f32 %v1549_v47, %v460_v46  ;;  %vm467_vm4 = vweird.f32 %v1549_v47  ;;  %v1551_v60 = vpop.eup %1550 }
 0x565   :  { %vm468_vm6 = vmor %vm466_vm5, %vm467_vm4  ;;  %v418_v61 = vadd.f32 1.0, %v1551_v60 }
 0x566   :  { %v463_v49 = vsub.f32 1.0, %v462_v48 }
 0x567   :  { %1552 = vrcp.f32 %v418_v61  ;;  %v430_v4 = vand.u32 2147483648, %v418_v61  ;;  %vm424_vm9 = vweird.f32 %v418_v61  ;;  %v428_v5 = vand.u32 2147483647, %v418_v61 }
 0x568   :  { %v464_v50 = vmul.f32 %v1549_v47, %v463_v49 }
 0x569   :  { %v431_v7 = vor.u32 1.1754944e-38, %v430_v4  ;;  %vm429_vm11 = vcmp.eq.f32.partialorder %v428_v5, 8.507059e+37 }
 0x56a   :  { %v465_v51 = vadd.f32 %v1549_v47, %v464_v50  ;;  %v1844_v50 = vld [vmem:[%s2083_s0 + $0x18] sm:$0xff]  }
 0x56b   :  { %v532_v52 = vunpack.c.l.bf16 %v1844_v50 }
 0x56c   :  { %v469_v54 = vsel %vm468_vm6, %v1549_v47, %v465_v51 }
 0x56d   :  { %v474_v57 = vsel %vm471_vm7, %v473_v55, %v469_v54  ;;  %v1553_v62 = vpop.eup %1552 }
 0x56e   :  { %v420_v63 = vmul.f32 %v1553_v62, %v418_v61  ;;  %vm425_vm8 = vweird.f32 %v1553_v62  ;;  %v481_v17 = vmul.f32 %v479_v16, %v474_v57 }
 0x56f   :  { %vm426_vm10 = vmor %vm424_vm9, %vm425_vm8 }
 0x570   :  { %v421_v0 = vsub.f32 1.0, %v420_v63 }
 0x572   :  { %v422_v1 = vmul.f32 %v1553_v62, %v421_v0 }
 0x574   :  { %v423_v2 = vadd.f32 %v1553_v62, %v422_v1 }
 0x576   :  { %v427_v6 = vsel %vm426_vm10, %v1553_v62, %v423_v2 }
 0x577   :  { %v432_v11 = vsel %vm429_vm11, %v431_v7, %v427_v6 }
 0x578   :  { %v439_v24 = vmul.f32 %v437_v23, %v432_v11 }
 0x58e   :  { %v484_v56 = vpop.permute.xlu2 %483 }
 0x58f   :  { %v486_v58 = vmul.f32 %v484_v56, %v474_v57 }
 0x591   :  { %488 = vrot.lane.b32.xlu2 %v486_v58, %s1640_s1 }
 0x5cc   :  { %v442_v12 = vpop.permute.xlu0 %441 }
 0x5cd   :  { %v444_v14 = vmul.f32 %v442_v12, %v432_v11 }
 0x5cf   :  { %446 = vrot.lane.b32.xlu2 %v444_v14, %s1640_s1 }
 0x5eb   :  { %v489_v18 = vpop.permute.xlu2 %488 }
 0x5ec   :  { %v491_v20 = vadd.f32 %v489_v18, %v481_v17 }
 0x5ee   :  { %1554 = vtanh.f32 %v491_v20 }
 0x5f4   :  { %v1555_v21 = vpop.eup %1554 }
 0x5f5   :  { %494 = vrot.lane.b32.xlu0 %v1555_v21, %s1641_s9 }
 0x629   :  { %v447_v25 = vpop.permute.xlu2 %446 }
 0x62a   :  { %v449_v26 = vadd.f32 %v447_v25, %v439_v24 }
 0x62c   :  { %1556 = vtanh.f32 %v449_v26 }
 0x632   :  { %v1557_v27 = vpop.eup %1556 }
 0x633   :  { %452 = vrot.lane.b32.xlu1 %v1557_v27, %s1641_s9 }
 0x63b   :  { %516 = vrot.lane.b32.xlu1 %v491_v20, %s1642_s10 }
 0x667   :  { %v495_v28 = vpop.permute.xlu0 %494 }
 0x668   :  { %v1811_v29 = vmul.f32 %v495_v28, %v474_v57 }
 0x66a   :  { %v504_v30 = vpack.c.bf16 %v1811_v29, %v1811_v29 }
 0x66c   :  { %506 = vrot.lane.b32.xlu2 %v504_v30, %s1640_s1 }
 0x6a5   :  { %v453_v31 = vpop.permute.xlu1 %452 }
 0x6a6   :  { %v1816_v32 = vmul.f32 %v453_v31, %v432_v11 }
 0x6a8   :  { %v498_v33 = vpack.c.bf16 %v1816_v32, %v1816_v32 }
 0x6aa   :  { %500 = vrot.lane.b32.xlu0 %v498_v33, %s1640_s1 }
 0x6ad   :  { %v517_v34 = vpop.permute.xlu1 %516 }
 0x6ae   :  { %519 = vst.msk [vmem:[#allocation5] sm:$0xff] %vm20_vm1, %v517_v34 }
 0x6b2   :  { %511 = vrot.lane.b32.xlu0 %v449_v26, %s1642_s10 }
 0x6b5   :  { %v614_v35 = vld [vmem:[#allocation5] sm:$0xff] }
 0x6b6   :  { %636 = vrot.lane.b32.xlu1 %v614_v35, %s1640_s1 }
 0x6c6   :  { %v507_v36 = vpop.permute.xlu2 %506 }
 0x6c7   :  { %509 = vst.msk [vmem:[#allocation4] sm:$0xf] %vm18_vm0, %v507_v36 }
 0x6ce   :  { %v554_v37 = vld [vmem:[#allocation4] sm:$0xf] }
 0x6cf   :  { %1450 = vmatmul.msk.bf16.vlgmr.msrb.gmra.mxu3 %vm20_vm1, %v554_v37 }
 0x6d0   :  { %876 = vmatpush.bf16.msrb.mxu3 %v1693_v9 }
 0x6d4   :  { %877 = vmatpush.bf16.msrb.mxu3 %v1707_v13 }
 0x71c   :  { %v501_v38 = vpop.permute.xlu0 %500 }
 0x71d   :  { %503 = vst.msk [vmem:[#allocation2] sm:$0xf] %vm18_vm0, %v501_v38 }
 0x724   :  { %v512_v39 = vpop.permute.xlu0 %511  ;;  %v533_v40 = vld [vmem:[#allocation2] sm:$0xf] }
 0x725   :  { %514 = vst.msk [vmem:[#allocation3] sm:$0xff] %vm20_vm1, %v512_v39  ;;  %1448 = vmatmul.msk.bf16.vlgmr.msra.gmra.mxu2 %vm20_vm1, %v533_v40 }
 0x726   :  { %1168 = vmatpush.bf16.msra.mxu2 %v1677_v3 }
 0x728   :  { %v637_v11 = vpop.permute.xlu1 %636 }
 0x72a   :  { %1169 = vmatpush.bf16.msra.mxu2 %v1691_v8 }
 0x72c   :  { %v572_v41 = vld [vmem:[#allocation3] sm:$0xff] }
 0x72d   :  { %594 = vrot.lane.b32.xlu1 %v572_v41, %s1640_s1 }
 0x752   :  { %v567_v44 = vpop.f32.mrf.mxu3 }
 0x753   :  { %v571_v45 = vadd.f32 %v567_v44, %v553_v43 }
 0x755   :  { %1558 = vtanh.f32 %v571_v45  ;;  %v1452_v3 = vmul.f32 -1.442695, %v571_v45 }
 0x757   :  { %1560 = vpow2.f32 %v1452_v3 }
 0x75a   :  { %v569_v46 = vpop.f32.mrf.mxu3 }
 0x75b   :  { %v1559_v47 = vpop.eup %1558 }
 0x75c   :  { %641 = vrot.lane.b32.xlu2 %v1559_v47, %s1641_s9 }
 0x75d   :  { %v1561_v8 = vpop.eup %1560 }
 0x75e   :  { %v618_v48 = vadd.f32 1.0, %v1561_v8 }
 0x760   :  { %1562 = vrcp.f32 %v618_v48  ;;  %v630_v59 = vand.u32 2147483648, %v618_v48  ;;  %vm624_vm13 = vweird.f32 %v618_v48  ;;  %v628_v61 = vand.u32 2147483647, %v618_v48 }
 0x762   :  { %v631_v63 = vor.u32 1.1754944e-38, %v630_v59  ;;  %vm629_vm15 = vcmp.eq.f32.partialorder %v628_v61, 8.507059e+37 }
 0x766   :  { %v1563_v49 = vpop.eup %1562 }
 0x767   :  { %v620_v51 = vmul.f32 %v1563_v49, %v618_v48  ;;  %vm625_vm12 = vweird.f32 %v1563_v49 }
 0x768   :  { %vm626_vm14 = vmor %vm624_vm13, %vm625_vm12 }
 0x769   :  { %v621_v53 = vsub.f32 1.0, %v620_v51 }
 0x76b   :  { %v622_v56 = vmul.f32 %v1563_v49, %v621_v53 }
 0x76d   :  { %v623_v57 = vadd.f32 %v1563_v49, %v622_v56 }
 0x76f   :  { %v627_v62 = vsel %vm626_vm14, %v1563_v49, %v623_v57  ;;  %v709_v49 = vunpack.c.h.bf16 %v1844_v50 }
 0x770   :  { %v632_v1 = vsel %vm629_vm15, %v631_v63, %v627_v62 }
 0x771   :  { %v639_v14 = vmul.f32 %v637_v11, %v632_v1 }
 0x79f   :  { %v595_v33 = vpop.permute.xlu1 %594 }
 0x7a8   :  { %v546_v54 = vpop.f32.mrf.mxu2 }
 0x7a9   :  { %v550_v55 = vadd.f32 %v546_v54, %v532_v52 }
 0x7ab   :  { %1564 = vtanh.f32 %v550_v55  ;;  %v1451_v4 = vmul.f32 -1.442695, %v550_v55 }
 0x7ad   :  { %1566 = vpow2.f32 %v1451_v4 }
 0x7b0   :  { %v548_v58 = vpop.f32.mrf.mxu2 }
 0x7b1   :  { %v1565_v60 = vpop.eup %1564 }
 0x7b2   :  { %599 = vrot.lane.b32.xlu0 %v1565_v60, %s1641_s9 }
 0x7b3   :  { %v1567_v5 = vpop.eup %1566 }
 0x7b4   :  { %v576_v6 = vadd.f32 1.0, %v1567_v5 }
 0x7b6   :  { %v642_v0 = vpop.permute.xlu2 %641  ;;  %1568 = vrcp.f32 %v576_v6  ;;  %v588_v24 = vand.u32 2147483648, %v576_v6  ;;  %vm582_vm3 = vweird.f32 %v576_v6  ;;  %v586_v25 = vand.u32 2147483647, %v576_v6 }
 0x7b7   :  { %v644_v2 = vmul.f32 %v642_v0, %v632_v1 }
 0x7b8   :  { %v589_v27 = vor.u32 1.1754944e-38, %v588_v24  ;;  %vm587_vm5 = vcmp.eq.f32.partialorder %v586_v25, 8.507059e+37 }
 0x7b9   :  { %646 = vrot.lane.b32.xlu2 %v644_v2, %s1640_s1 }
 0x7bc   :  { %v1569_v7 = vpop.eup %1568 }
 0x7bd   :  { %v578_v12 = vmul.f32 %v1569_v7, %v576_v6  ;;  %vm583_vm2 = vweird.f32 %v1569_v7  ;;  %v1453_v6 = vld [vmem:[%s2083_s0 + $0x20] sm:$0xf] }
 0x7be   :  { %vm584_vm4 = vmor %vm582_vm3, %vm583_vm2 }
 0x7bf   :  { %v579_v18 = vsub.f32 1.0, %v578_v12 }
 0x7c1   :  { %v580_v20 = vmul.f32 %v1569_v7, %v579_v18 }
 0x7c3   :  { %v581_v23 = vadd.f32 %v1569_v7, %v580_v20 }
 0x7c5   :  { %v585_v26 = vsel %vm584_vm4, %v1569_v7, %v581_v23  ;;  %v689_v7 = vunpack.c.l.bf16 %v1453_v6 }
 0x7c6   :  { %v590_v28 = vsel %vm587_vm5, %v589_v27, %v585_v26 }
 0x7c7   :  { %v597_v34 = vmul.f32 %v595_v33, %v590_v28 }
 0x813   :  { %v647_v16 = vpop.permute.xlu2 %646 }
 0x814   :  { %v649_v17 = vadd.f32 %v647_v16, %v639_v14 }
 0x816   :  { %1570 = vtanh.f32 %v649_v17 }
 0x81c   :  { %v1571_v21 = vpop.eup %1570 }
 0x81d   :  { %652 = vrot.lane.b32.xlu0 %v1571_v21, %s1641_s9 }
 0x824   :  { %v600_v30 = vpop.permute.xlu0 %599 }
 0x825   :  { %v602_v31 = vmul.f32 %v600_v30, %v590_v28 }
 0x827   :  { %604 = vrot.lane.b32.xlu2 %v602_v31, %s1640_s1 }
 0x881   :  { %v605_v35 = vpop.permute.xlu2 %604 }
 0x882   :  { %v607_v36 = vadd.f32 %v605_v35, %v597_v34 }
 0x884   :  { %1572 = vtanh.f32 %v607_v36 }
 0x88a   :  { %v1573_v37 = vpop.eup %1572 }
 0x88b   :  { %610 = vrot.lane.b32.xlu1 %v1573_v37, %s1641_s9 }
 0x88f   :  { %v653_v38 = vpop.permute.xlu0 %652 }
 0x890   :  { %v1852_v39 = vmul.f32 %v653_v38, %v632_v1 }
 0x892   :  { %v662_v40 = vpack.c.bf16 %v1852_v39, %v1852_v39 }
 0x893   :  { %674 = vrot.lane.b32.xlu1 %v649_v17, %s1642_s10 }
 0x894   :  { %664 = vrot.lane.b32.xlu2 %v662_v40, %s1640_s1 }
 0x89b   :  { %669 = vrot.lane.b32.xlu1 %v607_v36, %s1642_s10 }
 0x8ee   :  { %v665_v41 = vpop.permute.xlu2 %664 }
 0x8ef   :  { %667 = vst.msk [vmem:[#allocation4] sm:$0xf] %vm18_vm0, %v665_v41 }
 0x8f6   :  { %v710_v43 = vld [vmem:[#allocation4] sm:$0xf] }
 0x8f7   :  { %1456 = vmatmul.msk.bf16.vlgmr.msrb.gmra.mxu1 %vm20_vm1, %v710_v43 }
 0x8fd   :  { %v611_v44 = vpop.permute.xlu1 %610 }
 0x8fe   :  { %v1861_v45 = vmul.f32 %v611_v44, %v590_v28 }
 0x900   :  { %v656_v46 = vpack.c.bf16 %v1861_v45, %v1861_v45 }
 0x902   :  { %658 = vrot.lane.b32.xlu0 %v656_v46, %s1640_s1 }
 0x905   :  { %v675_v47 = vpop.permute.xlu1 %674 }
 0x906   :  { %677 = vst.msk [vmem:[#allocation5] sm:$0xff] %vm20_vm1, %v675_v47 }
 0x90d   :  { %v670_v3 = vpop.permute.xlu1 %669  ;;  %v770_v8 = vld [vmem:[#allocation5] sm:$0xff] }
 0x90e   :  { %672 = vst.msk [vmem:[#allocation3] sm:$0xff] %vm20_vm1, %v670_v3  ;;  %792 = vrot.lane.b32.xlu0 %v770_v8, %s1640_s1 }
 0x915   :  { %v728_v48 = vld [vmem:[#allocation3] sm:$0xff] }
 0x916   :  { %750 = vrot.lane.b32.xlu1 %v728_v48, %s1640_s1 }
 0x974   :  { %v723_v51 = vpop.f32.mrf.mxu1  ;;  %v659_v52 = vpop.permute.xlu0 %658 }
 0x975   :  { %v727_v53 = vadd.f32 %v723_v51, %v709_v49  ;;  %661 = vst.msk [vmem:[#allocation2] sm:$0xf] %vm18_vm0, %v659_v52 }
 0x977   :  { %1574 = vtanh.f32 %v727_v53  ;;  %v1458_v57 = vmul.f32 -1.442695, %v727_v53 }
 0x979   :  { %1576 = vpow2.f32 %v1458_v57 }
 0x97c   :  { %v725_v54 = vpop.f32.mrf.mxu1  ;;  %v690_v55 = vld [vmem:[#allocation2] sm:$0xf] }
 0x97d   :  { %v1575_v56 = vpop.eup %1574  ;;  %1454 = vmatmul.msk.bf16.vlgmr.msra.gmra.mxu3 %vm20_vm1, %v690_v55 }
 0x97e   :  { %797 = vrot.lane.b32.xlu2 %v1575_v56, %s1641_s9  ;;  %1188 = vmatpush.bf16.msra.mxu3 %v1693_v9 }
 0x97f   :  { %v1577_v50 = vpop.eup %1576 }
 0x980   :  { %v774_v58 = vadd.f32 1.0, %v1577_v50  ;;  %v793_v17 = vpop.permute.xlu0 %792 }
 0x982   :  { %1189 = vmatpush.bf16.msra.mxu3 %v1707_v13  ;;  %1578 = vrcp.f32 %v774_v58  ;;  %v786_v0 = vand.u32 2147483648, %v774_v58  ;;  %vm780_vm7 = vweird.f32 %v774_v58  ;;  %v784_v1 = vand.u32 2147483647, %v774_v58 }
 0x984   :  { %v787_v4 = vor.u32 1.1754944e-38, %v786_v0  ;;  %vm785_vm9 = vcmp.eq.f32.partialorder %v784_v1, 8.507059e+37 }
 0x988   :  { %v1579_v59 = vpop.eup %1578  ;;  %v751_v47 = vpop.permute.xlu1 %750 }
 0x989   :  { %v776_v60 = vmul.f32 %v1579_v59, %v774_v58  ;;  %vm781_vm6 = vweird.f32 %v1579_v59 }
 0x98a   :  { %vm782_vm8 = vmor %vm780_vm7, %vm781_vm6 }
 0x98b   :  { %v777_v61 = vsub.f32 1.0, %v776_v60 }
 0x98d   :  { %v778_v62 = vmul.f32 %v1579_v59, %v777_v61 }
 0x98f   :  { %v779_v63 = vadd.f32 %v1579_v59, %v778_v62 }
 0x991   :  { %v783_v2 = vsel %vm782_vm8, %v1579_v59, %v779_v63  ;;  %v1461_v59 = vld [vmem:[%s2083_s0 + $0x14] sm:$0xf] }
 0x992   :  { %v788_v9 = vsel %vm785_vm9, %v787_v4, %v783_v2  ;;  %v865_v60 = vunpack.c.l.bf16 %v1461_v59 }
 0x993   :  { %v795_v18 = vmul.f32 %v793_v17, %v788_v9 }
 0x9d8   :  { %v798_v13 = vpop.permute.xlu2 %797 }
 0x9d9   :  { %v800_v5 = vmul.f32 %v798_v13, %v788_v9 }
 0x9db   :  { %802 = vrot.lane.b32.xlu2 %v800_v5, %s1640_s1 }
 0xa00   :  { %v703_v11 = vpop.f32.mrf.mxu3 }
 0xa01   :  { %v707_v12 = vadd.f32 %v703_v11, %v689_v7 }
 0xa03   :  { %1580 = vtanh.f32 %v707_v12  ;;  %v1457_v24 = vmul.f32 -1.442695, %v707_v12 }
 0xa08   :  { %v705_v14 = vpop.f32.mrf.mxu3 }
 0xa09   :  { %v1581_v16 = vpop.eup %1580 }
 0xa0a   :  { %755 = vrot.lane.b32.xlu0 %v1581_v16, %s1641_s9 }
 0xa35   :  { %v803_v20 = vpop.permute.xlu2 %802 }
 0xa36   :  { %v805_v21 = vadd.f32 %v803_v20, %v795_v18 }
 0xa38   :  { %1582 = vtanh.f32 %v805_v21 }
 0xa39   :  { %1584 = vpow2.f32 %v1457_v24  ;;  %v845_v24 = vunpack.c.h.bf16 %v1837_v42 }
 0xa3e   :  { %v1583_v23 = vpop.eup %1582 }
 0xa3f   :  { %808 = vrot.lane.b32.xlu0 %v1583_v23, %s1641_s9  ;;  %v1585_v25 = vpop.eup %1584 }
 0xa40   :  { %v732_v26 = vadd.f32 1.0, %v1585_v25 }
 0xa42   :  { %1586 = vrcp.f32 %v732_v26  ;;  %v744_v34 = vand.u32 2147483648, %v732_v26  ;;  %vm738_vm11 = vweird.f32 %v732_v26  ;;  %v742_v35 = vand.u32 2147483647, %v732_v26 }
 0xa44   :  { %v745_v37 = vor.u32 1.1754944e-38, %v744_v34  ;;  %vm743_vm13 = vcmp.eq.f32.partialorder %v742_v35, 8.507059e+37 }
 0xa48   :  { %v1587_v27 = vpop.eup %1586 }
 0xa49   :  { %v734_v28 = vmul.f32 %v1587_v27, %v732_v26  ;;  %vm739_vm10 = vweird.f32 %v1587_v27 }
 0xa4a   :  { %vm740_vm12 = vmor %vm738_vm11, %vm739_vm10 }
 0xa4b   :  { %v735_v30 = vsub.f32 1.0, %v734_v28 }
 0xa4d   :  { %v736_v31 = vmul.f32 %v1587_v27, %v735_v30 }
 0xa4f   :  { %v737_v33 = vadd.f32 %v1587_v27, %v736_v31 }
 0xa51   :  { %v741_v36 = vsel %vm740_vm12, %v1587_v27, %v737_v33 }
 0xa52   :  { %v746_v38 = vsel %vm743_vm13, %v745_v37, %v741_v36 }
 0xa53   :  { %v753_v3 = vmul.f32 %v751_v47, %v746_v38 }
 0xa7c   :  { %v756_v40 = vpop.permute.xlu0 %755 }
 0xa7d   :  { %v758_v41 = vmul.f32 %v756_v40, %v746_v38 }
 0xa7f   :  { %760 = vrot.lane.b32.xlu2 %v758_v41, %s1640_s1 }
 0xab1   :  { %v809_v43 = vpop.permute.xlu0 %808 }
 0xab2   :  { %v1883_v44 = vmul.f32 %v809_v43, %v788_v9 }
 0xab4   :  { %v818_v46 = vpack.c.bf16 %v1883_v44, %v1883_v44 }
 0xab6   :  { %820 = vrot.lane.b32.xlu1 %v818_v46, %s1640_s1 }
 0xabe   :  { %830 = vrot.lane.b32.xlu1 %v805_v21, %s1642_s10 }
 0xad9   :  { %v761_v8 = vpop.permute.xlu2 %760 }
 0xada   :  { %v763_v48 = vadd.f32 %v761_v8, %v753_v3 }
 0xadc   :  { %1588 = vtanh.f32 %v763_v48  ;;  %825 = vrot.lane.b32.xlu1 %v763_v48, %s1642_s10 }
 0xae2   :  { %v1589_v49 = vpop.eup %1588 }
 0xae3   :  { %766 = vrot.lane.b32.xlu2 %v1589_v49, %s1641_s9 }
 0xb28   :  { %v821_v51 = vpop.permute.xlu1 %820 }
 0xb29   :  { %823 = vst.msk [vmem:[#allocation4] sm:$0xf] %vm18_vm0, %v821_v51 }
 0xb30   :  { %v831_v52 = vpop.permute.xlu1 %830  ;;  %v866_v53 = vld [vmem:[#allocation4] sm:$0xf] }
 0xb31   :  { %833 = vst.msk [vmem:[#allocation5] sm:$0xff] %vm20_vm1, %v831_v52  ;;  %1462 = vmatmul.msk.bf16.vlgmr.msrb.gmra.mxu3 %vm20_vm1, %v866_v53 }
 0xb38   :  { %v926_v57 = vld [vmem:[#allocation5] sm:$0xff] }
 0xb3d   :  { %v767_v54 = vpop.permute.xlu2 %766 }
 0xb3e   :  { %v1894_v55 = vmul.f32 %v767_v54, %v746_v38 }
 0xb40   :  { %v812_v56 = vpack.c.bf16 %v1894_v55, %v1894_v55 }
 0xb42   :  { %814 = vrot.lane.b32.xlu0 %v812_v56, %s1640_s1 }
 0xb4a   :  { %948 = vrot.lane.b32.xlu0 %v926_v57, %s1640_s1 }
 0xb4e   :  { %v826_v50 = vpop.permute.xlu1 %825 }
 0xb4f   :  { %828 = vst.msk [vmem:[#allocation3] sm:$0xff] %vm20_vm1, %v826_v50 }
 0xb56   :  { %v884_v58 = vld [vmem:[#allocation3] sm:$0xff] }
 0xb57   :  { %906 = vrot.lane.b32.xlu1 %v884_v58, %s1640_s1 }
 0xbb4   :  { %v815_v61 = vpop.permute.xlu0 %814  ;;  %v879_v62 = vpop.f32.mrf.mxu3 }
 0xbb5   :  { %817 = vst.msk [vmem:[#allocation2] sm:$0xf] %vm18_vm0, %v815_v61  ;;  %v883_v63 = vadd.f32 %v879_v62, %v865_v60 }
 0xbb7   :  { %1590 = vtanh.f32 %v883_v63  ;;  %v1464_v4 = vmul.f32 -1.442695, %v883_v63 }
 0xbb9   :  { %1592 = vpow2.f32 %v1464_v4 }
 0xbbc   :  { %v881_v0 = vpop.f32.mrf.mxu3  ;;  %v846_v1 = vld [vmem:[#allocation2] sm:$0xf]  ;;  %v949_v30 = vpop.permute.xlu0 %948 }
 0xbbd   :  { %v1591_v2 = vpop.eup %1590  ;;  %1460 = vmatmul.msk.bf16.vlgmr.msrb.gmra.mxu2 %vm20_vm1, %v846_v1 }
 0xbbe   :  { %953 = vrot.lane.b32.xlu2 %v1591_v2, %s1641_s9 }
 0xbbf   :  { %v1593_v9 = vpop.eup %1592 }
 0xbc0   :  { %v930_v13 = vadd.f32 1.0, %v1593_v9 }
 0xbc2   :  { %1594 = vrcp.f32 %v930_v13  ;;  %v942_v14 = vand.u32 2147483648, %v930_v13  ;;  %vm936_vm15 = vweird.f32 %v930_v13  ;;  %v940_v16 = vand.u32 2147483647, %v930_v13 }
 0xbc4   :  { %v943_v18 = vor.u32 1.1754944e-38, %v942_v14  ;;  %vm941_vm3 = vcmp.eq.f32.partialorder %v940_v16, 8.507059e+37 }
 0xbc8   :  { %v1595_v5 = vpop.eup %1594 }
 0xbc9   :  { %v932_v6 = vmul.f32 %v1595_v5, %v930_v13  ;;  %vm937_vm14 = vweird.f32 %v1595_v5  ;;  %v907_v57 = vpop.permute.xlu1 %906 }
 0xbca   :  { %vm938_vm2 = vmor %vm936_vm15, %vm937_vm14 }
 0xbcb   :  { %v933_v7 = vsub.f32 1.0, %v932_v6 }
 0xbcd   :  { %v934_v11 = vmul.f32 %v1595_v5, %v933_v7 }
 0xbcf   :  { %v935_v12 = vadd.f32 %v1595_v5, %v934_v11 }
 0xbd1   :  { %v939_v17 = vsel %vm938_vm2, %v1595_v5, %v935_v12  ;;  %v1467_v5 = vld [vmem:[%s2083_s0 + $0xc] sm:$0xf] }
 0xbd2   :  { %v944_v20 = vsel %vm941_vm3, %v943_v18, %v939_v17  ;;  %v1021_v6 = vunpack.c.l.bf16 %v1467_v5 }
 0xbd3   :  { %v951_v31 = vmul.f32 %v949_v30, %v944_v20 }
 0xc18   :  { %v954_v21 = vpop.permute.xlu2 %953 }
 0xc19   :  { %v956_v23 = vmul.f32 %v954_v21, %v944_v20 }
 0xc1b   :  { %958 = vrot.lane.b32.xlu2 %v956_v23, %s1640_s1 }
 0xc40   :  { %v859_v25 = vpop.f32.mrf.mxu2 }
 0xc41   :  { %v863_v26 = vadd.f32 %v859_v25, %v845_v24 }
 0xc43   :  { %1596 = vtanh.f32 %v863_v26  ;;  %v1463_v36 = vmul.f32 -1.442695, %v863_v26 }
 0xc48   :  { %v861_v27 = vpop.f32.mrf.mxu2 }
 0xc49   :  { %v1597_v28 = vpop.eup %1596 }
 0xc4a   :  { %911 = vrot.lane.b32.xlu0 %v1597_v28, %s1641_s9 }
 0xc75   :  { %v959_v33 = vpop.permute.xlu2 %958 }
 0xc76   :  { %v961_v34 = vadd.f32 %v959_v33, %v951_v31 }
 0xc78   :  { %1598 = vtanh.f32 %v961_v34 }
 0xc79   :  { %1600 = vpow2.f32 %v1463_v36 }
 0xc7e   :  { %v1599_v35 = vpop.eup %1598 }
 0xc7f   :  { %964 = vrot.lane.b32.xlu0 %v1599_v35, %s1641_s9  ;;  %v1601_v37 = vpop.eup %1600 }
 0xc80   :  { %v888_v38 = vadd.f32 1.0, %v1601_v37  ;;  %v1465_v37 = vld [vmem:[%s2083_s0 + $0x30] sm:$0xf] }
 0xc82   :  { %1602 = vrcp.f32 %v888_v38  ;;  %v900_v47 = vand.u32 2147483648, %v888_v38  ;;  %vm894_vm5 = vweird.f32 %v888_v38  ;;  %v898_v3 = vand.u32 2147483647, %v888_v38 }
 0xc84   :  { %v901_v48 = vor.u32 1.1754944e-38, %v900_v47  ;;  %vm899_vm7 = vcmp.eq.f32.partialorder %v898_v3, 8.507059e+37 }
 0xc88   :  { %v1603_v42 = vpop.eup %1602 }
 0xc89   :  { %v890_v40 = vmul.f32 %v1603_v42, %v888_v38  ;;  %vm895_vm4 = vweird.f32 %v1603_v42  ;;  %v1001_v38 = vunpack.c.l.bf16 %v1465_v37 }
 0xc8a   :  { %vm896_vm6 = vmor %vm894_vm5, %vm895_vm4 }
 0xc8b   :  { %v891_v41 = vsub.f32 1.0, %v890_v40 }
 0xc8d   :  { %v892_v43 = vmul.f32 %v1603_v42, %v891_v41 }
 0xc8f   :  { %v893_v46 = vadd.f32 %v1603_v42, %v892_v43 }
 0xc91   :  { %v897_v8 = vsel %vm896_vm6, %v1603_v42, %v893_v46 }
 0xc92   :  { %v902_v49 = vsel %vm899_vm7, %v901_v48, %v897_v8 }
 0xc93   :  { %v909_v50 = vmul.f32 %v907_v57, %v902_v49 }
 0xcbc   :  { %v912_v51 = vpop.permute.xlu0 %911 }
 0xcbd   :  { %v914_v52 = vmul.f32 %v912_v51, %v902_v49 }
 0xcbf   :  { %916 = vrot.lane.b32.xlu2 %v914_v52, %s1640_s1 }
 0xcf1   :  { %v965_v53 = vpop.permute.xlu0 %964 }
 0xcf2   :  { %v1913_v54 = vmul.f32 %v965_v53, %v944_v20 }
 0xcf4   :  { %v974_v56 = vpack.c.bf16 %v1913_v54, %v1913_v54 }
 0xcf6   :  { %976 = vrot.lane.b32.xlu1 %v974_v56, %s1640_s1 }
 0xcfe   :  { %986 = vrot.lane.b32.xlu1 %v961_v34, %s1642_s10 }
 0xd19   :  { %v917_v58 = vpop.permute.xlu2 %916 }
 0xd1a   :  { %v919_v59 = vadd.f32 %v917_v58, %v909_v50 }
 0xd1c   :  { %1604 = vtanh.f32 %v919_v59  ;;  %981 = vrot.lane.b32.xlu1 %v919_v59, %s1642_s10 }
 0xd22   :  { %v1605_v60 = vpop.eup %1604 }
 0xd23   :  { %922 = vrot.lane.b32.xlu2 %v1605_v60, %s1641_s9 }
 0xd68   :  { %v977_v61 = vpop.permute.xlu1 %976 }
 0xd69   :  { %979 = vst.msk [vmem:[#allocation4] sm:$0xf] %vm18_vm0, %v977_v61 }
 0xd70   :  { %v987_v62 = vpop.permute.xlu1 %986  ;;  %v1022_v63 = vld [vmem:[#allocation4] sm:$0xf] }
 0xd71   :  { %989 = vst.msk [vmem:[#allocation5] sm:$0xff] %vm20_vm1, %v987_v62  ;;  %1468 = vmatmul.msk.bf16.vlgmr.msra.gmra.mxu1 %vm20_vm1, %v1022_v63 }
 0xd78   :  { %v1082_v4 = vld [vmem:[#allocation5] sm:$0xff] }
 0xd7d   :  { %v923_v0 = vpop.permute.xlu2 %922 }
 0xd7e   :  { %v1924_v1 = vmul.f32 %v923_v0, %v902_v49 }
 0xd80   :  { %v968_v2 = vpack.c.bf16 %v1924_v1, %v1924_v1 }
 0xd82   :  { %970 = vrot.lane.b32.xlu0 %v968_v2, %s1640_s1 }
 0xd8a   :  { %1104 = vrot.lane.b32.xlu0 %v1082_v4, %s1640_s1 }
 0xd8e   :  { %v982_v9 = vpop.permute.xlu1 %981 }
 0xd8f   :  { %984 = vst.msk [vmem:[#allocation3] sm:$0xff] %vm20_vm1, %v982_v9 }
 0xd96   :  { %v1040_v13 = vld [vmem:[#allocation3] sm:$0xff] }
 0xd97   :  { %1062 = vrot.lane.b32.xlu1 %v1040_v13, %s1640_s1 }
 0xdee   :  { %v1035_v7 = vpop.f32.mrf.mxu1 }
 0xdef   :  { %v1039_v11 = vadd.f32 %v1035_v7, %v1021_v6 }
 0xdf1   :  { %1606 = vtanh.f32 %v1039_v11  ;;  %v1470_v18 = vmul.f32 -1.442695, %v1039_v11 }
 0xdf3   :  { %1608 = vpow2.f32 %v1470_v18 }
 0xdf4   :  { %v971_v12 = vpop.permute.xlu0 %970 }
 0xdf5   :  { %973 = vst.msk [vmem:[#allocation2] sm:$0xf] %vm18_vm0, %v971_v12 }
 0xdf6   :  { %v1037_v14 = vpop.f32.mrf.mxu1 }
 0xdf7   :  { %v1607_v16 = vpop.eup %1606 }
 0xdf8   :  { %1109 = vrot.lane.b32.xlu2 %v1607_v16, %s1641_s9 }
 0xdf9   :  { %v1609_v20 = vpop.eup %1608 }
 0xdfa   :  { %v1086_v21 = vadd.f32 1.0, %v1609_v20 }
 0xdfc   :  { %v1002_v17 = vld [vmem:[#allocation2] sm:$0xf]  ;;  %1610 = vrcp.f32 %v1086_v21  ;;  %v1098_v28 = vand.u32 2147483648, %v1086_v21  ;;  %vm1092_vm9 = vweird.f32 %v1086_v21  ;;  %v1096_v30 = vand.u32 2147483647, %v1086_v21  ;;  %v1105_v46 = vpop.permute.xlu0 %1104 }
 0xdfd   :  { %1466 = vmatmul.msk.bf16.vlgmr.msra.gmra.mxu0 %vm20_vm1, %v1002_v17 }
 0xdfe   :  { %v1099_v33 = vor.u32 1.1754944e-38, %v1098_v28  ;;  %vm1097_vm11 = vcmp.eq.f32.partialorder %v1096_v30, 8.507059e+37 }
 0xe02   :  { %v1611_v23 = vpop.eup %1610 }
 0xe03   :  { %v1088_v24 = vmul.f32 %v1611_v23, %v1086_v21  ;;  %vm1093_vm8 = vweird.f32 %v1611_v23 }
 0xe04   :  { %vm1094_vm10 = vmor %vm1092_vm9, %vm1093_vm8 }
 0xe05   :  { %v1089_v25 = vsub.f32 1.0, %v1088_v24 }
 0xe07   :  { %v1090_v26 = vmul.f32 %v1611_v23, %v1089_v25 }
 0xe09   :  { %v1091_v27 = vadd.f32 %v1611_v23, %v1090_v26  ;;  %v1063_v5 = vpop.permute.xlu1 %1062  ;;  %v1176_v26 = vld [vmem:[%s2083_s0 + $0x4] sm:$0xf] }
 0xe0b   :  { %v1095_v31 = vsel %vm1094_vm10, %v1611_v23, %v1091_v27  ;;  %v1177_v27 = vunpack.c.l.bf16 %v1176_v26  ;;  %vm212_vm10 = vcmask 523520  }
 0xe0c   :  { %v1100_v34 = vsel %vm1097_vm11, %v1099_v33, %v1095_v31  ;;  %vm1360_vm11 = vcmask 523264  }
 0xe0d   :  { %v1107_v47 = vmul.f32 %v1105_v46, %v1100_v34 }
 0xe52   :  { %v1110_v35 = vpop.permute.xlu2 %1109 }
 0xe53   :  { %v1112_v36 = vmul.f32 %v1110_v35, %v1100_v34 }
 0xe55   :  { %1114 = vrot.lane.b32.xlu2 %v1112_v36, %s1640_s1 }
 0xe7a   :  { %v1015_v42 = vpop.f32.mrf.mxu0 }
 0xe7b   :  { %v1019_v40 = vadd.f32 %v1015_v42, %v1001_v38 }
 0xe7d   :  { %1612 = vtanh.f32 %v1019_v40  ;;  %v1469_v49 = vmul.f32 -1.442695, %v1019_v40 }
 0xe82   :  { %v1017_v41 = vpop.f32.mrf.mxu0 }
 0xe83   :  { %v1613_v43 = vpop.eup %1612 }
 0xe84   :  { %1067 = vrot.lane.b32.xlu0 %v1613_v43, %s1641_s9 }
 0xeaf   :  { %v1115_v3 = vpop.permute.xlu2 %1114 }
 0xeb0   :  { %v1117_v8 = vadd.f32 %v1115_v3, %v1107_v47 }
 0xeb2   :  { %1614 = vtanh.f32 %v1117_v8 }
 0xeb3   :  { %1616 = vpow2.f32 %v1469_v49 }
 0xeb8   :  { %v1615_v48 = vpop.eup %1614 }
 0xeb9   :  { %1120 = vrot.lane.b32.xlu0 %v1615_v48, %s1641_s9  ;;  %v1617_v51 = vpop.eup %1616 }
 0xeba   :  { %v1044_v52 = vadd.f32 1.0, %v1617_v51 }
 0xebc   :  { %1618 = vrcp.f32 %v1044_v52  ;;  %v1056_v59 = vand.u32 2147483648, %v1044_v52  ;;  %vm1050_vm13 = vweird.f32 %v1044_v52  ;;  %v1054_v60 = vand.u32 2147483647, %v1044_v52 }
 0xebe   :  { %v1057_v62 = vor.u32 1.1754944e-38, %v1056_v59  ;;  %vm1055_vm15 = vcmp.eq.f32.partialorder %v1054_v60, 8.507059e+37 }
 0xec2   :  { %v1619_v53 = vpop.eup %1618 }
 0xec3   :  { %v1046_v56 = vmul.f32 %v1619_v53, %v1044_v52  ;;  %vm1051_vm12 = vweird.f32 %v1619_v53 }
 0xec4   :  { %vm1052_vm14 = vmor %vm1050_vm13, %vm1051_vm12 }
 0xec5   :  { %v1047_v57 = vsub.f32 1.0, %v1046_v56  ;;  %v1471_v56 = vld [vmem:[%s2083_s0 + $0x38] sm:$0xf] }
 0xec7   :  { %v1048_v50 = vmul.f32 %v1619_v53, %v1047_v57  ;;  %v1157_v57 = vunpack.c.l.bf16 %v1471_v56 }
 0xec9   :  { %v1049_v58 = vadd.f32 %v1619_v53, %v1048_v50 }
 0xecb   :  { %v1053_v61 = vsel %vm1052_vm14, %v1619_v53, %v1049_v58 }
 0xecc   :  { %v1058_v63 = vsel %vm1055_vm15, %v1057_v62, %v1053_v61 }
 0xecd   :  { %v1065_v6 = vmul.f32 %v1063_v5, %v1058_v63 }
 0xef6   :  { %v1068_v0 = vpop.permute.xlu0 %1067 }
 0xef7   :  { %v1070_v2 = vmul.f32 %v1068_v0, %v1058_v63 }
 0xef9   :  { %1072 = vrot.lane.b32.xlu2 %v1070_v2, %s1640_s1 }
 0xf2b   :  { %v1121_v4 = vpop.permute.xlu0 %1120 }
 0xf2c   :  { %v1945_v9 = vmul.f32 %v1121_v4, %v1100_v34 }
 0xf2e   :  { %v1130_v13 = vpack.c.bf16 %v1945_v9, %v1945_v9 }
 0xf30   :  { %1132 = vrot.lane.b32.xlu1 %v1130_v13, %s1640_s1 }
 0xf38   :  { %1142 = vrot.lane.b32.xlu1 %v1117_v8, %s1642_s10 }
 0xf53   :  { %v1073_v7 = vpop.permute.xlu2 %1072 }
 0xf54   :  { %v1075_v11 = vadd.f32 %v1073_v7, %v1065_v6 }
 0xf56   :  { %1620 = vtanh.f32 %v1075_v11  ;;  %1137 = vrot.lane.b32.xlu1 %v1075_v11, %s1642_s10 }
 0xf5c   :  { %v1621_v12 = vpop.eup %1620 }
 0xf5d   :  { %1078 = vrot.lane.b32.xlu2 %v1621_v12, %s1641_s9 }
 0xfa2   :  { %v1133_v14 = vpop.permute.xlu1 %1132 }
 0xfa3   :  { %1135 = vst.msk [vmem:[#allocation4] sm:$0xf] %vm18_vm0, %v1133_v14 }
 0xfaa   :  { %v1143_v16 = vpop.permute.xlu1 %1142  ;;  %v1178_v17 = vld [vmem:[#allocation4] sm:$0xf] }
 0xfab   :  { %1145 = vst.msk [vmem:[#allocation5] sm:$0xff] %vm20_vm1, %v1143_v16  ;;  %1473 = vmatmul.msk.bf16.vlgmr.msra.gmra.mxu3 %vm20_vm1, %v1178_v17 }
 0xfb2   :  { %v1238_v23 = vld [vmem:[#allocation5] sm:$0xff] }
 0xfb7   :  { %v1079_v18 = vpop.permute.xlu2 %1078 }
 0xfb8   :  { %v1956_v20 = vmul.f32 %v1079_v18, %v1058_v63 }
 0xfba   :  { %v1124_v21 = vpack.c.bf16 %v1956_v20, %v1956_v20 }
 0xfbc   :  { %1126 = vrot.lane.b32.xlu0 %v1124_v21, %s1640_s1 }
 0xfc4   :  { %1260 = vrot.lane.b32.xlu0 %v1238_v23, %s1640_s1 }
 0xfc8   :  { %v1138_v24 = vpop.permute.xlu1 %1137 }
 0xfc9   :  { %1140 = vst.msk [vmem:[#allocation3] sm:$0xff] %vm20_vm1, %v1138_v24 }
 0xfd0   :  { %v1196_v25 = vld [vmem:[#allocation3] sm:$0xff] }
 0xfd1   :  { %1218 = vrot.lane.b32.xlu1 %v1196_v25, %s1640_s1 }
 0xfd9   :  { %204 = vrot.lane.b32.xlu1 %v1739_v10, %s1640_s1 }
0x102e   :  { %v1127_v28 = vpop.permute.xlu0 %1126  ;;  %v1191_v30 = vpop.f32.mrf.mxu3 }
0x102f   :  { %1129 = vst.msk [vmem:[#allocation2] sm:$0xf] %vm18_vm0, %v1127_v28  ;;  %v1195_v31 = vadd.f32 %v1191_v30, %v1177_v27 }
0x1031   :  { %1622 = vtanh.f32 %v1195_v31  ;;  %v1475_v37 = vmul.f32 -1.442695, %v1195_v31 }
0x1033   :  { %1624 = vpow2.f32 %v1475_v37 }
0x1036   :  { %v1193_v33 = vpop.f32.mrf.mxu3  ;;  %v1158_v34 = vld [vmem:[#allocation2] sm:$0xf]  ;;  %v1261_v61 = vpop.permute.xlu0 %1260 }
0x1037   :  { %v1623_v35 = vpop.eup %1622  ;;  %1472 = vmatmul.msk.bf16.vlgmr.msra.gmra.mxu2 %vm20_vm1, %v1158_v34  ;;  %v1501_v33 = vld [vmem:[%s2084_s2 + $0x8] sm:$0xff]  ;;  %v1500_v34 = vld [vmem:[%s2084_s2] sm:$0xff] }
0x1038   :  { %1265 = vrot.lane.b32.xlu2 %v1623_v35, %s1641_s9 }
0x1039   :  { %v1625_v38 = vpop.eup %1624 }
0x103a   :  { %v1242_v42 = vadd.f32 1.0, %v1625_v38 }
0x103c   :  { %1626 = vrcp.f32 %v1242_v42  ;;  %v1254_v3 = vand.u32 2147483648, %v1242_v42  ;;  %vm1248_vm3 = vweird.f32 %v1242_v42  ;;  %v1252_v8 = vand.u32 2147483647, %v1242_v42 }
0x103e   :  { %v1255_v49 = vor.u32 1.1754944e-38, %v1254_v3  ;;  %vm1253_vm5 = vcmp.eq.f32.partialorder %v1252_v8, 8.507059e+37 }
0x1042   :  { %v1627_v40 = vpop.eup %1626 }
0x1043   :  { %v1972_v36 = vpop.permute.xlu1 %1218  ;;  %v1244_v41 = vmul.f32 %v1627_v40, %v1242_v42  ;;  %vm1249_vm2 = vweird.f32 %v1627_v40 }
0x1044   :  { %vm1250_vm4 = vmor %vm1248_vm3, %vm1249_vm2 }
0x1045   :  { %v1245_v43 = vsub.f32 1.0, %v1244_v41 }
0x1047   :  { %v1246_v46 = vmul.f32 %v1627_v40, %v1245_v43 }
0x1049   :  { %v1247_v47 = vadd.f32 %v1627_v40, %v1246_v46 }
0x104b   :  { %v205_v10 = vpop.permute.xlu1 %204  ;;  %v1251_v48 = vsel %vm1250_vm4, %v1627_v40, %v1247_v47 }
0x104c   :  { %207 = vst.msk [vmem:[#allocation6] sm:$0xff] %vm20_vm1, %v205_v10  ;;  %v1256_v51 = vsel %vm1253_vm5, %v1255_v49, %v1251_v48 }
0x104d   :  { %v1263_v62 = vmul.f32 %v1261_v61, %v1256_v51 }
0x1092   :  { %v1266_v52 = vpop.permute.xlu2 %1265 }
0x1093   :  { %v1268_v53 = vmul.f32 %v1266_v52, %v1256_v51 }
0x1095   :  { %1270 = vrot.lane.b32.xlu2 %v1268_v53, %s1640_s1 }
0x10ba   :  { %v1171_v50 = vpop.f32.mrf.mxu2 }
0x10bb   :  { %v1175_v58 = vadd.f32 %v1171_v50, %v1157_v57 }
0x10bd   :  { %1628 = vtanh.f32 %v1175_v58  ;;  %v1474_v4 = vmul.f32 -1.442695, %v1175_v58 }
0x10c2   :  { %v1173_v59 = vpop.f32.mrf.mxu2 }
0x10c3   :  { %v1629_v60 = vpop.eup %1628 }
0x10c4   :  { %1223 = vrot.lane.b32.xlu0 %v1629_v60, %s1641_s9  ;;  %v1509_v60 = vld [vmem:[%s2085_s3] ss:$0 sm:$0xff] }
0x10ef   :  { %v1271_v63 = vpop.permute.xlu2 %1270 }
0x10f0   :  { %v1980_v0 = vadd.f32 %v1271_v63, %v1263_v62 }
0x10f2   :  { %1630 = vtanh.f32 %v1980_v0 }
0x10f3   :  { %1632 = vpow2.f32 %v1474_v4 }
0x10f8   :  { %v1631_v2 = vpop.eup %1630 }
0x10f9   :  { %1276 = vrot.lane.b32.xlu0 %v1631_v2, %s1641_s9  ;;  %v1633_v13 = vpop.eup %1632 }
0x10fa   :  { %v1200_v5 = vadd.f32 1.0, %v1633_v13 }
0x10fc   :  { %1634 = vrcp.f32 %v1200_v5  ;;  %vm1206_vm7 = vweird.f32 %v1200_v5  ;;  %v1210_v14 = vand.u32 2147483647, %v1200_v5 }
0x10fe   :  { %vm1211_vm9 = vcmp.eq.f32.partialorder %v1210_v14, 8.507059e+37 }
0x1101   :  { %1152 = vrot.lane.b32.xlu0 %v1945_v9, %s1641_s9 }
0x1102   :  { %v1635_v6 = vpop.eup %1634 }
0x1103   :  { %v1202_v7 = vmul.f32 %v1635_v6, %v1200_v5  ;;  %vm1207_vm6 = vweird.f32 %v1635_v6 }
0x1104   :  { %vm1208_vm8 = vmor %vm1206_vm7, %vm1207_vm6 }
0x1105   :  { %v1203_v9 = vsub.f32 1.0, %v1202_v7 }
0x1107   :  { %v1204_v11 = vmul.f32 %v1635_v6, %v1203_v9 }
0x1109   :  { %521 = vrot.lane.b32.xlu0 %v1816_v32, %s1640_s1  ;;  %v1205_v12 = vadd.f32 %v1635_v6, %v1204_v11  ;;  %v1212_v32 = vand.u32 2147483648, %v1200_v5 }
0x110b   :  { %v1213_v16 = vor.u32 1.1754944e-38, %v1212_v32 }
0x1111   :  { %996 = vrot.lane.b32.xlu0 %v1913_v54, %s1641_s9  ;;  %v1209_v54 = vsel %vm1208_vm8, %v1635_v6, %v1205_v12 }
0x1112   :  { %v1214_v17 = vsel %vm1211_vm9, %v1213_v16, %v1209_v54 }
0x1113   :  { %v1221_v26 = vmul.f32 %v1972_v36, %v1214_v17 }
0x1119   :  { %835 = vrot.lane.b32.xlu0 %v1894_v55, %s1640_s1 }
0x1121   :  { %368 = vrot.lane.b32.xlu0 %v1775_v19, %s1641_s9 }
0x1136   :  { %v1224_v18 = vpop.permute.xlu0 %1223 }
0x1137   :  { %v1226_v55 = vmul.f32 %v1224_v18, %v1214_v17 }
0x1139   :  { %1228 = vrot.lane.b32.xlu2 %v1226_v55, %s1640_s1 }
0x1141   :  { %363 = vrot.lane.b32.xlu2 %v1780_v22, %s1640_s1 }
0x116b   :  { %v1277_v19 = vpop.permute.xlu0 %1276 }
0x116c   :  { %v1279_v21 = vmul.f32 %v1277_v19, %v1256_v51 }
0x116e   :  { %1308 = vrot.lane.b32.xlu1 %v1279_v21, %s1641_s9  ;;  %v1286_v28 = vpack.c.bf16 %v1279_v21, %v1279_v21 }
0x1173   :  { %v1153_v23 = vpop.permute.xlu0 %1152 }
0x1176   :  { %679 = vrot.lane.b32.xlu1 %v1861_v45, %s1640_s1 }
0x117b   :  { %v522_v24 = vpop.permute.xlu0 %521 }
0x117c   :  { %524 = vst.msk [vmem:[#allocation6 + $0x10] sm:$0xff] %vm20_vm1, %v522_v24 }
0x117e   :  { %526 = vrot.lane.b32.xlu1 %v1811_v29, %s1641_s9  ;;  %v1503_v29 = vld [vmem:[%s2084_s2 + $0x18] sm:$0xff] }
0x117f   :  { %1377 = vmatpush.bf16.msrb.mxu0 %v1503_v29 }
0x1183   :  { %v997_v25 = vpop.permute.xlu0 %996 }
0x1184   :  { %999 = vst.msk [vmem:[#allocation6 + $0x10] sm:$0xff] %vm212_vm10, %v997_v25 }
0x1186   :  { %991 = vrot.lane.b32.xlu1 %v1924_v1, %s1640_s1  ;;  %v1502_v1 = vld [vmem:[%s2084_s2 + $0x10] sm:$0xff] }
0x1187   :  { %1378 = vmatpush.bf16.msrb.mxu0 %v1502_v1 }
0x118b   :  { %v836_v22 = vpop.permute.xlu0 %835  ;;  %1379 = vmatpush.bf16.msrb.mxu0 %v1501_v33  ;;  %v1314_v47 = vld [vmem:[#allocation6 + $0x10] sm:$0xff] }
0x118e   :  { %1147 = vrot.lane.b32.xlu1 %v1956_v20, %s1640_s1 }
0x118f   :  { %1380 = vmatpush.bf16.msrb.mxu0 %v1500_v34 }
0x1193   :  { %v1229_v45 = vpop.permute.xlu2 %1228  ;;  %v369_v27 = vpop.permute.xlu0 %368 }
0x1194   :  { %v1231_v30 = vadd.f32 %v1229_v45, %v1221_v26  ;;  %371 = vst.msk [vmem:[#allocation6 + $0x30] sm:$0xff] %vm212_vm10, %v369_v27 }
0x1196   :  { %1636 = vtanh.f32 %v1231_v30  ;;  %1288 = vrot.lane.b32.xlu1 %v1286_v28, %s1640_s1 }
0x119b   :  { %v364_v20 = vpop.permute.xlu2 %363 }
0x119c   :  { %v1637_v31 = vpop.eup %1636  ;;  %366 = vst.msk [vmem:[#allocation6 + $0x8] sm:$0xff] %vm20_vm1, %v364_v20 }
0x119d   :  { %1155 = vst.msk [vmem:[#allocation6 + $0x8] sm:$0xff] %vm212_vm10, %v1153_v23  ;;  %1234 = vrot.lane.b32.xlu2 %v1637_v31, %s1641_s9 }
0x11a4   :  { %v1313_v10 = vld [vmem:[#allocation6 + $0x8] sm:$0xff] }
0x11a5   :  { %840 = vrot.lane.b32.xlu2 %v1883_v44, %s1641_s9 }
0x11ad   :  { %684 = vrot.lane.b32.xlu2 %v1852_v39, %s1641_s9 }
0x11b5   :  { %209 = vrot.lane.b32.xlu2 %v1746_v15, %s1641_s9 }
0x11e0   :  { %v1309_v35 = vpop.permute.xlu1 %1308 }
0x11e1   :  { %1311 = vst.msk [vmem:[#allocation6] sm:$0xff] %vm212_vm10, %v1309_v35 }
0x11e8   :  { %v680_v44 = vpop.permute.xlu1 %679  ;;  %v1312_v36 = vld [vmem:[#allocation6] sm:$0xff] }
0x11e9   :  { %682 = vst.msk [vmem:[#allocation6 + $0x18] sm:$0xff] %vm20_vm1, %v680_v44  ;;  %v1320_v15 = vpack.c.bf16 %v1313_v10, %v1312_v36 }
0x11eb   :  { %1492 = vmatmul.msk.bf16.vlgmr.msrb.gmra.mxu0 %vm1360_vm11, %v1320_v15 }
0x11f0   :  { %v527_v39 = vpop.permute.xlu1 %526 }
0x11f1   :  { %529 = vst.msk [vmem:[#allocation6 + $0x28] sm:$0xff] %vm212_vm10, %v527_v39 }
0x11f7   :  { %v1235_v37 = vpop.permute.xlu2 %1234 }
0x11f8   :  { %v1237_v38 = vmul.f32 %v1235_v37, %v1214_v17  ;;  %v992_v42 = vpop.permute.xlu1 %991 }
0x11f9   :  { %994 = vst.msk [vmem:[#allocation6 + $0x28] sm:$0xff] %vm20_vm1, %v992_v42 }
0x11fa   :  { %v1280_v40 = vpack.c.bf16 %v1237_v38, %v1237_v38  ;;  %1303 = vrot.lane.b32.xlu2 %v1237_v38, %s1640_s1 }
0x11fc   :  { %1282 = vrot.lane.b32.xlu0 %v1280_v40, %s1640_s1 }
0x11ff   :  { %v841_v41 = vpop.permute.xlu2 %840 }
0x1200   :  { %843 = vst.msk [vmem:[#allocation6 + $0x18] sm:$0xff] %vm212_vm10, %v841_v41  ;;  %v1148_v43 = vpop.permute.xlu1 %1147  ;;  %v1317_v52 = vld [vmem:[#allocation6 + $0x28] sm:$0xff] }
0x1201   :  { %1150 = vst.msk [vmem:[#allocation6 + $0x30] sm:$0xff] %vm20_vm1, %v1148_v43 }
0x1202   :  { %1293 = vrot.lane.b32.xlu2 %v1231_v30, %s1642_s10 }
0x1204   :  { %1298 = vrot.lane.b32.xlu0 %v1980_v0, %s1642_s10 }
0x1207   :  { %v685_v46 = vpop.permute.xlu2 %684  ;;  %v1315_v3 = vld [vmem:[#allocation6 + $0x18] sm:$0xff] }
0x1208   :  { %687 = vst.msk [vmem:[#allocation6 + $0x20] sm:$0xff] %vm212_vm10, %v685_v46  ;;  %v1289_v8 = vpop.permute.xlu1 %1288  ;;  %v1321_v48 = vpack.c.bf16 %v1315_v3, %v1314_v47  ;;  %v1318_v50 = vld [vmem:[#allocation6 + $0x30] sm:$0xff] }
0x1209   :  { %838 = vst.msk [vmem:[#allocation6 + $0x20] sm:$0xff] %vm20_vm1, %v836_v22 }
0x120a   :  { %1291 = vst.msk [vmem:[#allocation4] sm:$0xf] %vm18_vm0, %v1289_v8  ;;  %1493 = vmatmul.msk.bf16.gmra.mxu0 %vm1360_vm11, %v1321_v48 }
0x120f   :  { %v210_v49 = vpop.permute.xlu2 %209 }
0x1210   :  { %213 = vst.msk [vmem:[#allocation6 + $0x38] sm:$0xff] %vm212_vm10, %v210_v49  ;;  %v1316_v51 = vld [vmem:[#allocation6 + $0x20] sm:$0xff] }
0x1211   :  { %v1322_v53 = vpack.c.bf16 %v1317_v52, %v1316_v51 }
0x121a   :  { %1494 = vmatmul.msk.bf16.gmra.mxu0 %vm1360_vm11, %v1322_v53 }
0x1254   :  { %v1304_v56 = vpop.permute.xlu2 %1303 }
0x1255   :  { %1306 = vst.msk [vmem:[#allocation6 + $0x38] sm:$0xff] %vm20_vm1, %v1304_v56 }
0x125c   :  { %v1294_v57 = vpop.permute.xlu2 %1293  ;;  %v1319_v58 = vld [vmem:[#allocation6 + $0x38] sm:$0xff] }
0x125d   :  { %1296 = vst.msk [vmem:[#allocation3] sm:$0xff] %vm20_vm1, %v1294_v57  ;;  %v1323_v59 = vpack.c.bf16 %v1319_v58, %v1318_v50 }
0x125f   :  { %1495 = vmatmul.msk.bf16.gmra.mxu0 %vm1360_vm11, %v1323_v59 }
0x1268   :  { %v1382_v61 = vpop.f32.mrf.mxu0 }
0x1269   :  { %v1383_v62 = vadd.f32 %v1509_v60, %v1382_v61 }
0x126b   :  { %1402 = vst [vmem:[%s2086_s4] sm:$0xff] %v1383_v62 }
0x126e   :  { %v1283_v63 = vpop.permute.xlu0 %1282 }
0x126f   :  { %1285 = vst.msk [vmem:[#allocation2] sm:$0xf] %vm18_vm0, %v1283_v63 }
0x1270   :  { %v1384_v0 = vpop.f32.mrf.mxu0 }
0x1271   :  { %v1385_v2 = vadd.f32 %v1509_v60, %v1384_v0 }
0x1273   :  { %1403 = vst [vmem:[%s2086_s4 + $0x8] sm:$0xff] %v1385_v2 }
0x1276   :  { %v1299_v4 = vpop.permute.xlu0 %1298 }
0x1277   :  { %1301 = vst.msk [vmem:[#allocation5] sm:$0xff] %vm20_vm1, %v1299_v4 }
0x1287   :  { %v1387_v13 = vpop.f32.mrf.mxu0 }
0x1288   :  { %v1388_v5 = vadd.f32 %v1509_v60, %v1387_v13 }
0x128a   :  { %1404 = vst [vmem:[%s2086_s4 + $0x10] sm:$0xff] %v1388_v5 }
0x128f   :  { %v1389_v6 = vpop.f32.mrf.mxu0 }
0x1290   :  { %v1390_v7 = vadd.f32 %v1509_v60, %v1389_v6 }
0x1292   :  { %1405 = vst [vmem:[%s2086_s4 + $0x18] sm:$0xff] %v1390_v7 }
0x1297   :  { %v1392_v9 = vpop.f32.mrf.mxu0 }
0x1298   :  { %v1393_v11 = vadd.f32 %v1509_v60, %v1392_v9 }
0x129a   :  { %1406 = vst [vmem:[%s2086_s4 + $0x20] sm:$0xff] %v1393_v11 }
0x129f   :  { %v1394_v12 = vpop.f32.mrf.mxu0 }
0x12a0   :  { %v1395_v32 = vadd.f32 %v1509_v60, %v1394_v12 }
0x12a2   :  { %1407 = vst [vmem:[%s2086_s4 + $0x28] sm:$0xff] %v1395_v32 }
0x12dc   :  { %v1397_v14 = vpop.f32.mrf.mxu0 }
0x12dd   :  { %v1398_v54 = vadd.f32 %v1509_v60, %v1397_v14 }
0x12df   :  { %1408 = vst [vmem:[%s2086_s4 + $0x30] sm:$0xff] %v1398_v54 }
0x12e4   :  { %v1399_v16 = vpop.f32.mrf.mxu0 }
0x12e5   :  { %v1400_v17 = vadd.f32 %v1509_v60, %v1399_v16 }
0x12e7   :  { %1409 = vst [vmem:[%s2086_s4 + $0x38] sm:$0xff] %v1400_v17 }

</bundles_post_ra>
